<compile_context>
chip_gen: v7x
topology: tpu7x:2x2x1
jax: 0.10.0
libtpu: 0.0.40
codegen_flags: <defaults>
</compile_context>

<pallas_src>
import functools

import jax
import jax.numpy as jnp
from jax.experimental import pallas as pl
from jax.experimental.pallas import tpu as pltpu


# --------------------------------------------------------------------------
# Hardware-aware knobs
# --------------------------------------------------------------------------
@functools.lru_cache(maxsize=None)
def _vmem_capacity_bytes() -> int:
    """Physical VMEM per TensorCore; conservative 64 MiB (v7x) fallback."""
    try:
        info = pltpu.get_tpu_info()
        cap = int(getattr(info, "vmem_capacity_bytes", 0) or 0)
        if cap > 0:
            return cap
    except Exception:  # best-effort hardware query
        pass
    return 64 * 1024 * 1024


def _compiler_params():
    cls = getattr(pltpu, "CompilerParams", None) or getattr(
        pltpu, "TPUCompilerParams")
    return cls(dimension_semantics=("parallel", "arbitrary"),
               vmem_limit_bytes=int(0.82 * _vmem_capacity_bytes()))


def _round_up(x: int, m: int) -> int:
    return -(-x // m) * m


def _pick_batch_tile(N: int, max_tile: int = 128) -> int:
    """Batch tile Nb (grid axis marked "parallel"); Nb == N for small batches."""
    if N <= max_tile:
        return N
    for nb in range(max_tile, 7, -1):
        if N % nb == 0 and nb % 8 == 0:
            return nb
    return N


def _pick_chunk(T, Nb, Hp, gx_itemsize, w_itemsize, *, max_chunk, budget_bytes):
    """Largest time-chunk K (<= max_chunk) whose VMEM working set fits budget."""

    def est(kk):
        gx_blk = 2 * 2 * kk * Nb * 4 * Hp * gx_itemsize   # fwd+bwd, dbl-buffered
        out_blk = 2 * 2 * kk * Nb * Hp * 4                # fwd+bwd, dbl-buffered
        whh_blk = 2 * 2 * Hp * 4 * Hp * w_itemsize        # (2,Hp,4Hp), dbl-buf
        scratch = 4 * Nb * Hp * 4                         # h/c carries (f32)
        return gx_blk + out_blk + whh_blk + scratch

    k = max(1, min(max_chunk, T))
    while k > 1 and est(k) > budget_bytes:
        k = max(1, k // 2)
    nc = -(-T // k)              # ceil div
    k = -(-T // nc)              # re-balance to minimize time padding
    return k, nc


# --------------------------------------------------------------------------
# Weight preparation (padding H -> Hp for lane alignment, dir fusion)
# --------------------------------------------------------------------------
def _pad_gate_rows(w, H, Hp):
    """(4H, ...) -> (4Hp, ...): pad each of the 4 PyTorch gate blocks."""
    if Hp == H:
        return w
    w4 = w.reshape((4, H) + w.shape[1:])
    w4 = jnp.pad(w4, ((0, 0), (0, Hp - H)) + ((0, 0),) * (w.ndim - 1))
    return w4.reshape((4 * Hp,) + w.shape[1:])


def _prep_layer_weights(layer_params, H, Hp, in_feat, weight_dtype):
    """Returns wih_cat (F, 8Hp), bias_cat (8Hp,) f32, whh (2, Hp, 4Hp)."""
    wih_cols, bias_parts, whh_rows = [], [], []
    for direction in ("fwd", "bwd"):
        w_ih, w_hh, b_ih, b_hh = layer_params[direction]
        w_ih = jnp.asarray(w_ih, jnp.float32)
        w_hh = jnp.asarray(w_hh, jnp.float32)
        bias = jnp.asarray(b_ih, jnp.float32) + jnp.asarray(b_hh, jnp.float32)
        if w_ih.shape[1] != in_feat:
            # Layer >= 1 with padded hidden: original columns are
            # [fwd H | bwd H]; pad each half to Hp so they line up with the
            # previous layer's (T, N, 2*Hp) padded activations.
            assert in_feat == 2 * Hp and w_ih.shape[1] == 2 * H
            wf = jnp.pad(w_ih[:, :H], ((0, 0), (0, Hp - H)))
            wb = jnp.pad(w_ih[:, H:], ((0, 0), (0, Hp - H)))
            w_ih = jnp.concatenate([wf, wb], axis=1)
        w_ih = _pad_gate_rows(w_ih, H, Hp)                  # (4Hp, F)
        w_hh = _pad_gate_rows(w_hh, H, Hp)                  # (4Hp, H)
        w_hh = jnp.pad(w_hh, ((0, 0), (0, Hp - H)))         # (4Hp, Hp)
        bias = _pad_gate_rows(bias, H, Hp)                  # (4Hp,)
        wih_cols.append(w_ih.T)                             # (F, 4Hp)
        bias_parts.append(bias)
        whh_rows.append(w_hh.T)                             # (Hp, 4Hp)
    wih_cat = jnp.concatenate(wih_cols, axis=1).astype(weight_dtype)  # (F, 8Hp)
    bias_cat = jnp.concatenate(bias_parts, axis=0)                    # (8Hp,)
    whh = jnp.stack(whh_rows, axis=0).astype(weight_dtype)            # (2,Hp,4Hp)
    return wih_cat, bias_cat, whh


# --------------------------------------------------------------------------
# Pallas kernel: sequential recurrence (both directions interleaved)
# --------------------------------------------------------------------------
def _bilstm_layer_kernel(gxf_ref, gxb_ref, whh_ref, outf_ref, outb_ref,
                         hf_sc, cf_sc, hb_sc, cb_sc, *, hidden, chunk, unroll):
    """One grid step = one (batch-tile, time-chunk).

    Forward and (pre-time-flipped) backward directions are two independent
    dependency chains computed back-to-back per step, so one direction's MXU
    latency overlaps the other's EUP/VPU work on a single TensorCore.
    """
    H = hidden

    @pl.when(pl.program_id(1) == 0)
    def _():
        hf_sc[...] = jnp.zeros_like(hf_sc)
        cf_sc[...] = jnp.zeros_like(cf_sc)
        hb_sc[...] = jnp.zeros_like(hb_sc)
        cb_sc[...] = jnp.zeros_like(cb_sc)

    whh_f = whh_ref[0]          # (Hp, 4Hp); constant block index -> single DMA
    whh_b = whh_ref[1]

    def cell(gates, c_prev):
        i = jax.nn.sigmoid(gates[:, 0 * H:1 * H])
        f = jax.nn.sigmoid(gates[:, 1 * H:2 * H])
        g = jnp.tanh(gates[:, 2 * H:3 * H])
        o = jax.nn.sigmoid(gates[:, 3 * H:4 * H])
        c_new = f * c_prev + i * g
        h_new = o * jnp.tanh(c_new)
        return h_new, c_new

    def step(k, carry):
        h_f, c_f, h_b, c_b = carry
        gf = gxf_ref[k].astype(jnp.float32) + jnp.dot(
            h_f.astype(whh_f.dtype), whh_f, preferred_element_type=jnp.float32)
        gb = gxb_ref[k].astype(jnp.float32) + jnp.dot(
            h_b.astype(whh_b.dtype), whh_b, preferred_element_type=jnp.float32)
        h_f, c_f = cell(gf, c_f)
        h_b, c_b = cell(gb, c_b)
        outf_ref[k] = h_f
        outb_ref[k] = h_b
        return h_f, c_f, h_b, c_b

    carry = (hf_sc[...], cf_sc[...], hb_sc[...], cb_sc[...])
    if unroll >= chunk:
        for k in range(chunk):          # fully static in-chunk indices
            carry = step(k, carry)
    else:
        carry = jax.lax.fori_loop(0, chunk, step, carry, unroll=unroll)
    h_f, c_f, h_b, c_b = carry
    hf_sc[...] = h_f
    cf_sc[...] = c_f
    hb_sc[...] = h_b
    cb_sc[...] = c_b


# --------------------------------------------------------------------------
# One bidirectional layer
# --------------------------------------------------------------------------
def _bilstm_layer(inp, layer_params, H, Hp, *, weight_dtype, gx_dtype,
                  max_chunk, batch_tile):
    """inp: (T, N, F) with F = input_dim (layer 0) or 2*Hp (deeper layers).

    Returns (fwd_out, bwd_out), each (T, N, Hp) float32 (padded channels == 0).
    """
    T, N, F = inp.shape
    wih_cat, bias_cat, whh = _prep_layer_weights(layer_params, H, Hp, F,
                                                 weight_dtype)

    # Hoisted, fused time-parallel input projection for BOTH directions.
    gx_all = jnp.einsum('tnf,fg->tng', inp.astype(weight_dtype), wih_cat,
                        preferred_element_type=jnp.float32) + bias_cat
    gxf = gx_all[..., :4 * Hp]
    gxb = gx_all[..., 4 * Hp:][::-1]    # pre-flip backward stream in time

    Nb = batch_tile
    nb = N // Nb
    budget = int(0.70 * _vmem_capacity_bytes())
    K, nc = _pick_chunk(T, Nb, Hp, jnp.dtype(gx_dtype).itemsize,
                        jnp.dtype(weight_dtype).itemsize,
                        max_chunk=max_chunk, budget_bytes=budget)
    T_pad = K * nc
    if T_pad != T:
        # Padding is appended AFTER the last real step of both (pre-flipped)
        # streams, so initial states and real outputs are never affected.
        pad = ((0, T_pad - T), (0, 0), (0, 0))
        gxf = jnp.pad(gxf, pad)
        gxb = jnp.pad(gxb, pad)
    gxf = gxf.astype(gx_dtype)
    gxb = gxb.astype(gx_dtype)

    # Bounded unroll to keep live gate tensors inside the 64x4KiB vreg file.
    unroll = int(max(1, min(K, 8,
                            (128 * 1024) // max(1, 2 * Nb * 4 * Hp * 4))))
    kernel = functools.partial(_bilstm_layer_kernel, hidden=Hp, chunk=K,
                               unroll=unroll)

    gx_spec = pl.BlockSpec((K, Nb, 4 * Hp), lambda b, c: (c, b, 0))
    out_spec = pl.BlockSpec((K, Nb, Hp), lambda b, c: (c, b, 0))
    whh_spec = pl.BlockSpec((2, Hp, 4 * Hp), lambda b, c: (0, 0, 0))

    out_f, out_b_rev = pl.pallas_call(
        kernel,
        out_shape=(jax.ShapeDtypeStruct((T_pad, N, Hp), jnp.float32),
                   jax.ShapeDtypeStruct((T_pad, N, Hp), jnp.float32)),
        grid_spec=pltpu.PrefetchScalarGridSpec(
            num_scalar_prefetch=0,
            grid=(nb, nc),
            in_specs=[gx_spec, gx_spec, whh_spec],
            out_specs=[out_spec, out_spec],
            scratch_shapes=[pltpu.VMEM((Nb, Hp), jnp.float32)
                            for _ in range(4)],
        ),
        compiler_params=_compiler_params(),
    )(gxf, gxb, whh)

    out_f = out_f[:T]
    out_b = out_b_rev[:T][::-1]         # undo the time pre-flip
    return out_f, out_b


# --------------------------------------------------------------------------
# Full BiLSTMBlock forward
# --------------------------------------------------------------------------
def bilstm_block(x, params, *, weight_dtype=jnp.bfloat16,
                 gx_dtype=jnp.float32, max_chunk=32):
    """Forward pass of BiLSTMBlock: (T, N, D) -> (T, N, 2*hidden_size).

    weight_dtype=bf16 (default) feeds the MXU native-rate operands with f32
    accumulation and f32 h/c state; gx_dtype=bf16 additionally halves the gate
    pre-activation HBM round-trip (useful on bandwidth-poor v5e).
    """
    # TODO(synk): inter-layer dropout is train-mode only in PyTorch; this
    # reproduces eval/inference semantics.
    x = jnp.asarray(x, jnp.float32)
    T, N, _ = x.shape
    H = params[0]["fwd"][1].shape[1]
    Hp = _round_up(H, 128)              # lane-aligned gate slices & stores
    Nb = _pick_batch_tile(N)

    inp = x
    for layer_params in params:
        fwd, bwd = _bilstm_layer(inp, layer_params, H, Hp,
                                 weight_dtype=weight_dtype, gx_dtype=gx_dtype,
                                 max_chunk=max_chunk, batch_tile=Nb)
        inp = jnp.concatenate([fwd, bwd], axis=-1)          # (T, N, 2*Hp)
    if Hp == H:
        return inp
    return jnp.concatenate([inp[..., :H], inp[..., Hp:Hp + H]], axis=-1)


def init_bilstm_params(key, input_dim, hidden_size, num_layers):
    """PyTorch-style uniform(-1/sqrt(H), 1/sqrt(H)) init, deterministic."""
    bound = 1.0 / (hidden_size ** 0.5)
    params = []
    for layer in range(num_layers):
        in_dim = input_dim if layer == 0 else 2 * hidden_size
        layer_params = {}
        for direction in ("fwd", "bwd"):
            key, k1, k2, k3, k4 = jax.random.split(key, 5)
            w_ih = jax.random.uniform(k1, (4 * hidden_size, in_dim),
                                      jnp.float32, -bound, bound)
            w_hh = jax.random.uniform(k2, (4 * hidden_size, hidden_size),
                                      jnp.float32, -bound, bound)
            b_ih = jax.random.uniform(k3, (4 * hidden_size,),
                                      jnp.float32, -bound, bound)
            b_hh = jax.random.uniform(k4, (4 * hidden_size,),
                                      jnp.float32, -bound, bound)
            layer_params[direction] = (w_ih, w_hh, b_ih, b_hh)
        params.append(layer_params)
    return params


# ----------------------- pure-JAX reference (for checking) -----------------
def _lstm_dir_ref(x, w_ih, w_hh, b_ih, b_hh, reverse):
    T, N, _ = x.shape
    H = w_hh.shape[1]
    xs = x[::-1] if reverse else x

    def step(carry, x_t):
        h, c = carry
        gates = x_t @ w_ih.T + h @ w_hh.T + b_ih + b_hh
        i = jax.nn.sigmoid(gates[:, 0 * H:1 * H])
        f = jax.nn.sigmoid(gates[:, 1 * H:2 * H])
        g = jnp.tanh(gates[:, 2 * H:3 * H])
        o = jax.nn.sigmoid(gates[:, 3 * H:4 * H])
        c = f * c + i * g
        h = o * jnp.tanh(c)
        return (h, c), h

    init = (jnp.zeros((N, H), jnp.float32), jnp.zeros((N, H), jnp.float32))
    _, hs = jax.lax.scan(step, init, xs)
    return hs[::-1] if reverse else hs


def bilstm_ref(x, params):
    inp = x
    for layer_params in params:
        fwd = _lstm_dir_ref(inp, *layer_params["fwd"], reverse=False)
        bwd = _lstm_dir_ref(inp, *layer_params["bwd"], reverse=True)
        inp = jnp.concatenate([fwd, bwd], axis=-1)
    return inp


if __name__ == "__main__":
    T, N, D = 8, 2, 16          # seq len, batch, input_dim
    H, L = 32, 2                # hidden_size, num_layers

    key = jax.random.PRNGKey(0)
    key, xk = jax.random.split(key)
    x = jax.random.normal(xk, (T, N, D), jnp.float32)
    params = init_bilstm_params(key, D, H, L)

    ref = jax.block_until_ready(bilstm_ref(x, params))

    # Exactness check of the recurrence/padding/flip logic (f32 weights).
    out_f32 = jax.block_until_ready(
        bilstm_block(x, params, weight_dtype=jnp.float32))
    assert out_f32.shape == (T, N, 2 * H), out_f32.shape
    err_f32 = float(jnp.max(jnp.abs(out_f32 - ref)))
    assert err_f32 < 1e-3, err_f32

    # Default (bf16-weight) fast path; looser tolerance for the cast error.
    out = jax.block_until_ready(bilstm_block(x, params))
    assert out.shape == (T, N, 2 * H), out.shape
    err = float(jnp.max(jnp.abs(out - ref)))
    assert err < 5e-2, err

    print("KERNEL_OK")
</pallas_src>

<mosaic_0001>
module attributes {stable_mosaic.version = 11 : i64} {
  func.func @_bilstm_layer_kernel(%arg0: i32, %arg1: i32, %arg2: memref<8x2x512xf32, #tpu.memory_space<vmem>>, %arg3: memref<8x2x512xf32, #tpu.memory_space<vmem>>, %arg4: memref<2x128x512xf32, #tpu.memory_space<vmem>>, %arg5: memref<8x2x128xf32, #tpu.memory_space<vmem>>, %arg6: memref<8x2x128xf32, #tpu.memory_space<vmem>>, %arg7: memref<2x128xf32, #tpu.memory_space<vmem>>, %arg8: memref<2x128xf32, #tpu.memory_space<vmem>>, %arg9: memref<2x128xf32, #tpu.memory_space<vmem>>, %arg10: memref<2x128xf32, #tpu.memory_space<vmem>>) attributes {dimension_semantics = [#tpu.dimension_semantics<parallel>, #tpu.dimension_semantics<arbitrary>], iteration_bounds = array<i64: 1, 1>, scalar_prefetch = 0 : i64, scratch_operands = 4 : i64, tpu.core_type = #tpu.core_type<tc>, window_params = [{transform_indices = @transform_0, window_bounds = array<i64: 8, 2, 512>}, {transform_indices = @transform_1, window_bounds = array<i64: 8, 2, 512>}, {pipeline_mode = #tpu.pipeline_mode<synchronous>, transform_indices = @transform_2, window_bounds = array<i64: 2, 128, 512>}, {transform_indices = @transform_3, window_bounds = array<i64: 8, 2, 128>}, {transform_indices = @transform_4, window_bounds = array<i64: 8, 2, 128>}]} {
    %c0_i32 = arith.constant 0 : i32
    %0 = arith.cmpi eq, %arg1, %c0_i32 : i32
    %1 = arith.extui %0 : i1 to i32
    %c0_i32_0 = arith.constant 0 : i32
    %2 = arith.cmpi ne, %1, %c0_i32_0 : i32
    scf.if %2 {
      %cst_174 = arith.constant 0.000000e+00 : f32
      %527 = vector.broadcast %cst_174 : f32 to vector<2x128xf32>
      %c0_175 = arith.constant 0 : index
      %c0_176 = arith.constant 0 : index
      %528 = vector.load %arg7[%c0_175, %c0_176] : memref<2x128xf32, #tpu.memory_space<vmem>>, vector<2x128xf32>
      tpu.vector_store %arg7[%c0_175, %c0_176], %527 {strides = array<i32>} : memref<2x128xf32, #tpu.memory_space<vmem>>, vector<2x128xf32>,
      %cst_177 = arith.constant 0.000000e+00 : f32
      %529 = vector.broadcast %cst_177 : f32 to vector<2x128xf32>
      %c0_178 = arith.constant 0 : index
      %c0_179 = arith.constant 0 : index
      %530 = vector.load %arg8[%c0_178, %c0_179] : memref<2x128xf32, #tpu.memory_space<vmem>>, vector<2x128xf32>
      tpu.vector_store %arg8[%c0_178, %c0_179], %529 {strides = array<i32>} : memref<2x128xf32, #tpu.memory_space<vmem>>, vector<2x128xf32>,
      %cst_180 = arith.constant 0.000000e+00 : f32
      %531 = vector.broadcast %cst_180 : f32 to vector<2x128xf32>
      %c0_181 = arith.constant 0 : index
      %c0_182 = arith.constant 0 : index
      %532 = vector.load %arg9[%c0_181, %c0_182] : memref<2x128xf32, #tpu.memory_space<vmem>>, vector<2x128xf32>
      tpu.vector_store %arg9[%c0_181, %c0_182], %531 {strides = array<i32>} : memref<2x128xf32, #tpu.memory_space<vmem>>, vector<2x128xf32>,
      %cst_183 = arith.constant 0.000000e+00 : f32
      %533 = vector.broadcast %cst_183 : f32 to vector<2x128xf32>
      %c0_184 = arith.constant 0 : index
      %c0_185 = arith.constant 0 : index
      %534 = vector.load %arg10[%c0_184, %c0_185] : memref<2x128xf32, #tpu.memory_space<vmem>>, vector<2x128xf32>
      tpu.vector_store %arg10[%c0_184, %c0_185], %533 {strides = array<i32>} : memref<2x128xf32, #tpu.memory_space<vmem>>, vector<2x128xf32>,
    } else {
    }
    %c0 = arith.constant 0 : index
    %c0_1 = arith.constant 0 : index
    %c0_2 = arith.constant 0 : index
    %3 = vector.load %arg4[%c0, %c0_1, %c0_2] : memref<2x128x512xf32, #tpu.memory_space<vmem>>, vector<1x128x512xf32>
    %4 = vector.shape_cast %3 : vector<1x128x512xf32> to vector<128x512xf32>
    %c1 = arith.constant 1 : index
    %c0_3 = arith.constant 0 : index
    %c0_4 = arith.constant 0 : index
    %5 = vector.load %arg4[%c1, %c0_3, %c0_4] : memref<2x128x512xf32, #tpu.memory_space<vmem>>, vector<1x128x512xf32>
    %6 = vector.shape_cast %5 : vector<1x128x512xf32> to vector<128x512xf32>
    %c0_5 = arith.constant 0 : index
    %c0_6 = arith.constant 0 : index
    %7 = vector.load %arg7[%c0_5, %c0_6] : memref<2x128xf32, #tpu.memory_space<vmem>>, vector<2x128xf32>
    %c0_7 = arith.constant 0 : index
    %c0_8 = arith.constant 0 : index
    %8 = vector.load %arg8[%c0_7, %c0_8] : memref<2x128xf32, #tpu.memory_space<vmem>>, vector<2x128xf32>
    %c0_9 = arith.constant 0 : index
    %c0_10 = arith.constant 0 : index
    %9 = vector.load %arg9[%c0_9, %c0_10] : memref<2x128xf32, #tpu.memory_space<vmem>>, vector<2x128xf32>
    %c0_11 = arith.constant 0 : index
    %c0_12 = arith.constant 0 : index
    %10 = vector.load %arg10[%c0_11, %c0_12] : memref<2x128xf32, #tpu.memory_space<vmem>>, vector<2x128xf32>
    %c0_13 = arith.constant 0 : index
    %c0_14 = arith.constant 0 : index
    %c0_15 = arith.constant 0 : index
    %11 = vector.load %arg2[%c0_13, %c0_14, %c0_15] : memref<8x2x512xf32, #tpu.memory_space<vmem>>, vector<1x2x512xf32>
    %12 = vector.shape_cast %11 : vector<1x2x512xf32> to vector<2x512xf32>
    %cst = arith.constant dense<0.000000e+00> : vector<2x512xf32>
    %13 = tpu.matmul %7, %4, %cst {dimension_numbers = #tpu.dot_dimension_numbers<[1], [0], [0], [1], [0, 0, 1, 1], [], []>} : vector<2x128xf32>, vector<128x512xf32>, vector<2x512xf32> -> vector<2x512xf32>
    %14 = arith.addf %12, %13 : vector<2x512xf32>
    %c0_16 = arith.constant 0 : index
    %c0_17 = arith.constant 0 : index
    %c0_18 = arith.constant 0 : index
    %15 = vector.load %arg3[%c0_16, %c0_17, %c0_18] : memref<8x2x512xf32, #tpu.memory_space<vmem>>, vector<1x2x512xf32>
    %16 = vector.shape_cast %15 : vector<1x2x512xf32> to vector<2x512xf32>
    %cst_19 = arith.constant dense<0.000000e+00> : vector<2x512xf32>
    %17 = tpu.matmul %9, %6, %cst_19 {dimension_numbers = #tpu.dot_dimension_numbers<[1], [0], [0], [1], [0, 0, 1, 1], [], []>} : vector<2x128xf32>, vector<128x512xf32>, vector<2x512xf32> -> vector<2x512xf32>
    %18 = arith.addf %16, %17 : vector<2x512xf32>
    %19 = vector.extract_strided_slice %14 {offsets = [0, 0], sizes = [2, 128], strides = [1, 1]} : vector<2x512xf32> to vector<2x128xf32>
    %20 = arith.negf %19 : vector<2x128xf32>
    %21 = math.exp %20 : vector<2x128xf32>
    %cst_20 = arith.constant 1.000000e+00 : f32
    %22 = vector.broadcast %cst_20 : f32 to vector<2x128xf32>
    %23 = arith.addf %22, %21 : vector<2x128xf32>
    %24 = arith.divf %22, %23 : vector<2x128xf32>
    %25 = vector.extract_strided_slice %14 {offsets = [0, 128], sizes = [2, 128], strides = [1, 1]} : vector<2x512xf32> to vector<2x128xf32>
    %26 = arith.negf %25 : vector<2x128xf32>
    %27 = math.exp %26 : vector<2x128xf32>
    %cst_21 = arith.constant 1.000000e+00 : f32
    %28 = vector.broadcast %cst_21 : f32 to vector<2x128xf32>
    %29 = arith.addf %28, %27 : vector<2x128xf32>
    %30 = arith.divf %28, %29 : vector<2x128xf32>
    %31 = vector.extract_strided_slice %14 {offsets = [0, 256], sizes = [2, 128], strides = [1, 1]} : vector<2x512xf32> to vector<2x128xf32>
    %32 = math.tanh %31 : vector<2x128xf32>
    %33 = vector.extract_strided_slice %14 {offsets = [0, 384], sizes = [2, 128], strides = [1, 1]} : vector<2x512xf32> to vector<2x128xf32>
    %34 = arith.negf %33 : vector<2x128xf32>
    %35 = math.exp %34 : vector<2x128xf32>
    %cst_22 = arith.constant 1.000000e+00 : f32
    %36 = vector.broadcast %cst_22 : f32 to vector<2x128xf32>
    %37 = arith.addf %36, %35 : vector<2x128xf32>
    %38 = arith.divf %36, %37 : vector<2x128xf32>
    %39 = arith.mulf %30, %8 : vector<2x128xf32>
    %40 = arith.mulf %24, %32 : vector<2x128xf32>
    %41 = arith.addf %39, %40 : vector<2x128xf32>
    %42 = math.tanh %41 : vector<2x128xf32>
    %43 = arith.mulf %38, %42 : vector<2x128xf32>
    %44 = vector.extract_strided_slice %18 {offsets = [0, 0], sizes = [2, 128], strides = [1, 1]} : vector<2x512xf32> to vector<2x128xf32>
    %45 = arith.negf %44 : vector<2x128xf32>
    %46 = math.exp %45 : vector<2x128xf32>
    %cst_23 = arith.constant 1.000000e+00 : f32
    %47 = vector.broadcast %cst_23 : f32 to vector<2x128xf32>
    %48 = arith.addf %47, %46 : vector<2x128xf32>
    %49 = arith.divf %47, %48 : vector<2x128xf32>
    %50 = vector.extract_strided_slice %18 {offsets = [0, 128], sizes = [2, 128], strides = [1, 1]} : vector<2x512xf32> to vector<2x128xf32>
    %51 = arith.negf %50 : vector<2x128xf32>
    %52 = math.exp %51 : vector<2x128xf32>
    %cst_24 = arith.constant 1.000000e+00 : f32
    %53 = vector.broadcast %cst_24 : f32 to vector<2x128xf32>
    %54 = arith.addf %53, %52 : vector<2x128xf32>
    %55 = arith.divf %53, %54 : vector<2x128xf32>
    %56 = vector.extract_strided_slice %18 {offsets = [0, 256], sizes = [2, 128], strides = [1, 1]} : vector<2x512xf32> to vector<2x128xf32>
    %57 = math.tanh %56 : vector<2x128xf32>
    %58 = vector.extract_strided_slice %18 {offsets = [0, 384], sizes = [2, 128], strides = [1, 1]} : vector<2x512xf32> to vector<2x128xf32>
    %59 = arith.negf %58 : vector<2x128xf32>
    %60 = math.exp %59 : vector<2x128xf32>
    %cst_25 = arith.constant 1.000000e+00 : f32
    %61 = vector.broadcast %cst_25 : f32 to vector<2x128xf32>
    %62 = arith.addf %61, %60 : vector<2x128xf32>
    %63 = arith.divf %61, %62 : vector<2x128xf32>
    %64 = arith.mulf %55, %10 : vector<2x128xf32>
    %65 = arith.mulf %49, %57 : vector<2x128xf32>
    %66 = arith.addf %64, %65 : vector<2x128xf32>
    %67 = math.tanh %66 : vector<2x128xf32>
    %68 = arith.mulf %63, %67 : vector<2x128xf32>
    %c0_26 = arith.constant 0 : index
    %c0_27 = arith.constant 0 : index
    %c0_28 = arith.constant 0 : index
    %69 = vector.load %arg5[%c0_26, %c0_27, %c0_28] : memref<8x2x128xf32, #tpu.memory_space<vmem>>, vector<1x2x128xf32>
    %70 = vector.shape_cast %69 : vector<1x2x128xf32> to vector<2x128xf32>
    %71 = vector.shape_cast %43 : vector<2x128xf32> to vector<1x2x128xf32>
    tpu.vector_store %arg5[%c0_26, %c0_27, %c0_28], %71 {strides = array<i32>} : memref<8x2x128xf32, #tpu.memory_space<vmem>>, vector<1x2x128xf32>,
    %c0_29 = arith.constant 0 : index
    %c0_30 = arith.constant 0 : index
    %c0_31 = arith.constant 0 : index
    %72 = vector.load %arg6[%c0_29, %c0_30, %c0_31] : memref<8x2x128xf32, #tpu.memory_space<vmem>>, vector<1x2x128xf32>
    %73 = vector.shape_cast %72 : vector<1x2x128xf32> to vector<2x128xf32>
    %74 = vector.shape_cast %68 : vector<2x128xf32> to vector<1x2x128xf32>
    tpu.vector_store %arg6[%c0_29, %c0_30, %c0_31], %74 {strides = array<i32>} : memref<8x2x128xf32, #tpu.memory_space<vmem>>, vector<1x2x128xf32>,
    %c1_32 = arith.constant 1 : index
    %c0_33 = arith.constant 0 : index
    %c0_34 = arith.constant 0 : index
    %75 = vector.load %arg2[%c1_32, %c0_33, %c0_34] : memref<8x2x512xf32, #tpu.memory_space<vmem>>, vector<1x2x512xf32>
    %76 = vector.shape_cast %75 : vector<1x2x512xf32> to vector<2x512xf32>
    %cst_35 = arith.constant dense<0.000000e+00> : vector<2x512xf32>
    %77 = tpu.matmul %43, %4, %cst_35 {dimension_numbers = #tpu.dot_dimension_numbers<[1], [0], [0], [1], [0, 0, 1, 1], [], []>} : vector<2x128xf32>, vector<128x512xf32>, vector<2x512xf32> -> vector<2x512xf32>
    %78 = arith.addf %76, %77 : vector<2x512xf32>
    %c1_36 = arith.constant 1 : index
    %c0_37 = arith.constant 0 : index
    %c0_38 = arith.constant 0 : index
    %79 = vector.load %arg3[%c1_36, %c0_37, %c0_38] : memref<8x2x512xf32, #tpu.memory_space<vmem>>, vector<1x2x512xf32>
    %80 = vector.shape_cast %79 : vector<1x2x512xf32> to vector<2x512xf32>
    %cst_39 = arith.constant dense<0.000000e+00> : vector<2x512xf32>
    %81 = tpu.matmul %68, %6, %cst_39 {dimension_numbers = #tpu.dot_dimension_numbers<[1], [0], [0], [1], [0, 0, 1, 1], [], []>} : vector<2x128xf32>, vector<128x512xf32>, vector<2x512xf32> -> vector<2x512xf32>
    %82 = arith.addf %80, %81 : vector<2x512xf32>
    %83 = vector.extract_strided_slice %78 {offsets = [0, 0], sizes = [2, 128], strides = [1, 1]} : vector<2x512xf32> to vector<2x128xf32>
    %84 = arith.negf %83 : vector<2x128xf32>
    %85 = math.exp %84 : vector<2x128xf32>
    %cst_40 = arith.constant 1.000000e+00 : f32
    %86 = vector.broadcast %cst_40 : f32 to vector<2x128xf32>
    %87 = arith.addf %86, %85 : vector<2x128xf32>
    %88 = arith.divf %86, %87 : vector<2x128xf32>
    %89 = vector.extract_strided_slice %78 {offsets = [0, 128], sizes = [2, 128], strides = [1, 1]} : vector<2x512xf32> to vector<2x128xf32>
    %90 = arith.negf %89 : vector<2x128xf32>
    %91 = math.exp %90 : vector<2x128xf32>
    %cst_41 = arith.constant 1.000000e+00 : f32
    %92 = vector.broadcast %cst_41 : f32 to vector<2x128xf32>
    %93 = arith.addf %92, %91 : vector<2x128xf32>
    %94 = arith.divf %92, %93 : vector<2x128xf32>
    %95 = vector.extract_strided_slice %78 {offsets = [0, 256], sizes = [2, 128], strides = [1, 1]} : vector<2x512xf32> to vector<2x128xf32>
    %96 = math.tanh %95 : vector<2x128xf32>
    %97 = vector.extract_strided_slice %78 {offsets = [0, 384], sizes = [2, 128], strides = [1, 1]} : vector<2x512xf32> to vector<2x128xf32>
    %98 = arith.negf %97 : vector<2x128xf32>
    %99 = math.exp %98 : vector<2x128xf32>
    %cst_42 = arith.constant 1.000000e+00 : f32
    %100 = vector.broadcast %cst_42 : f32 to vector<2x128xf32>
    %101 = arith.addf %100, %99 : vector<2x128xf32>
    %102 = arith.divf %100, %101 : vector<2x128xf32>
    %103 = arith.mulf %94, %41 : vector<2x128xf32>
    %104 = arith.mulf %88, %96 : vector<2x128xf32>
    %105 = arith.addf %103, %104 : vector<2x128xf32>
    %106 = math.tanh %105 : vector<2x128xf32>
    %107 = arith.mulf %102, %106 : vector<2x128xf32>
    %108 = vector.extract_strided_slice %82 {offsets = [0, 0], sizes = [2, 128], strides = [1, 1]} : vector<2x512xf32> to vector<2x128xf32>
    %109 = arith.negf %108 : vector<2x128xf32>
    %110 = math.exp %109 : vector<2x128xf32>
    %cst_43 = arith.constant 1.000000e+00 : f32
    %111 = vector.broadcast %cst_43 : f32 to vector<2x128xf32>
    %112 = arith.addf %111, %110 : vector<2x128xf32>
    %113 = arith.divf %111, %112 : vector<2x128xf32>
    %114 = vector.extract_strided_slice %82 {offsets = [0, 128], sizes = [2, 128], strides = [1, 1]} : vector<2x512xf32> to vector<2x128xf32>
    %115 = arith.negf %114 : vector<2x128xf32>
    %116 = math.exp %115 : vector<2x128xf32>
    %cst_44 = arith.constant 1.000000e+00 : f32
    %117 = vector.broadcast %cst_44 : f32 to vector<2x128xf32>
    %118 = arith.addf %117, %116 : vector<2x128xf32>
    %119 = arith.divf %117, %118 : vector<2x128xf32>
    %120 = vector.extract_strided_slice %82 {offsets = [0, 256], sizes = [2, 128], strides = [1, 1]} : vector<2x512xf32> to vector<2x128xf32>
    %121 = math.tanh %120 : vector<2x128xf32>
    %122 = vector.extract_strided_slice %82 {offsets = [0, 384], sizes = [2, 128], strides = [1, 1]} : vector<2x512xf32> to vector<2x128xf32>
    %123 = arith.negf %122 : vector<2x128xf32>
    %124 = math.exp %123 : vector<2x128xf32>
    %cst_45 = arith.constant 1.000000e+00 : f32
    %125 = vector.broadcast %cst_45 : f32 to vector<2x128xf32>
    %126 = arith.addf %125, %124 : vector<2x128xf32>
    %127 = arith.divf %125, %126 : vector<2x128xf32>
    %128 = arith.mulf %119, %66 : vector<2x128xf32>
    %129 = arith.mulf %113, %121 : vector<2x128xf32>
    %130 = arith.addf %128, %129 : vector<2x128xf32>
    %131 = math.tanh %130 : vector<2x128xf32>
    %132 = arith.mulf %127, %131 : vector<2x128xf32>
    %c1_46 = arith.constant 1 : index
    %c0_47 = arith.constant 0 : index
    %c0_48 = arith.constant 0 : index
    %133 = vector.load %arg5[%c1_46, %c0_47, %c0_48] : memref<8x2x128xf32, #tpu.memory_space<vmem>>, vector<1x2x128xf32>
    %134 = vector.shape_cast %133 : vector<1x2x128xf32> to vector<2x128xf32>
    %135 = vector.shape_cast %107 : vector<2x128xf32> to vector<1x2x128xf32>
    tpu.vector_store %arg5[%c1_46, %c0_47, %c0_48], %135 {strides = array<i32>} : memref<8x2x128xf32, #tpu.memory_space<vmem>>, vector<1x2x128xf32>,
    %c1_49 = arith.constant 1 : index
    %c0_50 = arith.constant 0 : index
    %c0_51 = arith.constant 0 : index
    %136 = vector.load %arg6[%c1_49, %c0_50, %c0_51] : memref<8x2x128xf32, #tpu.memory_space<vmem>>, vector<1x2x128xf32>
    %137 = vector.shape_cast %136 : vector<1x2x128xf32> to vector<2x128xf32>
    %138 = vector.shape_cast %132 : vector<2x128xf32> to vector<1x2x128xf32>
    tpu.vector_store %arg6[%c1_49, %c0_50, %c0_51], %138 {strides = array<i32>} : memref<8x2x128xf32, #tpu.memory_space<vmem>>, vector<1x2x128xf32>,
    %c2 = arith.constant 2 : index
    %c0_52 = arith.constant 0 : index
    %c0_53 = arith.constant 0 : index
    %139 = vector.load %arg2[%c2, %c0_52, %c0_53] : memref<8x2x512xf32, #tpu.memory_space<vmem>>, vector<1x2x512xf32>
    %140 = vector.shape_cast %139 : vector<1x2x512xf32> to vector<2x512xf32>
    %cst_54 = arith.constant dense<0.000000e+00> : vector<2x512xf32>
    %141 = tpu.matmul %107, %4, %cst_54 {dimension_numbers = #tpu.dot_dimension_numbers<[1], [0], [0], [1], [0, 0, 1, 1], [], []>} : vector<2x128xf32>, vector<128x512xf32>, vector<2x512xf32> -> vector<2x512xf32>
    %142 = arith.addf %140, %141 : vector<2x512xf32>
    %c2_55 = arith.constant 2 : index
    %c0_56 = arith.constant 0 : index
    %c0_57 = arith.constant 0 : index
    %143 = vector.load %arg3[%c2_55, %c0_56, %c0_57] : memref<8x2x512xf32, #tpu.memory_space<vmem>>, vector<1x2x512xf32>
    %144 = vector.shape_cast %143 : vector<1x2x512xf32> to vector<2x512xf32>
    %cst_58 = arith.constant dense<0.000000e+00> : vector<2x512xf32>
    %145 = tpu.matmul %132, %6, %cst_58 {dimension_numbers = #tpu.dot_dimension_numbers<[1], [0], [0], [1], [0, 0, 1, 1], [], []>} : vector<2x128xf32>, vector<128x512xf32>, vector<2x512xf32> -> vector<2x512xf32>
    %146 = arith.addf %144, %145 : vector<2x512xf32>
    %147 = vector.extract_strided_slice %142 {offsets = [0, 0], sizes = [2, 128], strides = [1, 1]} : vector<2x512xf32> to vector<2x128xf32>
    %148 = arith.negf %147 : vector<2x128xf32>
    %149 = math.exp %148 : vector<2x128xf32>
    %cst_59 = arith.constant 1.000000e+00 : f32
    %150 = vector.broadcast %cst_59 : f32 to vector<2x128xf32>
    %151 = arith.addf %150, %149 : vector<2x128xf32>
    %152 = arith.divf %150, %151 : vector<2x128xf32>
    %153 = vector.extract_strided_slice %142 {offsets = [0, 128], sizes = [2, 128], strides = [1, 1]} : vector<2x512xf32> to vector<2x128xf32>
    %154 = arith.negf %153 : vector<2x128xf32>
    %155 = math.exp %154 : vector<2x128xf32>
    %cst_60 = arith.constant 1.000000e+00 : f32
    %156 = vector.broadcast %cst_60 : f32 to vector<2x128xf32>
    %157 = arith.addf %156, %155 : vector<2x128xf32>
    %158 = arith.divf %156, %157 : vector<2x128xf32>
    %159 = vector.extract_strided_slice %142 {offsets = [0, 256], sizes = [2, 128], strides = [1, 1]} : vector<2x512xf32> to vector<2x128xf32>
    %160 = math.tanh %159 : vector<2x128xf32>
    %161 = vector.extract_strided_slice %142 {offsets = [0, 384], sizes = [2, 128], strides = [1, 1]} : vector<2x512xf32> to vector<2x128xf32>
    %162 = arith.negf %161 : vector<2x128xf32>
    %163 = math.exp %162 : vector<2x128xf32>
    %cst_61 = arith.constant 1.000000e+00 : f32
    %164 = vector.broadcast %cst_61 : f32 to vector<2x128xf32>
    %165 = arith.addf %164, %163 : vector<2x128xf32>
    %166 = arith.divf %164, %165 : vector<2x128xf32>
    %167 = arith.mulf %158, %105 : vector<2x128xf32>
    %168 = arith.mulf %152, %160 : vector<2x128xf32>
    %169 = arith.addf %167, %168 : vector<2x128xf32>
    %170 = math.tanh %169 : vector<2x128xf32>
    %171 = arith.mulf %166, %170 : vector<2x128xf32>
    %172 = vector.extract_strided_slice %146 {offsets = [0, 0], sizes = [2, 128], strides = [1, 1]} : vector<2x512xf32> to vector<2x128xf32>
    %173 = arith.negf %172 : vector<2x128xf32>
    %174 = math.exp %173 : vector<2x128xf32>
    %cst_62 = arith.constant 1.000000e+00 : f32
    %175 = vector.broadcast %cst_62 : f32 to vector<2x128xf32>
    %176 = arith.addf %175, %174 : vector<2x128xf32>
    %177 = arith.divf %175, %176 : vector<2x128xf32>
    %178 = vector.extract_strided_slice %146 {offsets = [0, 128], sizes = [2, 128], strides = [1, 1]} : vector<2x512xf32> to vector<2x128xf32>
    %179 = arith.negf %178 : vector<2x128xf32>
    %180 = math.exp %179 : vector<2x128xf32>
    %cst_63 = arith.constant 1.000000e+00 : f32
    %181 = vector.broadcast %cst_63 : f32 to vector<2x128xf32>
    %182 = arith.addf %181, %180 : vector<2x128xf32>
    %183 = arith.divf %181, %182 : vector<2x128xf32>
    %184 = vector.extract_strided_slice %146 {offsets = [0, 256], sizes = [2, 128], strides = [1, 1]} : vector<2x512xf32> to vector<2x128xf32>
    %185 = math.tanh %184 : vector<2x128xf32>
    %186 = vector.extract_strided_slice %146 {offsets = [0, 384], sizes = [2, 128], strides = [1, 1]} : vector<2x512xf32> to vector<2x128xf32>
    %187 = arith.negf %186 : vector<2x128xf32>
    %188 = math.exp %187 : vector<2x128xf32>
    %cst_64 = arith.constant 1.000000e+00 : f32
    %189 = vector.broadcast %cst_64 : f32 to vector<2x128xf32>
    %190 = arith.addf %189, %188 : vector<2x128xf32>
    %191 = arith.divf %189, %190 : vector<2x128xf32>
    %192 = arith.mulf %183, %130 : vector<2x128xf32>
    %193 = arith.mulf %177, %185 : vector<2x128xf32>
    %194 = arith.addf %192, %193 : vector<2x128xf32>
    %195 = math.tanh %194 : vector<2x128xf32>
    %196 = arith.mulf %191, %195 : vector<2x128xf32>
    %c2_65 = arith.constant 2 : index
    %c0_66 = arith.constant 0 : index
    %c0_67 = arith.constant 0 : index
    %197 = vector.load %arg5[%c2_65, %c0_66, %c0_67] : memref<8x2x128xf32, #tpu.memory_space<vmem>>, vector<1x2x128xf32>
    %198 = vector.shape_cast %197 : vector<1x2x128xf32> to vector<2x128xf32>
    %199 = vector.shape_cast %171 : vector<2x128xf32> to vector<1x2x128xf32>
    tpu.vector_store %arg5[%c2_65, %c0_66, %c0_67], %199 {strides = array<i32>} : memref<8x2x128xf32, #tpu.memory_space<vmem>>, vector<1x2x128xf32>,
    %c2_68 = arith.constant 2 : index
    %c0_69 = arith.constant 0 : index
    %c0_70 = arith.constant 0 : index
    %200 = vector.load %arg6[%c2_68, %c0_69, %c0_70] : memref<8x2x128xf32, #tpu.memory_space<vmem>>, vector<1x2x128xf32>
    %201 = vector.shape_cast %200 : vector<1x2x128xf32> to vector<2x128xf32>
    %202 = vector.shape_cast %196 : vector<2x128xf32> to vector<1x2x128xf32>
    tpu.vector_store %arg6[%c2_68, %c0_69, %c0_70], %202 {strides = array<i32>} : memref<8x2x128xf32, #tpu.memory_space<vmem>>, vector<1x2x128xf32>,
    %c3 = arith.constant 3 : index
    %c0_71 = arith.constant 0 : index
    %c0_72 = arith.constant 0 : index
    %203 = vector.load %arg2[%c3, %c0_71, %c0_72] : memref<8x2x512xf32, #tpu.memory_space<vmem>>, vector<1x2x512xf32>
    %204 = vector.shape_cast %203 : vector<1x2x512xf32> to vector<2x512xf32>
    %cst_73 = arith.constant dense<0.000000e+00> : vector<2x512xf32>
    %205 = tpu.matmul %171, %4, %cst_73 {dimension_numbers = #tpu.dot_dimension_numbers<[1], [0], [0], [1], [0, 0, 1, 1], [], []>} : vector<2x128xf32>, vector<128x512xf32>, vector<2x512xf32> -> vector<2x512xf32>
    %206 = arith.addf %204, %205 : vector<2x512xf32>
    %c3_74 = arith.constant 3 : index
    %c0_75 = arith.constant 0 : index
    %c0_76 = arith.constant 0 : index
    %207 = vector.load %arg3[%c3_74, %c0_75, %c0_76] : memref<8x2x512xf32, #tpu.memory_space<vmem>>, vector<1x2x512xf32>
    %208 = vector.shape_cast %207 : vector<1x2x512xf32> to vector<2x512xf32>
    %cst_77 = arith.constant dense<0.000000e+00> : vector<2x512xf32>
    %209 = tpu.matmul %196, %6, %cst_77 {dimension_numbers = #tpu.dot_dimension_numbers<[1], [0], [0], [1], [0, 0, 1, 1], [], []>} : vector<2x128xf32>, vector<128x512xf32>, vector<2x512xf32> -> vector<2x512xf32>
    %210 = arith.addf %208, %209 : vector<2x512xf32>
    %211 = vector.extract_strided_slice %206 {offsets = [0, 0], sizes = [2, 128], strides = [1, 1]} : vector<2x512xf32> to vector<2x128xf32>
    %212 = arith.negf %211 : vector<2x128xf32>
    %213 = math.exp %212 : vector<2x128xf32>
    %cst_78 = arith.constant 1.000000e+00 : f32
    %214 = vector.broadcast %cst_78 : f32 to vector<2x128xf32>
    %215 = arith.addf %214, %213 : vector<2x128xf32>
    %216 = arith.divf %214, %215 : vector<2x128xf32>
    %217 = vector.extract_strided_slice %206 {offsets = [0, 128], sizes = [2, 128], strides = [1, 1]} : vector<2x512xf32> to vector<2x128xf32>
    %218 = arith.negf %217 : vector<2x128xf32>
    %219 = math.exp %218 : vector<2x128xf32>
    %cst_79 = arith.constant 1.000000e+00 : f32
    %220 = vector.broadcast %cst_79 : f32 to vector<2x128xf32>
    %221 = arith.addf %220, %219 : vector<2x128xf32>
    %222 = arith.divf %220, %221 : vector<2x128xf32>
    %223 = vector.extract_strided_slice %206 {offsets = [0, 256], sizes = [2, 128], strides = [1, 1]} : vector<2x512xf32> to vector<2x128xf32>
    %224 = math.tanh %223 : vector<2x128xf32>
    %225 = vector.extract_strided_slice %206 {offsets = [0, 384], sizes = [2, 128], strides = [1, 1]} : vector<2x512xf32> to vector<2x128xf32>
    %226 = arith.negf %225 : vector<2x128xf32>
    %227 = math.exp %226 : vector<2x128xf32>
    %cst_80 = arith.constant 1.000000e+00 : f32
    %228 = vector.broadcast %cst_80 : f32 to vector<2x128xf32>
    %229 = arith.addf %228, %227 : vector<2x128xf32>
    %230 = arith.divf %228, %229 : vector<2x128xf32>
    %231 = arith.mulf %222, %169 : vector<2x128xf32>
    %232 = arith.mulf %216, %224 : vector<2x128xf32>
    %233 = arith.addf %231, %232 : vector<2x128xf32>
    %234 = math.tanh %233 : vector<2x128xf32>
    %235 = arith.mulf %230, %234 : vector<2x128xf32>
    %236 = vector.extract_strided_slice %210 {offsets = [0, 0], sizes = [2, 128], strides = [1, 1]} : vector<2x512xf32> to vector<2x128xf32>
    %237 = arith.negf %236 : vector<2x128xf32>
    %238 = math.exp %237 : vector<2x128xf32>
    %cst_81 = arith.constant 1.000000e+00 : f32
    %239 = vector.broadcast %cst_81 : f32 to vector<2x128xf32>
    %240 = arith.addf %239, %238 : vector<2x128xf32>
    %241 = arith.divf %239, %240 : vector<2x128xf32>
    %242 = vector.extract_strided_slice %210 {offsets = [0, 128], sizes = [2, 128], strides = [1, 1]} : vector<2x512xf32> to vector<2x128xf32>
    %243 = arith.negf %242 : vector<2x128xf32>
    %244 = math.exp %243 : vector<2x128xf32>
    %cst_82 = arith.constant 1.000000e+00 : f32
    %245 = vector.broadcast %cst_82 : f32 to vector<2x128xf32>
    %246 = arith.addf %245, %244 : vector<2x128xf32>
    %247 = arith.divf %245, %246 : vector<2x128xf32>
    %248 = vector.extract_strided_slice %210 {offsets = [0, 256], sizes = [2, 128], strides = [1, 1]} : vector<2x512xf32> to vector<2x128xf32>
    %249 = math.tanh %248 : vector<2x128xf32>
    %250 = vector.extract_strided_slice %210 {offsets = [0, 384], sizes = [2, 128], strides = [1, 1]} : vector<2x512xf32> to vector<2x128xf32>
    %251 = arith.negf %250 : vector<2x128xf32>
    %252 = math.exp %251 : vector<2x128xf32>
    %cst_83 = arith.constant 1.000000e+00 : f32
    %253 = vector.broadcast %cst_83 : f32 to vector<2x128xf32>
    %254 = arith.addf %253, %252 : vector<2x128xf32>
    %255 = arith.divf %253, %254 : vector<2x128xf32>
    %256 = arith.mulf %247, %194 : vector<2x128xf32>
    %257 = arith.mulf %241, %249 : vector<2x128xf32>
    %258 = arith.addf %256, %257 : vector<2x128xf32>
    %259 = math.tanh %258 : vector<2x128xf32>
    %260 = arith.mulf %255, %259 : vector<2x128xf32>
    %c3_84 = arith.constant 3 : index
    %c0_85 = arith.constant 0 : index
    %c0_86 = arith.constant 0 : index
    %261 = vector.load %arg5[%c3_84, %c0_85, %c0_86] : memref<8x2x128xf32, #tpu.memory_space<vmem>>, vector<1x2x128xf32>
    %262 = vector.shape_cast %261 : vector<1x2x128xf32> to vector<2x128xf32>
    %263 = vector.shape_cast %235 : vector<2x128xf32> to vector<1x2x128xf32>
    tpu.vector_store %arg5[%c3_84, %c0_85, %c0_86], %263 {strides = array<i32>} : memref<8x2x128xf32, #tpu.memory_space<vmem>>, vector<1x2x128xf32>,
    %c3_87 = arith.constant 3 : index
    %c0_88 = arith.constant 0 : index
    %c0_89 = arith.constant 0 : index
    %264 = vector.load %arg6[%c3_87, %c0_88, %c0_89] : memref<8x2x128xf32, #tpu.memory_space<vmem>>, vector<1x2x128xf32>
    %265 = vector.shape_cast %264 : vector<1x2x128xf32> to vector<2x128xf32>
    %266 = vector.shape_cast %260 : vector<2x128xf32> to vector<1x2x128xf32>
    tpu.vector_store %arg6[%c3_87, %c0_88, %c0_89], %266 {strides = array<i32>} : memref<8x2x128xf32, #tpu.memory_space<vmem>>, vector<1x2x128xf32>,
    %c4 = arith.constant 4 : index
    %c0_90 = arith.constant 0 : index
    %c0_91 = arith.constant 0 : index
    %267 = vector.load %arg2[%c4, %c0_90, %c0_91] : memref<8x2x512xf32, #tpu.memory_space<vmem>>, vector<1x2x512xf32>
    %268 = vector.shape_cast %267 : vector<1x2x512xf32> to vector<2x512xf32>
    %cst_92 = arith.constant dense<0.000000e+00> : vector<2x512xf32>
    %269 = tpu.matmul %235, %4, %cst_92 {dimension_numbers = #tpu.dot_dimension_numbers<[1], [0], [0], [1], [0, 0, 1, 1], [], []>} : vector<2x128xf32>, vector<128x512xf32>, vector<2x512xf32> -> vector<2x512xf32>
    %270 = arith.addf %268, %269 : vector<2x512xf32>
    %c4_93 = arith.constant 4 : index
    %c0_94 = arith.constant 0 : index
    %c0_95 = arith.constant 0 : index
    %271 = vector.load %arg3[%c4_93, %c0_94, %c0_95] : memref<8x2x512xf32, #tpu.memory_space<vmem>>, vector<1x2x512xf32>
    %272 = vector.shape_cast %271 : vector<1x2x512xf32> to vector<2x512xf32>
    %cst_96 = arith.constant dense<0.000000e+00> : vector<2x512xf32>
    %273 = tpu.matmul %260, %6, %cst_96 {dimension_numbers = #tpu.dot_dimension_numbers<[1], [0], [0], [1], [0, 0, 1, 1], [], []>} : vector<2x128xf32>, vector<128x512xf32>, vector<2x512xf32> -> vector<2x512xf32>
    %274 = arith.addf %272, %273 : vector<2x512xf32>
    %275 = vector.extract_strided_slice %270 {offsets = [0, 0], sizes = [2, 128], strides = [1, 1]} : vector<2x512xf32> to vector<2x128xf32>
    %276 = arith.negf %275 : vector<2x128xf32>
    %277 = math.exp %276 : vector<2x128xf32>
    %cst_97 = arith.constant 1.000000e+00 : f32
    %278 = vector.broadcast %cst_97 : f32 to vector<2x128xf32>
    %279 = arith.addf %278, %277 : vector<2x128xf32>
    %280 = arith.divf %278, %279 : vector<2x128xf32>
    %281 = vector.extract_strided_slice %270 {offsets = [0, 128], sizes = [2, 128], strides = [1, 1]} : vector<2x512xf32> to vector<2x128xf32>
    %282 = arith.negf %281 : vector<2x128xf32>
    %283 = math.exp %282 : vector<2x128xf32>
    %cst_98 = arith.constant 1.000000e+00 : f32
    %284 = vector.broadcast %cst_98 : f32 to vector<2x128xf32>
    %285 = arith.addf %284, %283 : vector<2x128xf32>
    %286 = arith.divf %284, %285 : vector<2x128xf32>
    %287 = vector.extract_strided_slice %270 {offsets = [0, 256], sizes = [2, 128], strides = [1, 1]} : vector<2x512xf32> to vector<2x128xf32>
    %288 = math.tanh %287 : vector<2x128xf32>
    %289 = vector.extract_strided_slice %270 {offsets = [0, 384], sizes = [2, 128], strides = [1, 1]} : vector<2x512xf32> to vector<2x128xf32>
    %290 = arith.negf %289 : vector<2x128xf32>
    %291 = math.exp %290 : vector<2x128xf32>
    %cst_99 = arith.constant 1.000000e+00 : f32
    %292 = vector.broadcast %cst_99 : f32 to vector<2x128xf32>
    %293 = arith.addf %292, %291 : vector<2x128xf32>
    %294 = arith.divf %292, %293 : vector<2x128xf32>
    %295 = arith.mulf %286, %233 : vector<2x128xf32>
    %296 = arith.mulf %280, %288 : vector<2x128xf32>
    %297 = arith.addf %295, %296 : vector<2x128xf32>
    %298 = math.tanh %297 : vector<2x128xf32>
    %299 = arith.mulf %294, %298 : vector<2x128xf32>
    %300 = vector.extract_strided_slice %274 {offsets = [0, 0], sizes = [2, 128], strides = [1, 1]} : vector<2x512xf32> to vector<2x128xf32>
    %301 = arith.negf %300 : vector<2x128xf32>
    %302 = math.exp %301 : vector<2x128xf32>
    %cst_100 = arith.constant 1.000000e+00 : f32
    %303 = vector.broadcast %cst_100 : f32 to vector<2x128xf32>
    %304 = arith.addf %303, %302 : vector<2x128xf32>
    %305 = arith.divf %303, %304 : vector<2x128xf32>
    %306 = vector.extract_strided_slice %274 {offsets = [0, 128], sizes = [2, 128], strides = [1, 1]} : vector<2x512xf32> to vector<2x128xf32>
    %307 = arith.negf %306 : vector<2x128xf32>
    %308 = math.exp %307 : vector<2x128xf32>
    %cst_101 = arith.constant 1.000000e+00 : f32
    %309 = vector.broadcast %cst_101 : f32 to vector<2x128xf32>
    %310 = arith.addf %309, %308 : vector<2x128xf32>
    %311 = arith.divf %309, %310 : vector<2x128xf32>
    %312 = vector.extract_strided_slice %274 {offsets = [0, 256], sizes = [2, 128], strides = [1, 1]} : vector<2x512xf32> to vector<2x128xf32>
    %313 = math.tanh %312 : vector<2x128xf32>
    %314 = vector.extract_strided_slice %274 {offsets = [0, 384], sizes = [2, 128], strides = [1, 1]} : vector<2x512xf32> to vector<2x128xf32>
    %315 = arith.negf %314 : vector<2x128xf32>
    %316 = math.exp %315 : vector<2x128xf32>
    %cst_102 = arith.constant 1.000000e+00 : f32
    %317 = vector.broadcast %cst_102 : f32 to vector<2x128xf32>
    %318 = arith.addf %317, %316 : vector<2x128xf32>
    %319 = arith.divf %317, %318 : vector<2x128xf32>
    %320 = arith.mulf %311, %258 : vector<2x128xf32>
    %321 = arith.mulf %305, %313 : vector<2x128xf32>
    %322 = arith.addf %320, %321 : vector<2x128xf32>
    %323 = math.tanh %322 : vector<2x128xf32>
    %324 = arith.mulf %319, %323 : vector<2x128xf32>
    %c4_103 = arith.constant 4 : index
    %c0_104 = arith.constant 0 : index
    %c0_105 = arith.constant 0 : index
    %325 = vector.load %arg5[%c4_103, %c0_104, %c0_105] : memref<8x2x128xf32, #tpu.memory_space<vmem>>, vector<1x2x128xf32>
    %326 = vector.shape_cast %325 : vector<1x2x128xf32> to vector<2x128xf32>
    %327 = vector.shape_cast %299 : vector<2x128xf32> to vector<1x2x128xf32>
    tpu.vector_store %arg5[%c4_103, %c0_104, %c0_105], %327 {strides = array<i32>} : memref<8x2x128xf32, #tpu.memory_space<vmem>>, vector<1x2x128xf32>,
    %c4_106 = arith.constant 4 : index
    %c0_107 = arith.constant 0 : index
    %c0_108 = arith.constant 0 : index
    %328 = vector.load %arg6[%c4_106, %c0_107, %c0_108] : memref<8x2x128xf32, #tpu.memory_space<vmem>>, vector<1x2x128xf32>
    %329 = vector.shape_cast %328 : vector<1x2x128xf32> to vector<2x128xf32>
    %330 = vector.shape_cast %324 : vector<2x128xf32> to vector<1x2x128xf32>
    tpu.vector_store %arg6[%c4_106, %c0_107, %c0_108], %330 {strides = array<i32>} : memref<8x2x128xf32, #tpu.memory_space<vmem>>, vector<1x2x128xf32>,
    %c5 = arith.constant 5 : index
    %c0_109 = arith.constant 0 : index
    %c0_110 = arith.constant 0 : index
    %331 = vector.load %arg2[%c5, %c0_109, %c0_110] : memref<8x2x512xf32, #tpu.memory_space<vmem>>, vector<1x2x512xf32>
    %332 = vector.shape_cast %331 : vector<1x2x512xf32> to vector<2x512xf32>
    %cst_111 = arith.constant dense<0.000000e+00> : vector<2x512xf32>
    %333 = tpu.matmul %299, %4, %cst_111 {dimension_numbers = #tpu.dot_dimension_numbers<[1], [0], [0], [1], [0, 0, 1, 1], [], []>} : vector<2x128xf32>, vector<128x512xf32>, vector<2x512xf32> -> vector<2x512xf32>
    %334 = arith.addf %332, %333 : vector<2x512xf32>
    %c5_112 = arith.constant 5 : index
    %c0_113 = arith.constant 0 : index
    %c0_114 = arith.constant 0 : index
    %335 = vector.load %arg3[%c5_112, %c0_113, %c0_114] : memref<8x2x512xf32, #tpu.memory_space<vmem>>, vector<1x2x512xf32>
    %336 = vector.shape_cast %335 : vector<1x2x512xf32> to vector<2x512xf32>
    %cst_115 = arith.constant dense<0.000000e+00> : vector<2x512xf32>
    %337 = tpu.matmul %324, %6, %cst_115 {dimension_numbers = #tpu.dot_dimension_numbers<[1], [0], [0], [1], [0, 0, 1, 1], [], []>} : vector<2x128xf32>, vector<128x512xf32>, vector<2x512xf32> -> vector<2x512xf32>
    %338 = arith.addf %336, %337 : vector<2x512xf32>
    %339 = vector.extract_strided_slice %334 {offsets = [0, 0], sizes = [2, 128], strides = [1, 1]} : vector<2x512xf32> to vector<2x128xf32>
    %340 = arith.negf %339 : vector<2x128xf32>
    %341 = math.exp %340 : vector<2x128xf32>
    %cst_116 = arith.constant 1.000000e+00 : f32
    %342 = vector.broadcast %cst_116 : f32 to vector<2x128xf32>
    %343 = arith.addf %342, %341 : vector<2x128xf32>
    %344 = arith.divf %342, %343 : vector<2x128xf32>
    %345 = vector.extract_strided_slice %334 {offsets = [0, 128], sizes = [2, 128], strides = [1, 1]} : vector<2x512xf32> to vector<2x128xf32>
    %346 = arith.negf %345 : vector<2x128xf32>
    %347 = math.exp %346 : vector<2x128xf32>
    %cst_117 = arith.constant 1.000000e+00 : f32
    %348 = vector.broadcast %cst_117 : f32 to vector<2x128xf32>
    %349 = arith.addf %348, %347 : vector<2x128xf32>
    %350 = arith.divf %348, %349 : vector<2x128xf32>
    %351 = vector.extract_strided_slice %334 {offsets = [0, 256], sizes = [2, 128], strides = [1, 1]} : vector<2x512xf32> to vector<2x128xf32>
    %352 = math.tanh %351 : vector<2x128xf32>
    %353 = vector.extract_strided_slice %334 {offsets = [0, 384], sizes = [2, 128], strides = [1, 1]} : vector<2x512xf32> to vector<2x128xf32>
    %354 = arith.negf %353 : vector<2x128xf32>
    %355 = math.exp %354 : vector<2x128xf32>
    %cst_118 = arith.constant 1.000000e+00 : f32
    %356 = vector.broadcast %cst_118 : f32 to vector<2x128xf32>
    %357 = arith.addf %356, %355 : vector<2x128xf32>
    %358 = arith.divf %356, %357 : vector<2x128xf32>
    %359 = arith.mulf %350, %297 : vector<2x128xf32>
    %360 = arith.mulf %344, %352 : vector<2x128xf32>
    %361 = arith.addf %359, %360 : vector<2x128xf32>
    %362 = math.tanh %361 : vector<2x128xf32>
    %363 = arith.mulf %358, %362 : vector<2x128xf32>
    %364 = vector.extract_strided_slice %338 {offsets = [0, 0], sizes = [2, 128], strides = [1, 1]} : vector<2x512xf32> to vector<2x128xf32>
    %365 = arith.negf %364 : vector<2x128xf32>
    %366 = math.exp %365 : vector<2x128xf32>
    %cst_119 = arith.constant 1.000000e+00 : f32
    %367 = vector.broadcast %cst_119 : f32 to vector<2x128xf32>
    %368 = arith.addf %367, %366 : vector<2x128xf32>
    %369 = arith.divf %367, %368 : vector<2x128xf32>
    %370 = vector.extract_strided_slice %338 {offsets = [0, 128], sizes = [2, 128], strides = [1, 1]} : vector<2x512xf32> to vector<2x128xf32>
    %371 = arith.negf %370 : vector<2x128xf32>
    %372 = math.exp %371 : vector<2x128xf32>
    %cst_120 = arith.constant 1.000000e+00 : f32
    %373 = vector.broadcast %cst_120 : f32 to vector<2x128xf32>
    %374 = arith.addf %373, %372 : vector<2x128xf32>
    %375 = arith.divf %373, %374 : vector<2x128xf32>
    %376 = vector.extract_strided_slice %338 {offsets = [0, 256], sizes = [2, 128], strides = [1, 1]} : vector<2x512xf32> to vector<2x128xf32>
    %377 = math.tanh %376 : vector<2x128xf32>
    %378 = vector.extract_strided_slice %338 {offsets = [0, 384], sizes = [2, 128], strides = [1, 1]} : vector<2x512xf32> to vector<2x128xf32>
    %379 = arith.negf %378 : vector<2x128xf32>
    %380 = math.exp %379 : vector<2x128xf32>
    %cst_121 = arith.constant 1.000000e+00 : f32
    %381 = vector.broadcast %cst_121 : f32 to vector<2x128xf32>
    %382 = arith.addf %381, %380 : vector<2x128xf32>
    %383 = arith.divf %381, %382 : vector<2x128xf32>
    %384 = arith.mulf %375, %322 : vector<2x128xf32>
    %385 = arith.mulf %369, %377 : vector<2x128xf32>
    %386 = arith.addf %384, %385 : vector<2x128xf32>
    %387 = math.tanh %386 : vector<2x128xf32>
    %388 = arith.mulf %383, %387 : vector<2x128xf32>
    %c5_122 = arith.constant 5 : index
    %c0_123 = arith.constant 0 : index
    %c0_124 = arith.constant 0 : index
    %389 = vector.load %arg5[%c5_122, %c0_123, %c0_124] : memref<8x2x128xf32, #tpu.memory_space<vmem>>, vector<1x2x128xf32>
    %390 = vector.shape_cast %389 : vector<1x2x128xf32> to vector<2x128xf32>
    %391 = vector.shape_cast %363 : vector<2x128xf32> to vector<1x2x128xf32>
    tpu.vector_store %arg5[%c5_122, %c0_123, %c0_124], %391 {strides = array<i32>} : memref<8x2x128xf32, #tpu.memory_space<vmem>>, vector<1x2x128xf32>,
    %c5_125 = arith.constant 5 : index
    %c0_126 = arith.constant 0 : index
    %c0_127 = arith.constant 0 : index
    %392 = vector.load %arg6[%c5_125, %c0_126, %c0_127] : memref<8x2x128xf32, #tpu.memory_space<vmem>>, vector<1x2x128xf32>
    %393 = vector.shape_cast %392 : vector<1x2x128xf32> to vector<2x128xf32>
    %394 = vector.shape_cast %388 : vector<2x128xf32> to vector<1x2x128xf32>
    tpu.vector_store %arg6[%c5_125, %c0_126, %c0_127], %394 {strides = array<i32>} : memref<8x2x128xf32, #tpu.memory_space<vmem>>, vector<1x2x128xf32>,
    %c6 = arith.constant 6 : index
    %c0_128 = arith.constant 0 : index
    %c0_129 = arith.constant 0 : index
    %395 = vector.load %arg2[%c6, %c0_128, %c0_129] : memref<8x2x512xf32, #tpu.memory_space<vmem>>, vector<1x2x512xf32>
    %396 = vector.shape_cast %395 : vector<1x2x512xf32> to vector<2x512xf32>
    %cst_130 = arith.constant dense<0.000000e+00> : vector<2x512xf32>
    %397 = tpu.matmul %363, %4, %cst_130 {dimension_numbers = #tpu.dot_dimension_numbers<[1], [0], [0], [1], [0, 0, 1, 1], [], []>} : vector<2x128xf32>, vector<128x512xf32>, vector<2x512xf32> -> vector<2x512xf32>
    %398 = arith.addf %396, %397 : vector<2x512xf32>
    %c6_131 = arith.constant 6 : index
    %c0_132 = arith.constant 0 : index
    %c0_133 = arith.constant 0 : index
    %399 = vector.load %arg3[%c6_131, %c0_132, %c0_133] : memref<8x2x512xf32, #tpu.memory_space<vmem>>, vector<1x2x512xf32>
    %400 = vector.shape_cast %399 : vector<1x2x512xf32> to vector<2x512xf32>
    %cst_134 = arith.constant dense<0.000000e+00> : vector<2x512xf32>
    %401 = tpu.matmul %388, %6, %cst_134 {dimension_numbers = #tpu.dot_dimension_numbers<[1], [0], [0], [1], [0, 0, 1, 1], [], []>} : vector<2x128xf32>, vector<128x512xf32>, vector<2x512xf32> -> vector<2x512xf32>
    %402 = arith.addf %400, %401 : vector<2x512xf32>
    %403 = vector.extract_strided_slice %398 {offsets = [0, 0], sizes = [2, 128], strides = [1, 1]} : vector<2x512xf32> to vector<2x128xf32>
    %404 = arith.negf %403 : vector<2x128xf32>
    %405 = math.exp %404 : vector<2x128xf32>
    %cst_135 = arith.constant 1.000000e+00 : f32
    %406 = vector.broadcast %cst_135 : f32 to vector<2x128xf32>
    %407 = arith.addf %406, %405 : vector<2x128xf32>
    %408 = arith.divf %406, %407 : vector<2x128xf32>
    %409 = vector.extract_strided_slice %398 {offsets = [0, 128], sizes = [2, 128], strides = [1, 1]} : vector<2x512xf32> to vector<2x128xf32>
    %410 = arith.negf %409 : vector<2x128xf32>
    %411 = math.exp %410 : vector<2x128xf32>
    %cst_136 = arith.constant 1.000000e+00 : f32
    %412 = vector.broadcast %cst_136 : f32 to vector<2x128xf32>
    %413 = arith.addf %412, %411 : vector<2x128xf32>
    %414 = arith.divf %412, %413 : vector<2x128xf32>
    %415 = vector.extract_strided_slice %398 {offsets = [0, 256], sizes = [2, 128], strides = [1, 1]} : vector<2x512xf32> to vector<2x128xf32>
    %416 = math.tanh %415 : vector<2x128xf32>
    %417 = vector.extract_strided_slice %398 {offsets = [0, 384], sizes = [2, 128], strides = [1, 1]} : vector<2x512xf32> to vector<2x128xf32>
    %418 = arith.negf %417 : vector<2x128xf32>
    %419 = math.exp %418 : vector<2x128xf32>
    %cst_137 = arith.constant 1.000000e+00 : f32
    %420 = vector.broadcast %cst_137 : f32 to vector<2x128xf32>
    %421 = arith.addf %420, %419 : vector<2x128xf32>
    %422 = arith.divf %420, %421 : vector<2x128xf32>
    %423 = arith.mulf %414, %361 : vector<2x128xf32>
    %424 = arith.mulf %408, %416 : vector<2x128xf32>
    %425 = arith.addf %423, %424 : vector<2x128xf32>
    %426 = math.tanh %425 : vector<2x128xf32>
    %427 = arith.mulf %422, %426 : vector<2x128xf32>
    %428 = vector.extract_strided_slice %402 {offsets = [0, 0], sizes = [2, 128], strides = [1, 1]} : vector<2x512xf32> to vector<2x128xf32>
    %429 = arith.negf %428 : vector<2x128xf32>
    %430 = math.exp %429 : vector<2x128xf32>
    %cst_138 = arith.constant 1.000000e+00 : f32
    %431 = vector.broadcast %cst_138 : f32 to vector<2x128xf32>
    %432 = arith.addf %431, %430 : vector<2x128xf32>
    %433 = arith.divf %431, %432 : vector<2x128xf32>
    %434 = vector.extract_strided_slice %402 {offsets = [0, 128], sizes = [2, 128], strides = [1, 1]} : vector<2x512xf32> to vector<2x128xf32>
    %435 = arith.negf %434 : vector<2x128xf32>
    %436 = math.exp %435 : vector<2x128xf32>
    %cst_139 = arith.constant 1.000000e+00 : f32
    %437 = vector.broadcast %cst_139 : f32 to vector<2x128xf32>
    %438 = arith.addf %437, %436 : vector<2x128xf32>
    %439 = arith.divf %437, %438 : vector<2x128xf32>
    %440 = vector.extract_strided_slice %402 {offsets = [0, 256], sizes = [2, 128], strides = [1, 1]} : vector<2x512xf32> to vector<2x128xf32>
    %441 = math.tanh %440 : vector<2x128xf32>
    %442 = vector.extract_strided_slice %402 {offsets = [0, 384], sizes = [2, 128], strides = [1, 1]} : vector<2x512xf32> to vector<2x128xf32>
    %443 = arith.negf %442 : vector<2x128xf32>
    %444 = math.exp %443 : vector<2x128xf32>
    %cst_140 = arith.constant 1.000000e+00 : f32
    %445 = vector.broadcast %cst_140 : f32 to vector<2x128xf32>
    %446 = arith.addf %445, %444 : vector<2x128xf32>
    %447 = arith.divf %445, %446 : vector<2x128xf32>
    %448 = arith.mulf %439, %386 : vector<2x128xf32>
    %449 = arith.mulf %433, %441 : vector<2x128xf32>
    %450 = arith.addf %448, %449 : vector<2x128xf32>
    %451 = math.tanh %450 : vector<2x128xf32>
    %452 = arith.mulf %447, %451 : vector<2x128xf32>
    %c6_141 = arith.constant 6 : index
    %c0_142 = arith.constant 0 : index
    %c0_143 = arith.constant 0 : index
    %453 = vector.load %arg5[%c6_141, %c0_142, %c0_143] : memref<8x2x128xf32, #tpu.memory_space<vmem>>, vector<1x2x128xf32>
    %454 = vector.shape_cast %453 : vector<1x2x128xf32> to vector<2x128xf32>
    %455 = vector.shape_cast %427 : vector<2x128xf32> to vector<1x2x128xf32>
    tpu.vector_store %arg5[%c6_141, %c0_142, %c0_143], %455 {strides = array<i32>} : memref<8x2x128xf32, #tpu.memory_space<vmem>>, vector<1x2x128xf32>,
    %c6_144 = arith.constant 6 : index
    %c0_145 = arith.constant 0 : index
    %c0_146 = arith.constant 0 : index
    %456 = vector.load %arg6[%c6_144, %c0_145, %c0_146] : memref<8x2x128xf32, #tpu.memory_space<vmem>>, vector<1x2x128xf32>
    %457 = vector.shape_cast %456 : vector<1x2x128xf32> to vector<2x128xf32>
    %458 = vector.shape_cast %452 : vector<2x128xf32> to vector<1x2x128xf32>
    tpu.vector_store %arg6[%c6_144, %c0_145, %c0_146], %458 {strides = array<i32>} : memref<8x2x128xf32, #tpu.memory_space<vmem>>, vector<1x2x128xf32>,
    %c7 = arith.constant 7 : index
    %c0_147 = arith.constant 0 : index
    %c0_148 = arith.constant 0 : index
    %459 = vector.load %arg2[%c7, %c0_147, %c0_148] : memref<8x2x512xf32, #tpu.memory_space<vmem>>, vector<1x2x512xf32>
    %460 = vector.shape_cast %459 : vector<1x2x512xf32> to vector<2x512xf32>
    %cst_149 = arith.constant dense<0.000000e+00> : vector<2x512xf32>
    %461 = tpu.matmul %427, %4, %cst_149 {dimension_numbers = #tpu.dot_dimension_numbers<[1], [0], [0], [1], [0, 0, 1, 1], [], []>} : vector<2x128xf32>, vector<128x512xf32>, vector<2x512xf32> -> vector<2x512xf32>
    %462 = arith.addf %460, %461 : vector<2x512xf32>
    %c7_150 = arith.constant 7 : index
    %c0_151 = arith.constant 0 : index
    %c0_152 = arith.constant 0 : index
    %463 = vector.load %arg3[%c7_150, %c0_151, %c0_152] : memref<8x2x512xf32, #tpu.memory_space<vmem>>, vector<1x2x512xf32>
    %464 = vector.shape_cast %463 : vector<1x2x512xf32> to vector<2x512xf32>
    %cst_153 = arith.constant dense<0.000000e+00> : vector<2x512xf32>
    %465 = tpu.matmul %452, %6, %cst_153 {dimension_numbers = #tpu.dot_dimension_numbers<[1], [0], [0], [1], [0, 0, 1, 1], [], []>} : vector<2x128xf32>, vector<128x512xf32>, vector<2x512xf32> -> vector<2x512xf32>
    %466 = arith.addf %464, %465 : vector<2x512xf32>
    %467 = vector.extract_strided_slice %462 {offsets = [0, 0], sizes = [2, 128], strides = [1, 1]} : vector<2x512xf32> to vector<2x128xf32>
    %468 = arith.negf %467 : vector<2x128xf32>
    %469 = math.exp %468 : vector<2x128xf32>
    %cst_154 = arith.constant 1.000000e+00 : f32
    %470 = vector.broadcast %cst_154 : f32 to vector<2x128xf32>
    %471 = arith.addf %470, %469 : vector<2x128xf32>
    %472 = arith.divf %470, %471 : vector<2x128xf32>
    %473 = vector.extract_strided_slice %462 {offsets = [0, 128], sizes = [2, 128], strides = [1, 1]} : vector<2x512xf32> to vector<2x128xf32>
    %474 = arith.negf %473 : vector<2x128xf32>
    %475 = math.exp %474 : vector<2x128xf32>
    %cst_155 = arith.constant 1.000000e+00 : f32
    %476 = vector.broadcast %cst_155 : f32 to vector<2x128xf32>
    %477 = arith.addf %476, %475 : vector<2x128xf32>
    %478 = arith.divf %476, %477 : vector<2x128xf32>
    %479 = vector.extract_strided_slice %462 {offsets = [0, 256], sizes = [2, 128], strides = [1, 1]} : vector<2x512xf32> to vector<2x128xf32>
    %480 = math.tanh %479 : vector<2x128xf32>
    %481 = vector.extract_strided_slice %462 {offsets = [0, 384], sizes = [2, 128], strides = [1, 1]} : vector<2x512xf32> to vector<2x128xf32>
    %482 = arith.negf %481 : vector<2x128xf32>
    %483 = math.exp %482 : vector<2x128xf32>
    %cst_156 = arith.constant 1.000000e+00 : f32
    %484 = vector.broadcast %cst_156 : f32 to vector<2x128xf32>
    %485 = arith.addf %484, %483 : vector<2x128xf32>
    %486 = arith.divf %484, %485 : vector<2x128xf32>
    %487 = arith.mulf %478, %425 : vector<2x128xf32>
    %488 = arith.mulf %472, %480 : vector<2x128xf32>
    %489 = arith.addf %487, %488 : vector<2x128xf32>
    %490 = math.tanh %489 : vector<2x128xf32>
    %491 = arith.mulf %486, %490 : vector<2x128xf32>
    %492 = vector.extract_strided_slice %466 {offsets = [0, 0], sizes = [2, 128], strides = [1, 1]} : vector<2x512xf32> to vector<2x128xf32>
    %493 = arith.negf %492 : vector<2x128xf32>
    %494 = math.exp %493 : vector<2x128xf32>
    %cst_157 = arith.constant 1.000000e+00 : f32
    %495 = vector.broadcast %cst_157 : f32 to vector<2x128xf32>
    %496 = arith.addf %495, %494 : vector<2x128xf32>
    %497 = arith.divf %495, %496 : vector<2x128xf32>
    %498 = vector.extract_strided_slice %466 {offsets = [0, 128], sizes = [2, 128], strides = [1, 1]} : vector<2x512xf32> to vector<2x128xf32>
    %499 = arith.negf %498 : vector<2x128xf32>
    %500 = math.exp %499 : vector<2x128xf32>
    %cst_158 = arith.constant 1.000000e+00 : f32
    %501 = vector.broadcast %cst_158 : f32 to vector<2x128xf32>
    %502 = arith.addf %501, %500 : vector<2x128xf32>
    %503 = arith.divf %501, %502 : vector<2x128xf32>
    %504 = vector.extract_strided_slice %466 {offsets = [0, 256], sizes = [2, 128], strides = [1, 1]} : vector<2x512xf32> to vector<2x128xf32>
    %505 = math.tanh %504 : vector<2x128xf32>
    %506 = vector.extract_strided_slice %466 {offsets = [0, 384], sizes = [2, 128], strides = [1, 1]} : vector<2x512xf32> to vector<2x128xf32>
    %507 = arith.negf %506 : vector<2x128xf32>
    %508 = math.exp %507 : vector<2x128xf32>
    %cst_159 = arith.constant 1.000000e+00 : f32
    %509 = vector.broadcast %cst_159 : f32 to vector<2x128xf32>
    %510 = arith.addf %509, %508 : vector<2x128xf32>
    %511 = arith.divf %509, %510 : vector<2x128xf32>
    %512 = arith.mulf %503, %450 : vector<2x128xf32>
    %513 = arith.mulf %497, %505 : vector<2x128xf32>
    %514 = arith.addf %512, %513 : vector<2x128xf32>
    %515 = math.tanh %514 : vector<2x128xf32>
    %516 = arith.mulf %511, %515 : vector<2x128xf32>
    %c7_160 = arith.constant 7 : index
    %c0_161 = arith.constant 0 : index
    %c0_162 = arith.constant 0 : index
    %517 = vector.load %arg5[%c7_160, %c0_161, %c0_162] : memref<8x2x128xf32, #tpu.memory_space<vmem>>, vector<1x2x128xf32>
    %518 = vector.shape_cast %517 : vector<1x2x128xf32> to vector<2x128xf32>
    %519 = vector.shape_cast %491 : vector<2x128xf32> to vector<1x2x128xf32>
    tpu.vector_store %arg5[%c7_160, %c0_161, %c0_162], %519 {strides = array<i32>} : memref<8x2x128xf32, #tpu.memory_space<vmem>>, vector<1x2x128xf32>,
    %c7_163 = arith.constant 7 : index
    %c0_164 = arith.constant 0 : index
    %c0_165 = arith.constant 0 : index
    %520 = vector.load %arg6[%c7_163, %c0_164, %c0_165] : memref<8x2x128xf32, #tpu.memory_space<vmem>>, vector<1x2x128xf32>
    %521 = vector.shape_cast %520 : vector<1x2x128xf32> to vector<2x128xf32>
    %522 = vector.shape_cast %516 : vector<2x128xf32> to vector<1x2x128xf32>
    tpu.vector_store %arg6[%c7_163, %c0_164, %c0_165], %522 {strides = array<i32>} : memref<8x2x128xf32, #tpu.memory_space<vmem>>, vector<1x2x128xf32>,
    %c0_166 = arith.constant 0 : index
    %c0_167 = arith.constant 0 : index
    %523 = vector.load %arg7[%c0_166, %c0_167] : memref<2x128xf32, #tpu.memory_space<vmem>>, vector<2x128xf32>
    tpu.vector_store %arg7[%c0_166, %c0_167], %491 {strides = array<i32>} : memref<2x128xf32, #tpu.memory_space<vmem>>, vector<2x128xf32>,
    %c0_168 = arith.constant 0 : index
    %c0_169 = arith.constant 0 : index
    %524 = vector.load %arg8[%c0_168, %c0_169] : memref<2x128xf32, #tpu.memory_space<vmem>>, vector<2x128xf32>
    tpu.vector_store %arg8[%c0_168, %c0_169], %489 {strides = array<i32>} : memref<2x128xf32, #tpu.memory_space<vmem>>, vector<2x128xf32>,
    %c0_170 = arith.constant 0 : index
    %c0_171 = arith.constant 0 : index
    %525 = vector.load %arg9[%c0_170, %c0_171] : memref<2x128xf32, #tpu.memory_space<vmem>>, vector<2x128xf32>
    tpu.vector_store %arg9[%c0_170, %c0_171], %516 {strides = array<i32>} : memref<2x128xf32, #tpu.memory_space<vmem>>, vector<2x128xf32>,
    %c0_172 = arith.constant 0 : index
    %c0_173 = arith.constant 0 : index
    %526 = vector.load %arg10[%c0_172, %c0_173] : memref<2x128xf32, #tpu.memory_space<vmem>>, vector<2x128xf32>
    tpu.vector_store %arg10[%c0_172, %c0_173], %514 {strides = array<i32>} : memref<2x128xf32, #tpu.memory_space<vmem>>, vector<2x128xf32>,
    return
  }
  func.func @transform_0(%arg0: i32, %arg1: i32) -> (i32, i32, i32) {
    %c0_i32 = arith.constant 0 : i32
    %c0_i32_0 = arith.constant 0 : i32
    return %arg1, %arg0, %c0_i32 : i32, i32, i32
  }
  func.func @transform_1(%arg0: i32, %arg1: i32) -> (i32, i32, i32) {
    %c0_i32 = arith.constant 0 : i32
    %c0_i32_0 = arith.constant 0 : i32
    return %arg1, %arg0, %c0_i32 : i32, i32, i32
  }
  func.func @transform_2(%arg0: i32, %arg1: i32) -> (i32, i32, i32) {
    %c0_i32 = arith.constant 0 : i32
    %c0_i32_0 = arith.constant 0 : i32
    %c0_i32_1 = arith.constant 0 : i32
    %c0_i32_2 = arith.constant 0 : i32
    return %c0_i32, %c0_i32_0, %c0_i32_1 : i32, i32, i32
  }
  func.func @transform_3(%arg0: i32, %arg1: i32) -> (i32, i32, i32) {
    %c0_i32 = arith.constant 0 : i32
    %c0_i32_0 = arith.constant 0 : i32
    return %arg1, %arg0, %c0_i32 : i32, i32, i32
  }
  func.func @transform_4(%arg0: i32, %arg1: i32) -> (i32, i32, i32) {
    %c0_i32 = arith.constant 0 : i32
    %c0_i32_0 = arith.constant 0 : i32
    return %arg1, %arg0, %c0_i32 : i32, i32, i32
  }
}

</mosaic_0001>

<bundles_post_ra>
// kernel: tpu_custom_call.1
= control target key start
LH: loop header
LB: loop body
LE: loop exit
PB: predicated region body
PF: predicated region fallthrough
CT: control target
= control target key end

     0   :  { %10 = vsyncpa [#allocation7], 0  ;;  %s5769_s0 = inlined_call_operand.hbm [shape: f32[8,2,512], index: 0, kind: input, shape index: {}]   ;;  %s5770_s1 = inlined_call_operand.hbm [shape: f32[8,2,512], index: 1, kind: input, shape index: {}]   ;;  %s5771_s2 = inlined_call_operand.hbm [shape: f32[2,128,512], index: 2, kind: input, shape index: {}]   ;;  %s5772_s3 = inlined_call_operand.hbm [shape: f32[8,2,128], index: 3, kind: output, shape index: {0}]   ;;  %s5773_s4 = inlined_call_operand.hbm [shape: f32[8,2,128], index: 4, kind: output, shape index: {1}]  }
   0x1   :  { %11 = vsyncpa [#allocation10], 0 }
   0x2   :  { %12 = vsyncpa [#allocation8], 0 }
   0x3   :  { %13 = vsyncpa [#allocation14], 0  ;;  %s4892_s15 = smov [#allocation9]   ;;  %s4893_s17 = smov [#allocation6]  }
   0x4   :  { %s31_s16 = sshll.u32 %s4892_s15, 4  ;;  %s19_s18 = sshll.u32 %s4893_s17, 4  ;;  %s32_s16 = int_to_ptr.vmem [resolvable:$true] %s31_s16  ;;  %s4929_s18 = int_to_ptr.vmem [resolvable:$true] %s19_s18 }
   0x5   :  { %s4774_s21 = scalar_lea.hbm %s5770_s1, 1024 }
   0x6   :  { %p4775_p0 = scmp.ne.s32.totalorder %s5770_s1, %s4774_s21  ;;  %p4778_p1 = scmp.lt.u32.totalorder %s4774_s21, %s5770_s1 }
   0x8   :  { %p4780_p2 = pnand %p4778_p1, %p4775_p0 }
   0xa   :  { %4783 = shalt.err (!%p4780_p2)
}
   0xb   :  { %s4784_s26 = scalar_lea.vmem %s32_s16, 1024  ;;  %p4789_p4 = scmp.lt.s32.totalorder %s32_s16, %s32_s16 }
   0xc   :  { %p4785_p3 = scmp.ne.s32.totalorder %s32_s16, %s4784_s26  ;;  %p4790_p5 = scmp.lt.s32.totalorder %s4784_s26, %s4784_s26 }
   0xe   :  { %p4791_p6 = por %p4790_p5, %p4789_p4 }
  0x10   :  { %p4792_p7 = pnand %p4791_p6, %p4785_p3 }
  0x12   :  { %4795 = shalt.err (!%p4792_p7)
}
  0x13   :  { %s4894_s27 = smov 128   ;;  %s4895_s28 = smov 8  }
  0x14   :  { %37 = dma.hbm_to_vmem [thread:$0]  %s5770_s1, 1024, %s32_s16, [#allocation10], %s4894_s27, %s4894_s27, %s4895_s28  }
  0x15   :  { %s4796_s7 = scalar_lea.hbm %s5769_s0, 1024 }
  0x16   :  { %p4797_p8 = scmp.ne.s32.totalorder %s5769_s0, %s4796_s7  ;;  %p4800_p9 = scmp.lt.u32.totalorder %s4796_s7, %s5769_s0 }
  0x18   :  { %p4802_p10 = pnand %p4800_p9, %p4797_p8 }
  0x1a   :  { %4805 = shalt.err (!%p4802_p10)
}
  0x1b   :  { %s4806_s12 = scalar_lea.vmem %s4929_s18, 1024  ;;  %p4811_p12 = scmp.lt.s32.totalorder %s4929_s18, %s4929_s18 }
  0x1c   :  { %p4807_p11 = scmp.ne.s32.totalorder %s4929_s18, %s4806_s12  ;;  %p4812_p13 = scmp.lt.s32.totalorder %s4806_s12, %s4806_s12 }
  0x1e   :  { %p4813_p0 = por %p4812_p13, %p4811_p12 }
  0x20   :  { %p4814_p1 = pnand %p4813_p0, %p4807_p11 }
  0x22   :  { %4817 = shalt.err (!%p4814_p1)
}
  0x23   :  { %25 = dma.hbm_to_vmem [thread:$0]  %s5769_s0, 1024, %s4929_s18, [#allocation7], %s4894_s27, %s4894_s27, %s4895_s28  }
  0x24   :  { %s4896_s14 = smov [#allocation11]   ;;  %s4818_s19 = scalar_lea.hbm %s5771_s2, 16384 }
  0x25   :  { %s43_s15 = sshll.u32 %s4896_s14, 4  ;;  %p4819_p2 = scmp.ne.s32.totalorder %s5771_s2, %s4818_s19  ;;  %s44_s15 = int_to_ptr.vmem [resolvable:$true] %s43_s15 }
  0x26   :  { %p4822_p3 = scmp.lt.u32.totalorder %s4818_s19, %s5771_s2 }
  0x28   :  { %p4824_p4 = pnand %p4822_p3, %p4819_p2 }
  0x2a   :  { %4827 = shalt.err (!%p4824_p4)
}
  0x2b   :  { %s4828_s24 = scalar_lea.vmem %s44_s15, 16384  ;;  %p4833_p6 = scmp.lt.s32.totalorder %s44_s15, %s44_s15 }
  0x2c   :  { %p4829_p5 = scmp.ne.s32.totalorder %s44_s15, %s4828_s24  ;;  %p4834_p7 = scmp.lt.s32.totalorder %s4828_s24, %s4828_s24 }
  0x2e   :  { %p4835_p8 = por %p4834_p7, %p4833_p6 }
  0x30   :  { %p4836_p9 = pnand %p4835_p8, %p4829_p5 }
  0x32   :  { %4839 = shalt.err (!%p4836_p9)
}
  0x33   :  { %s4897_s0 = smov 512   ;;  %s4898_s18 = smov 32  }
  0x34   :  { %49 = dma.hbm_to_vmem [thread:$0]  %s5771_s2, 16384, %s44_s15, [#allocation10], %s4897_s0, %s4897_s0, %s4898_s18  }
  0x35   :  { %4884 = dma.done.wait [#allocation7], 1024  }
  0x36   :  { %4885 = vsyncadd [#allocation7], 4294966272 }
  0x37   :  { %4886 = dma.done.wait [#allocation10], 17408  }
  0x38   :  { %4887 = vsyncadd [#allocation10], 4294949888  ;;  %v5774_v0 = vmov 0.0   ;;  %v68_v1 = vld [vmem:[#allocation11 + $0x8] sm:$0xff]  ;;  %v70_v3 = vld [vmem:[#allocation11 + $0x18] sm:$0xff]  ;;  %s4901_s2 = smov [#allocation12]  }
  0x39   :  { %265 = vmatprep.mubr.f32.mxu0 %v5774_v0  ;;  %63 = vst [vmem:[#allocation2] sm:$0x3] %v5774_v0  ;;  %64 = vst [vmem:[#allocation3] sm:$0x3] %v5774_v0  ;;  %336 = vmatprep.mubr.f32.mxu1 %v5774_v0  ;;  %v72_v2 = vld [vmem:[#allocation11 + $0x28] sm:$0xff]  ;;  %v74_v5 = vld [vmem:[#allocation11 + $0x38] sm:$0xff] }
  0x3a   :  { %65 = vst [vmem:[#allocation4] sm:$0x3] %v5774_v0  ;;  %66 = vst [vmem:[#allocation5] sm:$0x3] %v5774_v0  ;;  %v4979_v4 = vpack.c.bf16 %v72_v2, %v68_v1  ;;  %v67_v6 = vld [vmem:[#allocation11] sm:$0xff]  ;;  %v4981_v8 = vpack.c.bf16 %v74_v5, %v70_v3  ;;  %v69_v10 = vld [vmem:[#allocation11 + $0x10] sm:$0xff] }
  0x3b   :  { %v71_v7 = vld [vmem:[#allocation11 + $0x20] sm:$0xff]  ;;  %v73_v11 = vld [vmem:[#allocation11 + $0x30] sm:$0xff]  ;;  %v76_v12 = vld [vmem:[#allocation11 + $0x48] sm:$0xff]  ;;  %s3405_s27 = sshll.u32 %s4901_s2, 4  ;;  %s3406_s27 = int_to_ptr.vmem [resolvable:$true] %s3405_s27 }
  0x3c   :  { %v4983_v9 = vpack.c.bf16 %v71_v7, %v67_v6  ;;  %3483 = vmatprep.subr.bf16.mxu0 %v4979_v4  ;;  %v4986_v13 = vpack.c.bf16 %v73_v11, %v69_v10  ;;  %v80_v14 = vld [vmem:[#allocation11 + $0x68] sm:$0xff]  ;;  %v78_v15 = vld [vmem:[#allocation11 + $0x58] sm:$0xff]  ;;  %3515 = vmatprep.subr.bf16.mxu1 %v4981_v8  ;;  %v75_v19 = vld [vmem:[#allocation11 + $0x40] sm:$0xff]  ;;  %s4840_s28 = scalar_lea.vmem %s3406_s27, 256  ;;  %p4845_p11 = scmp.lt.s32.totalorder %s3406_s27, %s3406_s27 }
  0x3d   :  { %v82_v16 = vld [vmem:[#allocation11 + $0x78] sm:$0xff]  ;;  %v4990_v17 = vpack.c.bf16 %v80_v14, %v76_v12  ;;  %v79_v20 = vld [vmem:[#allocation11 + $0x60] sm:$0xff]  ;;  %v77_v21 = vld [vmem:[#allocation11 + $0x50] sm:$0xff]  ;;  %p4841_p10 = scmp.ne.s32.totalorder %s3406_s27, %s4840_s28  ;;  %p4846_p12 = scmp.lt.s32.totalorder %s4840_s28, %s4840_s28 }
  0x3e   :  { %3485 = vmatpush1.bf16.msra.mxu0 %v4983_v9  ;;  %v4992_v18 = vpack.c.bf16 %v82_v16, %v78_v15  ;;  %3517 = vmatpush1.bf16.msra.mxu1 %v4986_v13  ;;  %v4995_v22 = vpack.c.bf16 %v79_v20, %v75_v19  ;;  %v81_v23 = vld [vmem:[#allocation11 + $0x70] sm:$0xff]  ;;  %v84_v24 = vld [vmem:[#allocation11 + $0x88] sm:$0xff]  ;;  %v86_v28 = vld [vmem:[#allocation11 + $0x98] sm:$0xff] }
  0x3f   :  { %v88_v25 = vld [vmem:[#allocation11 + $0xa8] sm:$0xff]  ;;  %3487 = vmatprep.subr.bf16.mxu0 %v4990_v17  ;;  %v4999_v26 = vpack.c.bf16 %v81_v23, %v77_v21  ;;  %v90_v29 = vld [vmem:[#allocation11 + $0xb8] sm:$0xff]  ;;  %v83_v30 = vld [vmem:[#allocation11 + $0x80] sm:$0xff]  ;;  %p4847_p13 = por %p4846_p12, %p4845_p11 }
  0x40   :  { %3519 = vmatprep.subr.bf16.mxu1 %v4992_v18  ;;  %v5001_v27 = vpack.c.bf16 %v88_v25, %v84_v24  ;;  %v5003_v31 = vpack.c.bf16 %v90_v29, %v86_v28  ;;  %v87_v32 = vld [vmem:[#allocation11 + $0xa0] sm:$0xff]  ;;  %v85_v33 = vld [vmem:[#allocation11 + $0x90] sm:$0xff]  ;;  %v92_v36 = vld [vmem:[#allocation11 + $0xc8] sm:$0xff] }
  0x41   :  { %v89_v34 = vld [vmem:[#allocation11 + $0xb0] sm:$0xff]  ;;  %v5006_v35 = vpack.c.bf16 %v87_v32, %v83_v30  ;;  %v96_v37 = vld [vmem:[#allocation11 + $0xe8] sm:$0xff]  ;;  %v94_v38 = vld [vmem:[#allocation11 + $0xd8] sm:$0xff]  ;;  %p4848_p0 = pnand %p4847_p13, %p4841_p10 }
  0x42   :  { %5848 = vst [vmem:[#allocation19_spill] sm:$0xff] %v5003_v31  ;;  %3489 = vmatpush1.bf16.msra.mxu0 %v4995_v22  ;;  %3521 = vmatpush1.bf16.msra.mxu1 %v4999_v26  ;;  %v5010_v39 = vpack.c.bf16 %v89_v34, %v85_v33  ;;  %v5012_v40 = vpack.c.bf16 %v96_v37, %v92_v36  ;;  %v98_v41 = vld [vmem:[#allocation11 + $0xf8] sm:$0xff]  ;;  %v91_v42 = vld [vmem:[#allocation11 + $0xc0] sm:$0xff]  ;;  %v93_v45 = vld [vmem:[#allocation11 + $0xd0] sm:$0xff] }
  0x43   :  { %5849 = vst [vmem:[#allocation20_spill] sm:$0xff] %v5006_v35  ;;  %3491 = vmatprep.subr.bf16.mxu0 %v5001_v27  ;;  %v95_v43 = vld [vmem:[#allocation11 + $0xe0] sm:$0xff]  ;;  %3523 = vmatprep.subr.bf16.mxu1 %v5003_v31  ;;  %v5015_v44 = vpack.c.bf16 %v98_v41, %v94_v38  ;;  %v97_v46 = vld [vmem:[#allocation11 + $0xf0] sm:$0xff]  ;;  %v100_v47 = vld [vmem:[#allocation11 + $0x108] sm:$0xff] }
  0x44   :  { %5850 = vst [vmem:[#allocation21_spill] sm:$0xff] %v5010_v39  ;;  %5851 = vst [vmem:[#allocation22_spill] sm:$0xff] %v5012_v40  ;;  %v104_v48 = vld [vmem:[#allocation11 + $0x128] sm:$0xff]  ;;  %v102_v49 = vld [vmem:[#allocation11 + $0x118] sm:$0xff]  ;;  %v5018_v51 = vpack.c.bf16 %v95_v43, %v91_v42  ;;  %v5022_v52 = vpack.c.bf16 %v97_v46, %v93_v45 }
  0x45   :  { %5852 = vst [vmem:[#allocation23_spill] sm:$0xff] %v5015_v44  ;;  %v106_v50 = vld [vmem:[#allocation11 + $0x138] sm:$0xff]  ;;  %v5024_v53 = vpack.c.bf16 %v104_v48, %v100_v47  ;;  %v99_v54 = vld [vmem:[#allocation11 + $0x100] sm:$0xff]  ;;  %v101_v56 = vld [vmem:[#allocation11 + $0x110] sm:$0xff] }
  0x46   :  { %3493 = vmatpush1.bf16.msra.mxu0 %v5006_v35  ;;  %5853 = vst [vmem:[#allocation24_spill] sm:$0xff] %v5018_v51  ;;  %3525 = vmatpush1.bf16.msra.mxu1 %v5010_v39  ;;  %5854 = vst [vmem:[#allocation25_spill] sm:$0xff] %v5022_v52  ;;  %v103_v55 = vld [vmem:[#allocation11 + $0x120] sm:$0xff]  ;;  %v5027_v57 = vpack.c.bf16 %v106_v50, %v102_v49  ;;  %v105_v58 = vld [vmem:[#allocation11 + $0x130] sm:$0xff] }
  0x47   :  { %3495 = vmatprep.subr.bf16.mxu0 %v5012_v40  ;;  %5855 = vst [vmem:[#allocation26_spill] sm:$0xff] %v5024_v53  ;;  %3527 = vmatprep.subr.bf16.mxu1 %v5015_v44  ;;  %v108_v59 = vld [vmem:[#allocation11 + $0x148] sm:$0xff]  ;;  %v110_v61 = vld [vmem:[#allocation11 + $0x158] sm:$0xff]  ;;  %v5030_v63 = vpack.c.bf16 %v103_v55, %v99_v54  ;;  %v5034_v1 = vpack.c.bf16 %v105_v58, %v101_v56  ;;  %v107_v3 = vld [vmem:[#allocation11 + $0x140] sm:$0xff] }
  0x48   :  { %5856 = vst [vmem:[#allocation27_spill] sm:$0xff] %v5027_v57  ;;  %v112_v60 = vld [vmem:[#allocation11 + $0x168] sm:$0xff]  ;;  %v114_v62 = vld [vmem:[#allocation11 + $0x178] sm:$0xff]  ;;  %v111_v5 = vld [vmem:[#allocation11 + $0x160] sm:$0xff] }
  0x49   :  { %5857 = vst [vmem:[#allocation28_spill] sm:$0xff] %v5030_v63  ;;  %5858 = vst [vmem:[#allocation29_spill] sm:$0xff] %v5034_v1  ;;  %v5036_v2 = vpack.c.bf16 %v112_v60, %v108_v59  ;;  %v109_v6 = vld [vmem:[#allocation11 + $0x150] sm:$0xff]  ;;  %v5039_v7 = vpack.c.bf16 %v114_v62, %v110_v61  ;;  %v116_v11 = vld [vmem:[#allocation11 + $0x188] sm:$0xff]  ;;  %v5042_v16 = vpack.c.bf16 %v111_v5, %v107_v3 }
  0x4a   :  { %3497 = vmatpush1.bf16.msra.mxu0 %v5018_v51  ;;  %3529 = vmatpush1.bf16.msra.mxu1 %v5022_v52  ;;  %v113_v10 = vld [vmem:[#allocation11 + $0x170] sm:$0xff]  ;;  %v120_v12 = vld [vmem:[#allocation11 + $0x1a8] sm:$0xff]  ;;  %v118_v14 = vld [vmem:[#allocation11 + $0x198] sm:$0xff] }
  0x4b   :  { %3499 = vmatprep.subr.bf16.mxu0 %v5024_v53  ;;  %5859 = vst [vmem:[#allocation30_spill] sm:$0xff] %v5036_v2  ;;  %3531 = vmatprep.subr.bf16.mxu1 %v5027_v57  ;;  %5860 = vst [vmem:[#allocation31_spill] sm:$0xff] %v5039_v7  ;;  %v122_v15 = vld [vmem:[#allocation11 + $0x1b8] sm:$0xff]  ;;  %v5046_v19 = vpack.c.bf16 %v113_v10, %v109_v6  ;;  %v5048_v20 = vpack.c.bf16 %v120_v12, %v116_v11  ;;  %v115_v21 = vld [vmem:[#allocation11 + $0x180] sm:$0xff] }
  0x4c   :  { %5861 = vst [vmem:[#allocation32_spill] sm:$0xff] %v5042_v16  ;;  %v119_v23 = vld [vmem:[#allocation11 + $0x1a0] sm:$0xff]  ;;  %v117_v24 = vld [vmem:[#allocation11 + $0x190] sm:$0xff]  ;;  %v5051_v25 = vpack.c.bf16 %v122_v15, %v118_v14  ;;  %v124_v29 = vld [vmem:[#allocation11 + $0x1c8] sm:$0xff] }
  0x4d   :  { %5862 = vst [vmem:[#allocation33_spill] sm:$0xff] %v5046_v19  ;;  %5863 = vst [vmem:[#allocation34_spill] sm:$0xff] %v5048_v20  ;;  %v121_v28 = vld [vmem:[#allocation11 + $0x1b0] sm:$0xff]  ;;  %v128_v30 = vld [vmem:[#allocation11 + $0x1e8] sm:$0xff]  ;;  %v5054_v34 = vpack.c.bf16 %v119_v23, %v115_v21 }
  0x4e   :  { %3501 = vmatpush1.bf16.msra.mxu0 %v5030_v63  ;;  %3533 = vmatpush1.bf16.msra.mxu1 %v5034_v1  ;;  %5864 = vst [vmem:[#allocation35_spill] sm:$0xff] %v5051_v25  ;;  %v126_v32 = vld [vmem:[#allocation11 + $0x1d8] sm:$0xff]  ;;  %v5058_v36 = vpack.c.bf16 %v121_v28, %v117_v24  ;;  %v5060_v37 = vpack.c.bf16 %v128_v30, %v124_v29  ;;  %v123_v38 = vld [vmem:[#allocation11 + $0x1c0] sm:$0xff]  ;;  %v125_v42 = vld [vmem:[#allocation11 + $0x1d0] sm:$0xff] }
  0x4f   :  { %3503 = vmatprep.subr.bf16.mxu0 %v5036_v2  ;;  %3535 = vmatprep.subr.bf16.mxu1 %v5039_v7  ;;  %v130_v33 = vld [vmem:[#allocation11 + $0x1f8] sm:$0xff]  ;;  %5865 = vst [vmem:[#allocation36_spill] sm:$0xff] %v5054_v34  ;;  %v127_v41 = vld [vmem:[#allocation11 + $0x1e0] sm:$0xff]  ;;  %v129_v45 = vld [vmem:[#allocation11 + $0x1f0] sm:$0xff] }
  0x50   :  { %5866 = vst [vmem:[#allocation37_spill] sm:$0xff] %v5058_v36  ;;  %5867 = vst [vmem:[#allocation38_spill] sm:$0xff] %v5060_v37  ;;  %v5063_v43 = vpack.c.bf16 %v130_v33, %v126_v32  ;;  %v133_v46 = vld [vmem:[#allocation11 + $0x208] sm:$0xff]  ;;  %v135_v48 = vld [vmem:[#allocation11 + $0x218] sm:$0xff]  ;;  %v5066_v50 = vpack.c.bf16 %v127_v41, %v123_v38  ;;  %v5070_v54 = vpack.c.bf16 %v129_v45, %v125_v42 }
  0x51   :  { %v137_v47 = vld [vmem:[#allocation11 + $0x228] sm:$0xff]  ;;  %v139_v49 = vld [vmem:[#allocation11 + $0x238] sm:$0xff]  ;;  %v132_v56 = vld [vmem:[#allocation11 + $0x200] sm:$0xff] }
  0x52   :  { %3505 = vmatpush1.bf16.msra.mxu0 %v5042_v16  ;;  %3537 = vmatpush1.bf16.msra.mxu1 %v5046_v19  ;;  %5868 = vst [vmem:[#allocation39_spill] sm:$0xff] %v5063_v43  ;;  %5869 = vst [vmem:[#allocation40_spill] sm:$0xff] %v5066_v50  ;;  %v5072_v55 = vpack.c.bf16 %v137_v47, %v133_v46  ;;  %v136_v58 = vld [vmem:[#allocation11 + $0x220] sm:$0xff]  ;;  %v134_v59 = vld [vmem:[#allocation11 + $0x210] sm:$0xff]  ;;  %v5075_v60 = vpack.c.bf16 %v139_v49, %v135_v48 }
  0x53   :  { %3507 = vmatprep.subr.bf16.mxu0 %v5048_v20  ;;  %3539 = vmatprep.subr.bf16.mxu1 %v5051_v25  ;;  %5870 = vst [vmem:[#allocation41_spill] sm:$0xff] %v5070_v54  ;;  %v138_v61 = vld [vmem:[#allocation11 + $0x230] sm:$0xff]  ;;  %v141_v62 = vld [vmem:[#allocation11 + $0x248] sm:$0xff]  ;;  %v143_v5 = vld [vmem:[#allocation11 + $0x258] sm:$0xff]  ;;  %v5078_v11 = vpack.c.bf16 %v136_v58, %v132_v56 }
  0x54   :  { %5871 = vst [vmem:[#allocation42_spill] sm:$0xff] %v5072_v55  ;;  %5872 = vst [vmem:[#allocation43_spill] sm:$0xff] %v5075_v60  ;;  %v145_v3 = vld [vmem:[#allocation11 + $0x268] sm:$0xff]  ;;  %v147_v6 = vld [vmem:[#allocation11 + $0x278] sm:$0xff]  ;;  %v5082_v12 = vpack.c.bf16 %v138_v61, %v134_v59 }
  0x55   :  { %v196_v10 = vld [vmem:[#allocation2] sm:$0x3]  ;;  %v5084_v14 = vpack.c.bf16 %v145_v3, %v141_v62  ;;  %v140_v15 = vld [vmem:[#allocation11 + $0x240] sm:$0xff]  ;;  %v142_v23 = vld [vmem:[#allocation11 + $0x250] sm:$0xff]  ;;  %v5087_v24 = vpack.c.bf16 %v147_v6, %v143_v5 }
  0x56   :  { %3509 = vmatpush1.bf16.msra.mxu0 %v5054_v34  ;;  %3541 = vmatpush1.bf16.msra.mxu1 %v5058_v36  ;;  %v144_v21 = vld [vmem:[#allocation11 + $0x260] sm:$0xff]  ;;  %v146_v28 = vld [vmem:[#allocation11 + $0x270] sm:$0xff]  ;;  %v149_v29 = vld [vmem:[#allocation11 + $0x288] sm:$0xff] }
  0x57   :  { %3511 = vmatprep.subr.bf16.mxu0 %v5060_v37  ;;  %3543 = vmatprep.subr.bf16.mxu1 %v5063_v43  ;;  %v153_v30 = vld [vmem:[#allocation11 + $0x2a8] sm:$0xff]  ;;  %v151_v32 = vld [vmem:[#allocation11 + $0x298] sm:$0xff]  ;;  %v5090_v38 = vpack.c.bf16 %v144_v21, %v140_v15  ;;  %v5094_v41 = vpack.c.bf16 %v146_v28, %v142_v23  ;;  %v148_v45 = vld [vmem:[#allocation11 + $0x280] sm:$0xff] }
  0x58   :  { %v155_v33 = vld [vmem:[#allocation11 + $0x2b8] sm:$0xff]  ;;  %v5096_v42 = vpack.c.bf16 %v153_v30, %v149_v29  ;;  %v152_v46 = vld [vmem:[#allocation11 + $0x2a0] sm:$0xff]  ;;  %v150_v47 = vld [vmem:[#allocation11 + $0x290] sm:$0xff] }
  0x59   :  { %v5099_v48 = vpack.c.bf16 %v155_v33, %v151_v32  ;;  %v154_v49 = vld [vmem:[#allocation11 + $0x2b0] sm:$0xff]  ;;  %v157_v56 = vld [vmem:[#allocation11 + $0x2c8] sm:$0xff]  ;;  %v159_v59 = vld [vmem:[#allocation11 + $0x2d8] sm:$0xff]  ;;  %v5104_v62 = vpack.c.bf16 %v152_v46, %v148_v45 }
  0x5a   :  { %3513 = vmatpush1.bf16.msra.mxu0 %v5066_v50  ;;  %3545 = vmatpush1.bf16.msra.mxu1 %v5070_v54  ;;  %v161_v58 = vld [vmem:[#allocation11 + $0x2e8] sm:$0xff]  ;;  %v163_v61 = vld [vmem:[#allocation11 + $0x2f8] sm:$0xff]  ;;  %v5108_v3 = vpack.c.bf16 %v154_v49, %v150_v47  ;;  %v156_v6 = vld [vmem:[#allocation11 + $0x2c0] sm:$0xff] }
  0x5b   :  { %3547 = vmatprep.subr.bf16.mxu0 %v5072_v55  ;;  %3579 = vmatprep.subr.bf16.mxu1 %v5075_v60  ;;  %v5110_v5 = vpack.c.bf16 %v161_v58, %v157_v56  ;;  %v158_v15 = vld [vmem:[#allocation11 + $0x2d0] sm:$0xff]  ;;  %v5113_v21 = vpack.c.bf16 %v163_v61, %v159_v59  ;;  %v165_v28 = vld [vmem:[#allocation11 + $0x308] sm:$0xff]  ;;  %v167_v30 = vld [vmem:[#allocation11 + $0x318] sm:$0xff] }
  0x5c   :  { %5873 = vst [vmem:[#allocation44_spill] sm:$0xff] %v5108_v3  ;;  %v162_v23 = vld [vmem:[#allocation11 + $0x2f0] sm:$0xff]  ;;  %v169_v29 = vld [vmem:[#allocation11 + $0x328] sm:$0xff]  ;;  %v171_v32 = vld [vmem:[#allocation11 + $0x338] sm:$0xff] }
  0x5d   :  { %266 = vmatmul.mubr.f32.vlgmr.msra.gmra.mrb[0].mxu0 %v196_v10  ;;  %337 = vmatmul.mubr.f32.vlgmr.msra.gmra.mrb[0].mxu1 %v196_v10  ;;  %5874 = vst [vmem:[#allocation45_spill] sm:$0xff] %v5110_v5  ;;  %v160_v10 = vld [vmem:[#allocation11 + $0x2e0] sm:$0xff]  ;;  %5875 = vst [vmem:[#allocation46_spill] sm:$0xff] %v5113_v21  ;;  %v5120_v45 = vpack.c.bf16 %v162_v23, %v158_v15  ;;  %v5122_v46 = vpack.c.bf16 %v169_v29, %v165_v28  ;;  %v166_v56 = vld [vmem:[#allocation11 + $0x310] sm:$0xff] }
  0x5e   :  { %3549 = vmatpush1.bf16.msra.mxu0 %v5078_v11  ;;  %3581 = vmatpush1.bf16.msra.mxu1 %v5082_v12  ;;  %v5116_v33 = vpack.c.bf16 %v160_v10, %v156_v6  ;;  %v164_v47 = vld [vmem:[#allocation11 + $0x300] sm:$0xff]  ;;  %v5125_v58 = vpack.c.bf16 %v171_v32, %v167_v30  ;;  %v170_v59 = vld [vmem:[#allocation11 + $0x330] sm:$0xff]  ;;  %v173_v61 = vld [vmem:[#allocation11 + $0x348] sm:$0xff] }
  0x5f   :  { %3551 = vmatprep.subr.bf16.mxu0 %v5084_v14  ;;  %3583 = vmatprep.subr.bf16.mxu1 %v5087_v24  ;;  %5877 = vst [vmem:[#allocation48_spill] sm:$0xff] %v5120_v45  ;;  %5878 = vst [vmem:[#allocation49_spill] sm:$0xff] %v5122_v46  ;;  %v168_v49 = vld [vmem:[#allocation11 + $0x320] sm:$0xff]  ;;  %v175_v6 = vld [vmem:[#allocation11 + $0x358] sm:$0xff]  ;;  %v5132_v15 = vpack.c.bf16 %v170_v59, %v166_v56 }
  0x60   :  { %431 = vmatprep.mubr.f32.mxu0 %v5774_v0  ;;  %502 = vmatprep.mubr.f32.mxu1 %v5774_v0  ;;  %5876 = vst [vmem:[#allocation47_spill] sm:$0xff] %v5116_v33  ;;  %5879 = vst [vmem:[#allocation50_spill] sm:$0xff] %v5125_v58  ;;  %v177_v0 = vld [vmem:[#allocation11 + $0x368] sm:$0xff]  ;;  %v179_v10 = vld [vmem:[#allocation11 + $0x378] sm:$0xff] }
  0x61   :  { %5881 = vst [vmem:[#allocation52_spill] sm:$0xff] %v5132_v15  ;;  %v5134_v23 = vpack.c.bf16 %v177_v0, %v173_v61  ;;  %v172_v28 = vld [vmem:[#allocation11 + $0x340] sm:$0xff]  ;;  %v174_v30 = vld [vmem:[#allocation11 + $0x350] sm:$0xff]  ;;  %v5137_v32 = vpack.c.bf16 %v179_v10, %v175_v6 }
  0x62   :  { %3553 = vmatpush1.bf16.msra.mxu0 %v5090_v38  ;;  %3585 = vmatpush1.bf16.msra.mxu1 %v5094_v41  ;;  %v176_v29 = vld [vmem:[#allocation11 + $0x360] sm:$0xff]  ;;  %v182_v6 = vld [vmem:[#allocation11 + $0x390] sm:$0xff] }
  0x63   :  { %3555 = vmatprep.subr.bf16.mxu0 %v5096_v42  ;;  %3587 = vmatprep.subr.bf16.mxu1 %v5099_v48  ;;  %5882 = vst [vmem:[#allocation53_spill] sm:$0xff] %v5137_v32  ;;  %v180_v59 = vld [vmem:[#allocation11 + $0x380] sm:$0xff] }
  0x64   :  { %v184_v61 = vld [vmem:[#allocation11 + $0x3a0] sm:$0xff] }
  0x66   :  { %3557 = vmatpush1.bf16.msra.mxu0 %v5104_v62  ;;  %3589 = vmatpush1.bf16.msra.mxu1 %v5108_v3  ;;  %v5128_v3 = vpack.c.bf16 %v168_v49, %v164_v47  ;;  %v183_v47 = vld [vmem:[#allocation11 + $0x398] sm:$0xff] }
  0x67   :  { %3559 = vmatprep.subr.bf16.mxu0 %v5110_v5  ;;  %3591 = vmatprep.subr.bf16.mxu1 %v5113_v21  ;;  %v178_v21 = vld [vmem:[#allocation11 + $0x370] sm:$0xff]  ;;  %v181_v5 = vld [vmem:[#allocation11 + $0x388] sm:$0xff]  ;;  %v187_v49 = vld [vmem:[#allocation11 + $0x3b8] sm:$0xff] }
  0x68   :  { %5880 = vst [vmem:[#allocation51_spill] sm:$0xff] %v5128_v3  ;;  %v5144_v0 = vpack.c.bf16 %v178_v21, %v174_v30  ;;  %v5149_v10 = vpack.c.bf16 %v187_v49, %v183_v47  ;;  %v192_v30 = vld [vmem:[#allocation11 + $0x3e0] sm:$0xff]  ;;  %v190_v49 = vld [vmem:[#allocation11 + $0x3d0] sm:$0xff] }
  0x6a   :  { %3561 = vmatpush1.bf16.msra.mxu0 %v5116_v33  ;;  %3593 = vmatpush1.bf16.msra.mxu1 %v5120_v45  ;;  %v185_v33 = vld [vmem:[#allocation11 + $0x3a8] sm:$0xff]  ;;  %v5140_v45 = vpack.c.bf16 %v176_v29, %v172_v28  ;;  %v191_v28 = vld [vmem:[#allocation11 + $0x3d8] sm:$0xff] }
  0x6b   :  { %3563 = vmatprep.subr.bf16.mxu0 %v5122_v46  ;;  %3595 = vmatprep.subr.bf16.mxu1 %v5125_v58  ;;  %v5146_v56 = vpack.c.bf16 %v185_v33, %v181_v5  ;;  %v186_v58 = vld [vmem:[#allocation11 + $0x3b0] sm:$0xff]  ;;  %v189_v46 = vld [vmem:[#allocation11 + $0x3c8] sm:$0xff]  ;;  %v195_v29 = vld [vmem:[#allocation11 + $0x3f8] sm:$0xff] }
  0x6c   :  { %v5156_v5 = vpack.c.bf16 %v186_v58, %v182_v6  ;;  %v188_v33 = vld [vmem:[#allocation11 + $0x3c0] sm:$0xff]  ;;  %v5161_v47 = vpack.c.bf16 %v195_v29, %v191_v28  ;;  %v352_v6 = vlaneseq }
  0x6e   :  { %3565 = vmatpush1.bf16.msra.mxu0 %v5128_v3  ;;  %3597 = vmatpush1.bf16.msra.mxu1 %v5132_v15  ;;  %v193_v3 = vld [vmem:[#allocation11 + $0x3e8] sm:$0xff]  ;;  %v5152_v15 = vpack.c.bf16 %v184_v61, %v180_v59  ;;  %v5164_v59 = vpack.c.bf16 %v192_v30, %v188_v33  ;;  %v353_v29 = vshrl.u32 %v352_v6, 7 }
  0x6f   :  { %3567 = vmatprep.subr.bf16.mxu0 %v5134_v23  ;;  %3599 = vmatprep.subr.bf16.mxu1 %v5137_v32  ;;  %v5158_v21 = vpack.c.bf16 %v193_v3, %v189_v46  ;;  %v194_v32 = vld [vmem:[#allocation11 + $0x3f0] sm:$0xff]  ;;  %v198_v3 = vld [vmem:[#allocation4] sm:$0x3]  ;;  %v5883_v46 = vmov 0.0  }
  0x70   :  { %v5168_v58 = vpack.c.bf16 %v194_v32, %v190_v49  ;;  %v4900_v32 = vmov 1983009808  }
  0x71   :  { %v350_v61 = vunpack.c.l.s4 %v4900_v32 }
  0x72   :  { %3569 = vmatpush1.bf16.msra.mxu0 %v5140_v45  ;;  %3601 = vmatpush1.bf16.msra.mxu1 %v5144_v0 }
  0x73   :  { %3571 = vmatprep.subr.bf16.mxu0 %v5146_v56  ;;  %3603 = vmatprep.subr.bf16.mxu1 %v5149_v10  ;;  %v351_v28 = vunpack.c.0.s8 %v350_v61 }
  0x75   :  { %v5209_v30 = vsub.s32 %v351_v28, %v353_v29 }
  0x76   :  { %3573 = vmatpush1.bf16.msra.mxu0 %v5152_v15  ;;  %3605 = vmatpush1.bf16.msra.mxu1 %v5156_v5 }
  0x77   :  { %3575 = vmatprep.subr.bf16.mxu0 %v5158_v21  ;;  %3607 = vmatprep.subr.bf16.mxu1 %v5161_v47  ;;  %5884 = vst [vmem:[#allocation54_spill] sm:$0xff] %v5209_v30 }
  0x7a   :  { %3577 = vmatpush1.bf16.msra.mxu0 %v5164_v59  ;;  %3609 = vmatpush1.bf16.msra.mxu1 %v5168_v58 }
  0x7b   :  { %3611 = vmatprep.subr.bf16.mxu0 %v4979_v4  ;;  %3643 = vmatprep.subr.bf16.mxu1 %v4981_v8 }
  0x7d   :  { %432 = vmatmul.mubr.f32.vlgmr.msra.gmra.mrb[2].mxu0 %v198_v3  ;;  %503 = vmatmul.mubr.f32.vlgmr.msra.gmra.mrb[2].mxu1 %v198_v3 }
  0x7e   :  { %3613 = vmatpush1.bf16.msra.mxu0 %v4983_v9  ;;  %3645 = vmatpush1.bf16.msra.mxu1 %v4986_v13 }
  0x7f   :  { %3615 = vmatprep.subr.bf16.mxu0 %v4990_v17  ;;  %3647 = vmatprep.subr.bf16.mxu1 %v4992_v18 }
  0x80   :  { %662 = vmatprep.mubr.f32.mxu0 %v5883_v46  ;;  %733 = vmatprep.mubr.f32.mxu1 %v5883_v46 }
  0x82   :  { %3617 = vmatpush1.bf16.msra.mxu0 %v4995_v22  ;;  %3649 = vmatpush1.bf16.msra.mxu1 %v4999_v26 }
  0x83   :  { %3619 = vmatprep.subr.bf16.mxu0 %v5001_v27  ;;  %3651 = vmatprep.subr.bf16.mxu1 %v5003_v31 }
  0x86   :  { %3621 = vmatpush1.bf16.msra.mxu0 %v5006_v35  ;;  %3653 = vmatpush1.bf16.msra.mxu1 %v5010_v39 }
  0x87   :  { %3623 = vmatprep.subr.bf16.mxu0 %v5012_v40  ;;  %3655 = vmatprep.subr.bf16.mxu1 %v5015_v44 }
  0x8a   :  { %3625 = vmatpush1.bf16.msra.mxu0 %v5018_v51  ;;  %3657 = vmatpush1.bf16.msra.mxu1 %v5022_v52 }
  0x8b   :  { %3627 = vmatprep.subr.bf16.mxu0 %v5024_v53  ;;  %3659 = vmatprep.subr.bf16.mxu1 %v5027_v57 }
  0x8e   :  { %3629 = vmatpush1.bf16.msra.mxu0 %v5030_v63  ;;  %3661 = vmatpush1.bf16.msra.mxu1 %v5034_v1 }
  0x8f   :  { %3631 = vmatprep.subr.bf16.mxu0 %v5036_v2  ;;  %3663 = vmatprep.subr.bf16.mxu1 %v5039_v7 }
  0x92   :  { %3633 = vmatpush1.bf16.msra.mxu0 %v5042_v16  ;;  %3665 = vmatpush1.bf16.msra.mxu1 %v5046_v19 }
  0x93   :  { %3635 = vmatprep.subr.bf16.mxu0 %v5048_v20  ;;  %3667 = vmatprep.subr.bf16.mxu1 %v5051_v25 }
  0x96   :  { %3637 = vmatpush1.bf16.msra.mxu0 %v5054_v34  ;;  %3669 = vmatpush1.bf16.msra.mxu1 %v5058_v36 }
  0x97   :  { %3639 = vmatprep.subr.bf16.mxu0 %v5060_v37  ;;  %3671 = vmatprep.subr.bf16.mxu1 %v5063_v43 }
  0x9a   :  { %3641 = vmatpush1.bf16.msra.mxu0 %v5066_v50  ;;  %3673 = vmatpush1.bf16.msra.mxu1 %v5070_v54 }
  0x9b   :  { %3675 = vmatprep.subr.bf16.mxu0 %v5072_v55  ;;  %3707 = vmatprep.subr.bf16.mxu1 %v5075_v60  ;;  %v200_v55 = vld [vmem:[#allocation6] sm:$0xff] }
 0x130   :  { %v267_v33 = vpop.f32.mrb[0].mxu0  ;;  %v338_v49 = vpop.f32.mrb[0].mxu1 }
 0x131   :  { %v269_v3 = vpop.f32.mrb[1].mxu0  ;;  %v340_v43 = vpop.f32.mrb[1].mxu1 }
 0x132   :  { %v347_v37 = vcombine.low %v267_v33, %v269_v3  ;;  %v348_v36 = vcombine.low %v338_v49, %v340_v43 }
 0x134   :  { %v355_v50 = vrot.slane %v347_v37, %v5209_v30  ;;  %v362_v54 = vrot.slane %v348_v36, %v5209_v30 }
 0x136   :  { %v363_v34 = vcombine.low %v355_v50, %v362_v54 }
 0x138   :  { %v365_v60 = vadd.f32 %v363_v34, %v200_v55 }
 0x13a   :  { %v3434_v25 = vmul.f32 -1.442695, %v365_v60  ;;  %v539_v32 = vrot.slane %v365_v60, 2  ;;  %v550_v6 = vrot.slane %v365_v60, 6  ;;  %v547_v20 = vrot.slane %v365_v60, 4 }
 0x13c   :  { %4518 = vpow2.f32 %v3434_v25  ;;  %v3435_v61 = vmul.f32 -1.442695, %v539_v32  ;;  %v3436_v28 = vmul.f32 -1.442695, %v550_v6  ;;  %v197_v32 = vld [vmem:[#allocation3] sm:$0x3] }
 0x13e   :  { %4520 = vpow2.f32 %v3435_v61 }
 0x13f   :  { %4522 = vpow2.f32 %v3436_v28  ;;  %v366_v28 = vld [vmem:[#allocation9] sm:$0xff] }
 0x146   :  { %v4519_v29 = vpop.eup %4518 }
 0x147   :  { %v535_v19 = vadd.f32 1.0, %v4519_v29 }
 0x148   :  { %v4521_v33 = vpop.eup %4520 }
 0x149   :  { %4524 = vrcp.f32 %v535_v19  ;;  %v544_v43 = vadd.f32 1.0, %v4521_v33  ;;  %v4523_v55 = vpop.eup %4522 }
 0x14a   :  { %4526 = vtanh.f32 %v547_v20  ;;  %v555_v19 = vadd.f32 1.0, %v4523_v55 }
 0x14b   :  { %4528 = vrcp.f32 %v544_v43 }
 0x14c   :  { %4530 = vrcp.f32 %v555_v19  ;;  %v199_v19 = vld [vmem:[#allocation5] sm:$0x3] }
 0x150   :  { %v433_v36 = vpop.f32.mrb[2].mxu0  ;;  %v504_v37 = vpop.f32.mrb[2].mxu1 }
 0x151   :  { %v435_v50 = vpop.f32.mrb[3].mxu0  ;;  %v506_v54 = vpop.f32.mrb[3].mxu1 }
 0x152   :  { %v513_v34 = vcombine.low %v433_v36, %v435_v50  ;;  %v514_v25 = vcombine.low %v504_v37, %v506_v54 }
 0x153   :  { %v4525_v49 = vpop.eup %4524 }
 0x154   :  { %v521_v3 = vrot.slane %v513_v34, %v5209_v30  ;;  %v4527_v61 = vpop.eup %4526  ;;  %v528_v60 = vrot.slane %v514_v25, %v5209_v30 }
 0x155   :  { %v4529_v6 = vpop.eup %4528  ;;  %v559_v33 = vmul.f32 %v4527_v61, %v4525_v49 }
 0x156   :  { %v529_v29 = vcombine.low %v521_v3, %v528_v60  ;;  %v558_v20 = vmul.f32 %v4529_v6, %v197_v32  ;;  %v4531_v54 = vpop.eup %4530  ;;  %v5886_v60 = vld [vmem:[#allocation45_spill] sm:$0xff]  ;;  %v5887_v6 = vld [vmem:[#allocation46_spill] sm:$0xff] }
 0x158   :  { %v531_v43 = vadd.f32 %v529_v29, %v366_v28  ;;  %v5215_v16 = vadd.f32 %v559_v33, %v558_v20 }
 0x15a   :  { %v3437_v36 = vmul.f32 -1.442695, %v531_v43  ;;  %v570_v50 = vrot.slane %v531_v43, 2  ;;  %4532 = vtanh.f32 %v5215_v16  ;;  %v581_v34 = vrot.slane %v531_v43, 6 }
 0x15b   :  { %v578_v55 = vrot.slane %v531_v43, 4  ;;  %v5888_v43 = vld [vmem:[#allocation47_spill] sm:$0xff] }
 0x15c   :  { %4534 = vpow2.f32 %v3437_v36  ;;  %v3438_v37 = vmul.f32 -1.442695, %v570_v50  ;;  %v3439_v25 = vmul.f32 -1.442695, %v581_v34  ;;  %v5889_v36 = vld [vmem:[#allocation48_spill] sm:$0xff]  ;;  %v5890_v50 = vld [vmem:[#allocation49_spill] sm:$0xff] }
 0x15e   :  { %4536 = vpow2.f32 %v3438_v37  ;;  %v5891_v37 = vld [vmem:[#allocation50_spill] sm:$0xff] }
 0x15f   :  { %4538 = vpow2.f32 %v3439_v25 }
 0x164   :  { %v4533_v30 = vpop.eup %4532 }
 0x165   :  { %v562_v3 = vmul.f32 %v4533_v30, %v4531_v54 }
 0x166   :  { %v4535_v7 = vpop.eup %4534 }
 0x167   :  { %v566_v32 = vadd.f32 1.0, %v4535_v7  ;;  %594 = vst [vmem:[#allocation12] sm:$0x3] %v562_v3  ;;  %663 = vmatmul.mubr.f32.vlgmr.msra.gmra.mrb[4].mxu0 %v562_v3  ;;  %734 = vmatmul.mubr.f32.vlgmr.msra.gmra.mrb[4].mxu1 %v562_v3  ;;  %v5885_v7 = vld [vmem:[#allocation44_spill] sm:$0xff] }
 0x168   :  { %v4537_v49 = vpop.eup %4536  ;;  %3677 = vmatpush1.bf16.msra.mxu0 %v5078_v11  ;;  %3709 = vmatpush1.bf16.msra.mxu1 %v5082_v12  ;;  %v5893_v3 = vld [vmem:[#allocation52_spill] sm:$0xff] }
 0x169   :  { %4540 = vrcp.f32 %v566_v32  ;;  %v575_v61 = vadd.f32 1.0, %v4537_v49  ;;  %3679 = vmatprep.subr.bf16.mxu0 %v5084_v14  ;;  %3711 = vmatprep.subr.bf16.mxu1 %v5087_v24  ;;  %v4539_v30 = vpop.eup %4538  ;;  %v5894_v32 = vld [vmem:[#allocation53_spill] sm:$0xff] }
 0x16a   :  { %4542 = vtanh.f32 %v578_v55  ;;  %829 = vmatprep.mubr.f32.mxu0 %v5883_v46  ;;  %900 = vmatprep.mubr.f32.mxu1 %v5883_v46  ;;  %v586_v33 = vadd.f32 1.0, %v4539_v30  ;;  %v5892_v55 = vld [vmem:[#allocation51_spill] sm:$0xff] }
 0x16b   :  { %4544 = vrcp.f32 %v575_v61 }
 0x16c   :  { %3681 = vmatpush1.bf16.msra.mxu0 %v5090_v38  ;;  %3713 = vmatpush1.bf16.msra.mxu1 %v5094_v41  ;;  %4546 = vrcp.f32 %v586_v33  ;;  %v5899_v33 = vld [vmem:[#allocation35_spill] sm:$0xff] }
 0x16d   :  { %3683 = vmatprep.subr.bf16.mxu0 %v5096_v42  ;;  %3715 = vmatprep.subr.bf16.mxu1 %v5099_v48 }
 0x170   :  { %3685 = vmatpush1.bf16.msra.mxu0 %v5104_v62  ;;  %3717 = vmatpush1.bf16.msra.mxu1 %v5885_v7 }
 0x171   :  { %3687 = vmatprep.subr.bf16.mxu0 %v5886_v60  ;;  %3719 = vmatprep.subr.bf16.mxu1 %v5887_v6 }
 0x173   :  { %v4541_v28 = vpop.eup %4540 }
 0x174   :  { %v4543_v29 = vpop.eup %4542  ;;  %3689 = vmatpush1.bf16.msra.mxu0 %v5888_v43  ;;  %3721 = vmatpush1.bf16.msra.mxu1 %v5889_v36 }
 0x175   :  { %v4545_v20 = vpop.eup %4544  ;;  %3691 = vmatprep.subr.bf16.mxu0 %v5890_v50  ;;  %3723 = vmatprep.subr.bf16.mxu1 %v5891_v37  ;;  %v590_v54 = vmul.f32 %v4543_v29, %v4541_v28  ;;  %v5895_v28 = vld [vmem:[#allocation31_spill] sm:$0xff]  ;;  %v5897_v29 = vld [vmem:[#allocation33_spill] sm:$0xff] }
 0x176   :  { %v589_v34 = vmul.f32 %v4545_v20, %v199_v19  ;;  %v4547_v49 = vpop.eup %4546  ;;  %v5896_v19 = vld [vmem:[#allocation32_spill] sm:$0xff]  ;;  %v5898_v20 = vld [vmem:[#allocation34_spill] sm:$0xff] }
 0x178   :  { %v5236_v25 = vadd.f32 %v590_v54, %v589_v34  ;;  %3693 = vmatpush1.bf16.msra.mxu0 %v5892_v55  ;;  %3725 = vmatpush1.bf16.msra.mxu1 %v5893_v3  ;;  %v5900_v34 = vld [vmem:[#allocation36_spill] sm:$0xff]  ;;  %v5901_v54 = vld [vmem:[#allocation37_spill] sm:$0xff] }
 0x179   :  { %3695 = vmatprep.subr.bf16.mxu0 %v5134_v23  ;;  %3727 = vmatprep.subr.bf16.mxu1 %v5894_v32 }
 0x17a   :  { %4548 = vtanh.f32 %v5236_v25 }
 0x17c   :  { %3697 = vmatpush1.bf16.msra.mxu0 %v5140_v45  ;;  %3729 = vmatpush1.bf16.msra.mxu1 %v5144_v0 }
 0x17d   :  { %3699 = vmatprep.subr.bf16.mxu0 %v5146_v56  ;;  %3731 = vmatprep.subr.bf16.mxu1 %v5149_v10 }
 0x180   :  { %3701 = vmatpush1.bf16.msra.mxu0 %v5152_v15  ;;  %3733 = vmatpush1.bf16.msra.mxu1 %v5156_v5 }
 0x181   :  { %3703 = vmatprep.subr.bf16.mxu0 %v5158_v21  ;;  %3735 = vmatprep.subr.bf16.mxu1 %v5161_v47 }
 0x184   :  { %v4549_v61 = vpop.eup %4548  ;;  %3705 = vmatpush1.bf16.msra.mxu0 %v5164_v59  ;;  %3737 = vmatpush1.bf16.msra.mxu1 %v5168_v58 }
 0x185   :  { %v593_v30 = vmul.f32 %v4549_v61, %v4547_v49  ;;  %3739 = vmatprep.subr.bf16.mxu0 %v4979_v4  ;;  %3771 = vmatprep.subr.bf16.mxu1 %v4981_v8  ;;  %v5902_v49 = vld [vmem:[#allocation38_spill] sm:$0xff]  ;;  %v5903_v61 = vld [vmem:[#allocation39_spill] sm:$0xff] }
 0x187   :  { %595 = vst [vmem:[#allocation13] sm:$0x3] %v593_v30  ;;  %830 = vmatmul.mubr.f32.vlgmr.msra.gmra.mrb[6].mxu0 %v593_v30  ;;  %901 = vmatmul.mubr.f32.vlgmr.msra.gmra.mrb[6].mxu1 %v593_v30  ;;  %v5904_v30 = vld [vmem:[#allocation40_spill] sm:$0xff] }
 0x188   :  { %3741 = vmatpush1.bf16.msra.mxu0 %v4983_v9  ;;  %3773 = vmatpush1.bf16.msra.mxu1 %v4986_v13 }
 0x189   :  { %3743 = vmatprep.subr.bf16.mxu0 %v4990_v17  ;;  %3775 = vmatprep.subr.bf16.mxu1 %v4992_v18 }
 0x18a   :  { %1062 = vmatprep.mubr.f32.mxu0 %v5883_v46  ;;  %1133 = vmatprep.mubr.f32.mxu1 %v5883_v46 }
 0x18c   :  { %3745 = vmatpush1.bf16.msra.mxu0 %v4995_v22  ;;  %3777 = vmatpush1.bf16.msra.mxu1 %v4999_v26 }
 0x18d   :  { %3747 = vmatprep.subr.bf16.mxu0 %v5001_v27  ;;  %3779 = vmatprep.subr.bf16.mxu1 %v5003_v31 }
 0x190   :  { %3749 = vmatpush1.bf16.msra.mxu0 %v5006_v35  ;;  %3781 = vmatpush1.bf16.msra.mxu1 %v5010_v39 }
 0x191   :  { %3751 = vmatprep.subr.bf16.mxu0 %v5012_v40  ;;  %3783 = vmatprep.subr.bf16.mxu1 %v5015_v44 }
 0x194   :  { %3753 = vmatpush1.bf16.msra.mxu0 %v5018_v51  ;;  %3785 = vmatpush1.bf16.msra.mxu1 %v5022_v52 }
 0x195   :  { %3755 = vmatprep.subr.bf16.mxu0 %v5024_v53  ;;  %3787 = vmatprep.subr.bf16.mxu1 %v5027_v57  ;;  %v5908_v57 = vld [vmem:[#allocation54_spill] sm:$0xff]  ;;  %v597_v53 = vld [vmem:[#allocation6 + $0x8] sm:$0xff] }
 0x198   :  { %3757 = vmatpush1.bf16.msra.mxu0 %v5030_v63  ;;  %3789 = vmatpush1.bf16.msra.mxu1 %v5034_v1 }
 0x199   :  { %3759 = vmatprep.subr.bf16.mxu0 %v5036_v2  ;;  %3791 = vmatprep.subr.bf16.mxu1 %v5895_v28  ;;  %v5905_v2 = vld [vmem:[#allocation41_spill] sm:$0xff]  ;;  %v5906_v28 = vld [vmem:[#allocation42_spill] sm:$0xff] }
 0x19c   :  { %3761 = vmatpush1.bf16.msra.mxu0 %v5896_v19  ;;  %3793 = vmatpush1.bf16.msra.mxu1 %v5897_v29  ;;  %v5907_v19 = vld [vmem:[#allocation43_spill] sm:$0xff] }
 0x19d   :  { %3763 = vmatprep.subr.bf16.mxu0 %v5898_v20  ;;  %3795 = vmatprep.subr.bf16.mxu1 %v5899_v33 }
 0x1a0   :  { %3765 = vmatpush1.bf16.msra.mxu0 %v5900_v34  ;;  %3797 = vmatpush1.bf16.msra.mxu1 %v5901_v54 }
 0x1a1   :  { %3767 = vmatprep.subr.bf16.mxu0 %v5902_v49  ;;  %3799 = vmatprep.subr.bf16.mxu1 %v5903_v61 }
 0x1a4   :  { %3769 = vmatpush1.bf16.msra.mxu0 %v5904_v30  ;;  %3801 = vmatpush1.bf16.msra.mxu1 %v5905_v2 }
 0x1a5   :  { %3803 = vmatprep.subr.bf16.mxu0 %v5906_v28  ;;  %3835 = vmatprep.subr.bf16.mxu1 %v5907_v19 }
 0x23a   :  { %v664_v29 = vpop.f32.mrb[4].mxu0  ;;  %v735_v20 = vpop.f32.mrb[4].mxu1 }
 0x23b   :  { %v666_v1 = vpop.f32.mrb[5].mxu0  ;;  %v737_v33 = vpop.f32.mrb[5].mxu1 }
 0x23c   :  { %v744_v63 = vcombine.low %v664_v29, %v666_v1  ;;  %v745_v34 = vcombine.low %v735_v20, %v737_v33 }
 0x23e   :  { %v752_v54 = vrot.slane %v744_v63, %v5908_v57  ;;  %v759_v49 = vrot.slane %v745_v34, %v5908_v57 }
 0x240   :  { %v760_v61 = vcombine.low %v752_v54, %v759_v49  ;;  %v764_v49 = vld [vmem:[#allocation9 + $0x8] sm:$0xff] }
 0x242   :  { %v762_v52 = vadd.f32 %v760_v61, %v597_v53 }
 0x244   :  { %v3440_v30 = vmul.f32 -1.442695, %v762_v52  ;;  %v937_v51 = vrot.slane %v762_v52, 2  ;;  %v948_v28 = vrot.slane %v762_v52, 6  ;;  %v945_v40 = vrot.slane %v762_v52, 4 }
 0x246   :  { %4550 = vpow2.f32 %v3440_v30  ;;  %v3441_v2 = vmul.f32 -1.442695, %v937_v51  ;;  %v3442_v19 = vmul.f32 -1.442695, %v948_v28 }
 0x248   :  { %4552 = vpow2.f32 %v3441_v2 }
 0x249   :  { %4554 = vpow2.f32 %v3442_v19 }
 0x250   :  { %v4551_v44 = vpop.eup %4550 }
 0x251   :  { %v933_v39 = vadd.f32 1.0, %v4551_v44 }
 0x252   :  { %v4553_v35 = vpop.eup %4552 }
 0x253   :  { %4556 = vrcp.f32 %v933_v39  ;;  %v942_v1 = vadd.f32 1.0, %v4553_v35  ;;  %v4555_v33 = vpop.eup %4554 }
 0x254   :  { %4558 = vtanh.f32 %v945_v40  ;;  %v953_v19 = vadd.f32 1.0, %v4555_v33 }
 0x255   :  { %4560 = vrcp.f32 %v942_v1 }
 0x256   :  { %4562 = vrcp.f32 %v953_v19 }
 0x25a   :  { %v831_v63 = vpop.f32.mrb[6].mxu0  ;;  %v902_v29 = vpop.f32.mrb[6].mxu1 }
 0x25b   :  { %v833_v20 = vpop.f32.mrb[7].mxu0  ;;  %v904_v53 = vpop.f32.mrb[7].mxu1 }
 0x25c   :  { %v911_v34 = vcombine.low %v831_v63, %v833_v20  ;;  %v912_v54 = vcombine.low %v902_v29, %v904_v53 }
 0x25d   :  { %v4557_v51 = vpop.eup %4556 }
 0x25e   :  { %v4559_v2 = vpop.eup %4558  ;;  %v919_v28 = vrot.slane %v911_v34, %v5908_v57  ;;  %v926_v52 = vrot.slane %v912_v54, %v5908_v57 }
 0x25f   :  { %v4561_v44 = vpop.eup %4560  ;;  %v957_v40 = vmul.f32 %v4559_v2, %v4557_v51 }
 0x260   :  { %v927_v39 = vcombine.low %v919_v28, %v926_v52  ;;  %v956_v35 = vmul.f32 %v4561_v44, %v5215_v16  ;;  %v4563_v20 = vpop.eup %4562 }
 0x262   :  { %v929_v61 = vadd.f32 %v927_v39, %v764_v49  ;;  %v5294_v30 = vadd.f32 %v957_v40, %v956_v35 }
 0x264   :  { %v3443_v1 = vmul.f32 -1.442695, %v929_v61  ;;  %v968_v31 = vrot.slane %v929_v61, 2  ;;  %4564 = vtanh.f32 %v5294_v30  ;;  %v979_v29 = vrot.slane %v929_v61, 6 }
 0x265   :  { %v976_v54 = vrot.slane %v929_v61, 4 }
 0x266   :  { %4566 = vpow2.f32 %v3443_v1  ;;  %v3444_v63 = vmul.f32 -1.442695, %v968_v31  ;;  %v3445_v53 = vmul.f32 -1.442695, %v979_v29  ;;  %v5910_v29 = vld [vmem:[#allocation20_spill] sm:$0xff] }
 0x268   :  { %4568 = vpow2.f32 %v3444_v63  ;;  %v5909_v63 = vld [vmem:[#allocation19_spill] sm:$0xff] }
 0x269   :  { %4570 = vpow2.f32 %v3445_v53  ;;  %v5912_v53 = vld [vmem:[#allocation22_spill] sm:$0xff] }
 0x26e   :  { %v4565_v34 = vpop.eup %4564 }
 0x26f   :  { %v960_v28 = vmul.f32 %v4565_v34, %v4563_v20  ;;  %v5911_v20 = vld [vmem:[#allocation21_spill] sm:$0xff]  ;;  %v5913_v34 = vld [vmem:[#allocation23_spill] sm:$0xff] }
 0x270   :  { %v4567_v33 = vpop.eup %4566 }
 0x271   :  { %v964_v16 = vadd.f32 1.0, %v4567_v33  ;;  %993 = vst [vmem:[#allocation12 + $0x2] sm:$0x3] %v960_v28  ;;  %1063 = vmatmul.mubr.f32.vlgmr.msra.gmra.mrb[8].mxu0 %v960_v28  ;;  %1134 = vmatmul.mubr.f32.vlgmr.msra.gmra.mrb[8].mxu1 %v960_v28  ;;  %v5914_v33 = vld [vmem:[#allocation24_spill] sm:$0xff]  ;;  %v5916_v28 = vld [vmem:[#allocation26_spill] sm:$0xff] }
 0x272   :  { %v4569_v51 = vpop.eup %4568  ;;  %3805 = vmatpush1.bf16.msra.mxu0 %v5078_v11  ;;  %3837 = vmatpush1.bf16.msra.mxu1 %v5082_v12 }
 0x273   :  { %4572 = vrcp.f32 %v964_v16  ;;  %v973_v2 = vadd.f32 1.0, %v4569_v51  ;;  %3807 = vmatprep.subr.bf16.mxu0 %v5084_v14  ;;  %3839 = vmatprep.subr.bf16.mxu1 %v5087_v24  ;;  %v4571_v31 = vpop.eup %4570  ;;  %v5917_v16 = vld [vmem:[#allocation27_spill] sm:$0xff]  ;;  %v5918_v51 = vld [vmem:[#allocation28_spill] sm:$0xff] }
 0x274   :  { %4574 = vtanh.f32 %v976_v54  ;;  %1229 = vmatprep.mubr.f32.mxu0 %v5883_v46  ;;  %1300 = vmatprep.mubr.f32.mxu1 %v5883_v46  ;;  %v984_v19 = vadd.f32 1.0, %v4571_v31  ;;  %v5915_v54 = vld [vmem:[#allocation25_spill] sm:$0xff]  ;;  %v5920_v31 = vld [vmem:[#allocation30_spill] sm:$0xff] }
 0x275   :  { %4576 = vrcp.f32 %v973_v2  ;;  %v5919_v2 = vld [vmem:[#allocation29_spill] sm:$0xff] }
 0x276   :  { %3809 = vmatpush1.bf16.msra.mxu0 %v5090_v38  ;;  %3841 = vmatpush1.bf16.msra.mxu1 %v5094_v41  ;;  %4578 = vrcp.f32 %v984_v19  ;;  %v5924_v19 = vld [vmem:[#allocation34_spill] sm:$0xff] }
 0x277   :  { %3811 = vmatprep.subr.bf16.mxu0 %v5096_v42  ;;  %3843 = vmatprep.subr.bf16.mxu1 %v5099_v48 }
 0x27a   :  { %3813 = vmatpush1.bf16.msra.mxu0 %v5104_v62  ;;  %3845 = vmatpush1.bf16.msra.mxu1 %v5885_v7 }
 0x27b   :  { %3815 = vmatprep.subr.bf16.mxu0 %v5886_v60  ;;  %3847 = vmatprep.subr.bf16.mxu1 %v5887_v6 }
 0x27d   :  { %v4573_v52 = vpop.eup %4572 }
 0x27e   :  { %v4575_v44 = vpop.eup %4574  ;;  %3817 = vmatpush1.bf16.msra.mxu0 %v5888_v43  ;;  %3849 = vmatpush1.bf16.msra.mxu1 %v5889_v36 }
 0x27f   :  { %v4577_v49 = vpop.eup %4576  ;;  %3819 = vmatprep.subr.bf16.mxu0 %v5890_v50  ;;  %3851 = vmatprep.subr.bf16.mxu1 %v5891_v37  ;;  %v988_v35 = vmul.f32 %v4575_v44, %v4573_v52  ;;  %v5921_v52 = vld [vmem:[#allocation31_spill] sm:$0xff]  ;;  %v5922_v44 = vld [vmem:[#allocation32_spill] sm:$0xff] }
 0x280   :  { %v987_v39 = vmul.f32 %v4577_v49, %v5236_v25  ;;  %v4579_v25 = vpop.eup %4578  ;;  %v5923_v49 = vld [vmem:[#allocation33_spill] sm:$0xff] }
 0x282   :  { %v5316_v40 = vadd.f32 %v988_v35, %v987_v39  ;;  %3821 = vmatpush1.bf16.msra.mxu0 %v5892_v55  ;;  %3853 = vmatpush1.bf16.msra.mxu1 %v5893_v3  ;;  %v5925_v39 = vld [vmem:[#allocation35_spill] sm:$0xff]  ;;  %v5926_v35 = vld [vmem:[#allocation36_spill] sm:$0xff] }
 0x283   :  { %3823 = vmatprep.subr.bf16.mxu0 %v5134_v23  ;;  %3855 = vmatprep.subr.bf16.mxu1 %v5894_v32 }
 0x284   :  { %4580 = vtanh.f32 %v5316_v40 }
 0x286   :  { %3825 = vmatpush1.bf16.msra.mxu0 %v5140_v45  ;;  %3857 = vmatpush1.bf16.msra.mxu1 %v5144_v0 }
 0x287   :  { %3827 = vmatprep.subr.bf16.mxu0 %v5146_v56  ;;  %3859 = vmatprep.subr.bf16.mxu1 %v5149_v10 }
 0x28a   :  { %3829 = vmatpush1.bf16.msra.mxu0 %v5152_v15  ;;  %3861 = vmatpush1.bf16.msra.mxu1 %v5156_v5 }
 0x28b   :  { %3831 = vmatprep.subr.bf16.mxu0 %v5158_v21  ;;  %3863 = vmatprep.subr.bf16.mxu1 %v5161_v47 }
 0x28e   :  { %v4581_v61 = vpop.eup %4580  ;;  %3833 = vmatpush1.bf16.msra.mxu0 %v5164_v59  ;;  %3865 = vmatpush1.bf16.msra.mxu1 %v5168_v58 }
 0x28f   :  { %v991_v1 = vmul.f32 %v4581_v61, %v4579_v25  ;;  %3867 = vmatprep.subr.bf16.mxu0 %v4979_v4  ;;  %3899 = vmatprep.subr.bf16.mxu1 %v4981_v8  ;;  %v5927_v25 = vld [vmem:[#allocation37_spill] sm:$0xff]  ;;  %v5928_v61 = vld [vmem:[#allocation38_spill] sm:$0xff] }
 0x291   :  { %995 = vst [vmem:[#allocation13 + $0x2] sm:$0x3] %v991_v1  ;;  %1230 = vmatmul.mubr.f32.vlgmr.msra.gmra.mrb[10].mxu0 %v991_v1  ;;  %1301 = vmatmul.mubr.f32.vlgmr.msra.gmra.mrb[10].mxu1 %v991_v1  ;;  %v5929_v1 = vld [vmem:[#allocation39_spill] sm:$0xff] }
 0x292   :  { %3869 = vmatpush1.bf16.msra.mxu0 %v4983_v9  ;;  %3901 = vmatpush1.bf16.msra.mxu1 %v4986_v13 }
 0x293   :  { %3871 = vmatprep.subr.bf16.mxu0 %v4990_v17  ;;  %3903 = vmatprep.subr.bf16.mxu1 %v4992_v18 }
 0x294   :  { %1462 = vmatprep.mubr.f32.mxu0 %v5883_v46  ;;  %1533 = vmatprep.mubr.f32.mxu1 %v5883_v46 }
 0x296   :  { %3873 = vmatpush1.bf16.msra.mxu0 %v4995_v22  ;;  %3905 = vmatpush1.bf16.msra.mxu1 %v4999_v26 }
 0x297   :  { %3875 = vmatprep.subr.bf16.mxu0 %v5001_v27  ;;  %3907 = vmatprep.subr.bf16.mxu1 %v5909_v63 }
 0x29a   :  { %3877 = vmatpush1.bf16.msra.mxu0 %v5910_v29  ;;  %3909 = vmatpush1.bf16.msra.mxu1 %v5911_v20 }
 0x29b   :  { %3879 = vmatprep.subr.bf16.mxu0 %v5912_v53  ;;  %3911 = vmatprep.subr.bf16.mxu1 %v5913_v34 }
 0x29e   :  { %3881 = vmatpush1.bf16.msra.mxu0 %v5914_v33  ;;  %3913 = vmatpush1.bf16.msra.mxu1 %v5915_v54 }
 0x29f   :  { %3883 = vmatprep.subr.bf16.mxu0 %v5916_v28  ;;  %3915 = vmatprep.subr.bf16.mxu1 %v5917_v16  ;;  %v997_v28 = vld [vmem:[#allocation6 + $0x10] sm:$0xff] }
 0x2a2   :  { %3885 = vmatpush1.bf16.msra.mxu0 %v5918_v51  ;;  %3917 = vmatpush1.bf16.msra.mxu1 %v5919_v2  ;;  %v5930_v2 = vld [vmem:[#allocation40_spill] sm:$0xff] }
 0x2a3   :  { %3887 = vmatprep.subr.bf16.mxu0 %v5920_v31  ;;  %3919 = vmatprep.subr.bf16.mxu1 %v5921_v52  ;;  %v5931_v31 = vld [vmem:[#allocation41_spill] sm:$0xff]  ;;  %v5932_v52 = vld [vmem:[#allocation42_spill] sm:$0xff] }
 0x2a6   :  { %3889 = vmatpush1.bf16.msra.mxu0 %v5922_v44  ;;  %3921 = vmatpush1.bf16.msra.mxu1 %v5923_v49  ;;  %v5933_v44 = vld [vmem:[#allocation43_spill] sm:$0xff] }
 0x2a7   :  { %3891 = vmatprep.subr.bf16.mxu0 %v5924_v19  ;;  %3923 = vmatprep.subr.bf16.mxu1 %v5925_v39 }
 0x2aa   :  { %3893 = vmatpush1.bf16.msra.mxu0 %v5926_v35  ;;  %3925 = vmatpush1.bf16.msra.mxu1 %v5927_v25 }
 0x2ab   :  { %3895 = vmatprep.subr.bf16.mxu0 %v5928_v61  ;;  %3927 = vmatprep.subr.bf16.mxu1 %v5929_v1 }
 0x2ae   :  { %3897 = vmatpush1.bf16.msra.mxu0 %v5930_v2  ;;  %3929 = vmatpush1.bf16.msra.mxu1 %v5931_v31 }
 0x2af   :  { %3931 = vmatprep.subr.bf16.mxu0 %v5932_v52  ;;  %3963 = vmatprep.subr.bf16.mxu1 %v5933_v44 }
 0x344   :  { %v1064_v49 = vpop.f32.mrb[8].mxu0  ;;  %v1135_v19 = vpop.f32.mrb[8].mxu1 }
 0x345   :  { %v1066_v51 = vpop.f32.mrb[9].mxu0  ;;  %v1137_v39 = vpop.f32.mrb[9].mxu1 }
 0x346   :  { %v1144_v16 = vcombine.low %v1064_v49, %v1066_v51  ;;  %v1145_v35 = vcombine.low %v1135_v19, %v1137_v39 }
 0x348   :  { %v1152_v25 = vrot.slane %v1144_v16, %v5908_v57  ;;  %v1159_v61 = vrot.slane %v1145_v35, %v5908_v57 }
 0x34a   :  { %v1160_v1 = vcombine.low %v1152_v25, %v1159_v61  ;;  %v1164_v25 = vld [vmem:[#allocation9 + $0x10] sm:$0xff] }
 0x34c   :  { %v1162_v54 = vadd.f32 %v1160_v1, %v997_v28 }
 0x34e   :  { %v3446_v2 = vmul.f32 -1.442695, %v1162_v54  ;;  %v1337_v33 = vrot.slane %v1162_v54, 2  ;;  %v1348_v52 = vrot.slane %v1162_v54, 6  ;;  %v1345_v53 = vrot.slane %v1162_v54, 4 }
 0x350   :  { %4582 = vpow2.f32 %v3446_v2  ;;  %v3447_v31 = vmul.f32 -1.442695, %v1337_v33  ;;  %v3448_v44 = vmul.f32 -1.442695, %v1348_v52 }
 0x352   :  { %4584 = vpow2.f32 %v3447_v31 }
 0x353   :  { %4586 = vpow2.f32 %v3448_v44 }
 0x35a   :  { %v4583_v34 = vpop.eup %4582 }
 0x35b   :  { %v1333_v20 = vadd.f32 1.0, %v4583_v34 }
 0x35c   :  { %v4585_v29 = vpop.eup %4584 }
 0x35d   :  { %4588 = vrcp.f32 %v1333_v20  ;;  %v1342_v51 = vadd.f32 1.0, %v4585_v29  ;;  %v4587_v39 = vpop.eup %4586 }
 0x35e   :  { %4590 = vtanh.f32 %v1345_v53  ;;  %v1353_v44 = vadd.f32 1.0, %v4587_v39 }
 0x35f   :  { %4592 = vrcp.f32 %v1342_v51 }
 0x360   :  { %4594 = vrcp.f32 %v1353_v44 }
 0x364   :  { %v1231_v16 = vpop.f32.mrb[10].mxu0  ;;  %v1302_v49 = vpop.f32.mrb[10].mxu1 }
 0x365   :  { %v1233_v19 = vpop.f32.mrb[11].mxu0  ;;  %v1304_v28 = vpop.f32.mrb[11].mxu1 }
 0x366   :  { %v1311_v35 = vcombine.low %v1231_v16, %v1233_v19  ;;  %v1312_v2 = vcombine.low %v1302_v49, %v1304_v28 }
 0x367   :  { %v4589_v33 = vpop.eup %4588 }
 0x368   :  { %v4591_v31 = vpop.eup %4590  ;;  %v1319_v52 = vrot.slane %v1311_v35, %v5908_v57  ;;  %v1326_v54 = vrot.slane %v1312_v2, %v5908_v57 }
 0x369   :  { %v4593_v34 = vpop.eup %4592  ;;  %v1357_v53 = vmul.f32 %v4591_v31, %v4589_v33 }
 0x36a   :  { %v1327_v20 = vcombine.low %v1319_v52, %v1326_v54  ;;  %v1356_v29 = vmul.f32 %v4593_v34, %v5294_v30  ;;  %v4595_v19 = vpop.eup %4594 }
 0x36c   :  { %v1329_v61 = vadd.f32 %v1327_v20, %v1164_v25  ;;  %v5374_v1 = vadd.f32 %v1357_v53, %v1356_v29 }
 0x36e   :  { %v3449_v51 = vmul.f32 -1.442695, %v1329_v61  ;;  %v1368_v63 = vrot.slane %v1329_v61, 2  ;;  %4596 = vtanh.f32 %v5374_v1  ;;  %v1379_v49 = vrot.slane %v1329_v61, 6 }
 0x36f   :  { %v1376_v2 = vrot.slane %v1329_v61, 4 }
 0x370   :  { %4598 = vpow2.f32 %v3449_v51  ;;  %v3450_v16 = vmul.f32 -1.442695, %v1368_v63  ;;  %v3451_v28 = vmul.f32 -1.442695, %v1379_v49  ;;  %v5935_v49 = vld [vmem:[#allocation20_spill] sm:$0xff] }
 0x372   :  { %4600 = vpow2.f32 %v3450_v16  ;;  %v5934_v16 = vld [vmem:[#allocation19_spill] sm:$0xff] }
 0x373   :  { %4602 = vpow2.f32 %v3451_v28  ;;  %v5937_v28 = vld [vmem:[#allocation22_spill] sm:$0xff] }
 0x378   :  { %v4597_v35 = vpop.eup %4596 }
 0x379   :  { %v1360_v52 = vmul.f32 %v4597_v35, %v4595_v19  ;;  %v5936_v19 = vld [vmem:[#allocation21_spill] sm:$0xff]  ;;  %v5938_v35 = vld [vmem:[#allocation23_spill] sm:$0xff] }
 0x37a   :  { %v4599_v39 = vpop.eup %4598 }
 0x37b   :  { %v1364_v30 = vadd.f32 1.0, %v4599_v39  ;;  %1393 = vst [vmem:[#allocation12 + $0x4] sm:$0x3] %v1360_v52  ;;  %1463 = vmatmul.mubr.f32.vlgmr.msra.gmra.mrb[12].mxu0 %v1360_v52  ;;  %1534 = vmatmul.mubr.f32.vlgmr.msra.gmra.mrb[12].mxu1 %v1360_v52  ;;  %v5939_v39 = vld [vmem:[#allocation24_spill] sm:$0xff]  ;;  %v5941_v52 = vld [vmem:[#allocation26_spill] sm:$0xff] }
 0x37c   :  { %v4601_v33 = vpop.eup %4600  ;;  %3933 = vmatpush1.bf16.msra.mxu0 %v5078_v11  ;;  %3965 = vmatpush1.bf16.msra.mxu1 %v5082_v12 }
 0x37d   :  { %4604 = vrcp.f32 %v1364_v30  ;;  %v1373_v31 = vadd.f32 1.0, %v4601_v33  ;;  %3935 = vmatprep.subr.bf16.mxu0 %v5084_v14  ;;  %3967 = vmatprep.subr.bf16.mxu1 %v5087_v24  ;;  %v4603_v63 = vpop.eup %4602  ;;  %v5942_v30 = vld [vmem:[#allocation27_spill] sm:$0xff]  ;;  %v5943_v33 = vld [vmem:[#allocation28_spill] sm:$0xff] }
 0x37e   :  { %4606 = vtanh.f32 %v1376_v2  ;;  %1629 = vmatprep.mubr.f32.mxu0 %v5883_v46  ;;  %1700 = vmatprep.mubr.f32.mxu1 %v5883_v46  ;;  %v1384_v44 = vadd.f32 1.0, %v4603_v63  ;;  %v5940_v2 = vld [vmem:[#allocation25_spill] sm:$0xff]  ;;  %v5945_v63 = vld [vmem:[#allocation30_spill] sm:$0xff] }
 0x37f   :  { %4608 = vrcp.f32 %v1373_v31  ;;  %v5944_v31 = vld [vmem:[#allocation29_spill] sm:$0xff] }
 0x380   :  { %3937 = vmatpush1.bf16.msra.mxu0 %v5090_v38  ;;  %3969 = vmatpush1.bf16.msra.mxu1 %v5094_v41  ;;  %4610 = vrcp.f32 %v1384_v44  ;;  %v5949_v44 = vld [vmem:[#allocation34_spill] sm:$0xff] }
 0x381   :  { %3939 = vmatprep.subr.bf16.mxu0 %v5096_v42  ;;  %3971 = vmatprep.subr.bf16.mxu1 %v5099_v48 }
 0x384   :  { %3941 = vmatpush1.bf16.msra.mxu0 %v5104_v62  ;;  %3973 = vmatpush1.bf16.msra.mxu1 %v5885_v7 }
 0x385   :  { %3943 = vmatprep.subr.bf16.mxu0 %v5886_v60  ;;  %3975 = vmatprep.subr.bf16.mxu1 %v5887_v6 }
 0x387   :  { %v4605_v54 = vpop.eup %4604 }
 0x388   :  { %v4607_v34 = vpop.eup %4606  ;;  %3945 = vmatpush1.bf16.msra.mxu0 %v5888_v43  ;;  %3977 = vmatpush1.bf16.msra.mxu1 %v5889_v36 }
 0x389   :  { %v4609_v25 = vpop.eup %4608  ;;  %3947 = vmatprep.subr.bf16.mxu0 %v5890_v50  ;;  %3979 = vmatprep.subr.bf16.mxu1 %v5891_v37  ;;  %v1388_v29 = vmul.f32 %v4607_v34, %v4605_v54  ;;  %v5946_v54 = vld [vmem:[#allocation31_spill] sm:$0xff]  ;;  %v5947_v34 = vld [vmem:[#allocation32_spill] sm:$0xff] }
 0x38a   :  { %v1387_v20 = vmul.f32 %v4609_v25, %v5316_v40  ;;  %v4611_v40 = vpop.eup %4610  ;;  %v5948_v25 = vld [vmem:[#allocation33_spill] sm:$0xff] }
 0x38c   :  { %v5396_v53 = vadd.f32 %v1388_v29, %v1387_v20  ;;  %3949 = vmatpush1.bf16.msra.mxu0 %v5892_v55  ;;  %3981 = vmatpush1.bf16.msra.mxu1 %v5893_v3  ;;  %v5950_v20 = vld [vmem:[#allocation35_spill] sm:$0xff]  ;;  %v5951_v29 = vld [vmem:[#allocation36_spill] sm:$0xff] }
 0x38d   :  { %3951 = vmatprep.subr.bf16.mxu0 %v5134_v23  ;;  %3983 = vmatprep.subr.bf16.mxu1 %v5894_v32 }
 0x38e   :  { %4612 = vtanh.f32 %v5396_v53 }
 0x390   :  { %3953 = vmatpush1.bf16.msra.mxu0 %v5140_v45  ;;  %3985 = vmatpush1.bf16.msra.mxu1 %v5144_v0 }
 0x391   :  { %3955 = vmatprep.subr.bf16.mxu0 %v5146_v56  ;;  %3987 = vmatprep.subr.bf16.mxu1 %v5149_v10 }
 0x394   :  { %3957 = vmatpush1.bf16.msra.mxu0 %v5152_v15  ;;  %3989 = vmatpush1.bf16.msra.mxu1 %v5156_v5 }
 0x395   :  { %3959 = vmatprep.subr.bf16.mxu0 %v5158_v21  ;;  %3991 = vmatprep.subr.bf16.mxu1 %v5161_v47 }
 0x398   :  { %v4613_v61 = vpop.eup %4612  ;;  %3961 = vmatpush1.bf16.msra.mxu0 %v5164_v59  ;;  %3993 = vmatpush1.bf16.msra.mxu1 %v5168_v58 }
 0x399   :  { %v1391_v51 = vmul.f32 %v4613_v61, %v4611_v40  ;;  %3995 = vmatprep.subr.bf16.mxu0 %v4979_v4  ;;  %4027 = vmatprep.subr.bf16.mxu1 %v4981_v8  ;;  %v5952_v40 = vld [vmem:[#allocation37_spill] sm:$0xff]  ;;  %v5953_v61 = vld [vmem:[#allocation38_spill] sm:$0xff] }
 0x39b   :  { %1395 = vst [vmem:[#allocation13 + $0x4] sm:$0x3] %v1391_v51  ;;  %1630 = vmatmul.mubr.f32.vlgmr.msra.gmra.mrb[14].mxu0 %v1391_v51  ;;  %1701 = vmatmul.mubr.f32.vlgmr.msra.gmra.mrb[14].mxu1 %v1391_v51  ;;  %v5954_v51 = vld [vmem:[#allocation39_spill] sm:$0xff] }
 0x39c   :  { %3997 = vmatpush1.bf16.msra.mxu0 %v4983_v9  ;;  %4029 = vmatpush1.bf16.msra.mxu1 %v4986_v13 }
 0x39d   :  { %3999 = vmatprep.subr.bf16.mxu0 %v4990_v17  ;;  %4031 = vmatprep.subr.bf16.mxu1 %v4992_v18 }
 0x39e   :  { %1862 = vmatprep.mubr.f32.mxu0 %v5883_v46  ;;  %1933 = vmatprep.mubr.f32.mxu1 %v5883_v46 }
 0x3a0   :  { %4001 = vmatpush1.bf16.msra.mxu0 %v4995_v22  ;;  %4033 = vmatpush1.bf16.msra.mxu1 %v4999_v26 }
 0x3a1   :  { %4003 = vmatprep.subr.bf16.mxu0 %v5001_v27  ;;  %4035 = vmatprep.subr.bf16.mxu1 %v5934_v16 }
 0x3a4   :  { %4005 = vmatpush1.bf16.msra.mxu0 %v5935_v49  ;;  %4037 = vmatpush1.bf16.msra.mxu1 %v5936_v19 }
 0x3a5   :  { %4007 = vmatprep.subr.bf16.mxu0 %v5937_v28  ;;  %4039 = vmatprep.subr.bf16.mxu1 %v5938_v35 }
 0x3a8   :  { %4009 = vmatpush1.bf16.msra.mxu0 %v5939_v39  ;;  %4041 = vmatpush1.bf16.msra.mxu1 %v5940_v2 }
 0x3a9   :  { %4011 = vmatprep.subr.bf16.mxu0 %v5941_v52  ;;  %4043 = vmatprep.subr.bf16.mxu1 %v5942_v30  ;;  %v1397_v52 = vld [vmem:[#allocation6 + $0x18] sm:$0xff] }
 0x3ac   :  { %4013 = vmatpush1.bf16.msra.mxu0 %v5943_v33  ;;  %4045 = vmatpush1.bf16.msra.mxu1 %v5944_v31  ;;  %v5955_v31 = vld [vmem:[#allocation40_spill] sm:$0xff] }
 0x3ad   :  { %4015 = vmatprep.subr.bf16.mxu0 %v5945_v63  ;;  %4047 = vmatprep.subr.bf16.mxu1 %v5946_v54  ;;  %v5956_v63 = vld [vmem:[#allocation41_spill] sm:$0xff]  ;;  %v5957_v54 = vld [vmem:[#allocation42_spill] sm:$0xff] }
 0x3b0   :  { %4017 = vmatpush1.bf16.msra.mxu0 %v5947_v34  ;;  %4049 = vmatpush1.bf16.msra.mxu1 %v5948_v25  ;;  %v5958_v34 = vld [vmem:[#allocation43_spill] sm:$0xff] }
 0x3b1   :  { %4019 = vmatprep.subr.bf16.mxu0 %v5949_v44  ;;  %4051 = vmatprep.subr.bf16.mxu1 %v5950_v20 }
 0x3b4   :  { %4021 = vmatpush1.bf16.msra.mxu0 %v5951_v29  ;;  %4053 = vmatpush1.bf16.msra.mxu1 %v5952_v40 }
 0x3b5   :  { %4023 = vmatprep.subr.bf16.mxu0 %v5953_v61  ;;  %4055 = vmatprep.subr.bf16.mxu1 %v5954_v51 }
 0x3b8   :  { %4025 = vmatpush1.bf16.msra.mxu0 %v5955_v31  ;;  %4057 = vmatpush1.bf16.msra.mxu1 %v5956_v63 }
 0x3b9   :  { %4059 = vmatprep.subr.bf16.mxu0 %v5957_v54  ;;  %4091 = vmatprep.subr.bf16.mxu1 %v5958_v34 }
 0x44e   :  { %v1464_v25 = vpop.f32.mrb[12].mxu0  ;;  %v1535_v44 = vpop.f32.mrb[12].mxu1 }
 0x44f   :  { %v1466_v33 = vpop.f32.mrb[13].mxu0  ;;  %v1537_v20 = vpop.f32.mrb[13].mxu1 }
 0x450   :  { %v1544_v30 = vcombine.low %v1464_v25, %v1466_v33  ;;  %v1545_v29 = vcombine.low %v1535_v44, %v1537_v20 }
 0x452   :  { %v1552_v40 = vrot.slane %v1544_v30, %v5908_v57  ;;  %v1559_v61 = vrot.slane %v1545_v29, %v5908_v57 }
 0x454   :  { %v1560_v51 = vcombine.low %v1552_v40, %v1559_v61  ;;  %v1564_v40 = vld [vmem:[#allocation9 + $0x18] sm:$0xff] }
 0x456   :  { %v1562_v2 = vadd.f32 %v1560_v51, %v1397_v52 }
 0x458   :  { %v3452_v31 = vmul.f32 -1.442695, %v1562_v2  ;;  %v1737_v39 = vrot.slane %v1562_v2, 2  ;;  %v1748_v54 = vrot.slane %v1562_v2, 6  ;;  %v1745_v28 = vrot.slane %v1562_v2, 4 }
 0x45a   :  { %4614 = vpow2.f32 %v3452_v31  ;;  %v3453_v63 = vmul.f32 -1.442695, %v1737_v39  ;;  %v3454_v34 = vmul.f32 -1.442695, %v1748_v54 }
 0x45c   :  { %4616 = vpow2.f32 %v3453_v63 }
 0x45d   :  { %4618 = vpow2.f32 %v3454_v34 }
 0x464   :  { %v4615_v35 = vpop.eup %4614 }
 0x465   :  { %v1733_v19 = vadd.f32 1.0, %v4615_v35 }
 0x466   :  { %v4617_v49 = vpop.eup %4616 }
 0x467   :  { %4620 = vrcp.f32 %v1733_v19  ;;  %v1742_v33 = vadd.f32 1.0, %v4617_v49  ;;  %v4619_v20 = vpop.eup %4618 }
 0x468   :  { %4622 = vtanh.f32 %v1745_v28  ;;  %v1753_v34 = vadd.f32 1.0, %v4619_v20 }
 0x469   :  { %4624 = vrcp.f32 %v1742_v33 }
 0x46a   :  { %4626 = vrcp.f32 %v1753_v34 }
 0x46e   :  { %v1631_v30 = vpop.f32.mrb[14].mxu0  ;;  %v1702_v25 = vpop.f32.mrb[14].mxu1 }
 0x46f   :  { %v1633_v44 = vpop.f32.mrb[15].mxu0  ;;  %v1704_v52 = vpop.f32.mrb[15].mxu1 }
 0x470   :  { %v1711_v29 = vcombine.low %v1631_v30, %v1633_v44  ;;  %v1712_v31 = vcombine.low %v1702_v25, %v1704_v52 }
 0x471   :  { %v4621_v39 = vpop.eup %4620 }
 0x472   :  { %v4623_v63 = vpop.eup %4622  ;;  %v1719_v54 = vrot.slane %v1711_v29, %v5908_v57  ;;  %v1726_v2 = vrot.slane %v1712_v31, %v5908_v57 }
 0x473   :  { %v4625_v35 = vpop.eup %4624  ;;  %v1757_v28 = vmul.f32 %v4623_v63, %v4621_v39 }
 0x474   :  { %v1727_v19 = vcombine.low %v1719_v54, %v1726_v2  ;;  %v1756_v49 = vmul.f32 %v4625_v35, %v5374_v1  ;;  %v4627_v44 = vpop.eup %4626 }
 0x476   :  { %v1729_v61 = vadd.f32 %v1727_v19, %v1564_v40  ;;  %v5454_v51 = vadd.f32 %v1757_v28, %v1756_v49 }
 0x478   :  { %v3455_v33 = vmul.f32 -1.442695, %v1729_v61  ;;  %v1768_v16 = vrot.slane %v1729_v61, 2  ;;  %4628 = vtanh.f32 %v5454_v51  ;;  %v1779_v25 = vrot.slane %v1729_v61, 6 }
 0x479   :  { %v1776_v31 = vrot.slane %v1729_v61, 4 }
 0x47a   :  { %4630 = vpow2.f32 %v3455_v33  ;;  %v3456_v30 = vmul.f32 -1.442695, %v1768_v16  ;;  %v3457_v52 = vmul.f32 -1.442695, %v1779_v25  ;;  %v5960_v25 = vld [vmem:[#allocation20_spill] sm:$0xff] }
 0x47c   :  { %4632 = vpow2.f32 %v3456_v30  ;;  %v5959_v30 = vld [vmem:[#allocation19_spill] sm:$0xff] }
 0x47d   :  { %4634 = vpow2.f32 %v3457_v52  ;;  %v5962_v52 = vld [vmem:[#allocation22_spill] sm:$0xff] }
 0x482   :  { %v4629_v29 = vpop.eup %4628 }
 0x483   :  { %v1760_v54 = vmul.f32 %v4629_v29, %v4627_v44  ;;  %v5961_v44 = vld [vmem:[#allocation21_spill] sm:$0xff]  ;;  %v5963_v29 = vld [vmem:[#allocation23_spill] sm:$0xff] }
 0x484   :  { %v4631_v20 = vpop.eup %4630 }
 0x485   :  { %v1764_v1 = vadd.f32 1.0, %v4631_v20  ;;  %1793 = vst [vmem:[#allocation12 + $0x6] sm:$0x3] %v1760_v54  ;;  %1863 = vmatmul.mubr.f32.vlgmr.msra.gmra.mrb[16].mxu0 %v1760_v54  ;;  %1934 = vmatmul.mubr.f32.vlgmr.msra.gmra.mrb[16].mxu1 %v1760_v54  ;;  %v5964_v20 = vld [vmem:[#allocation24_spill] sm:$0xff]  ;;  %v5966_v54 = vld [vmem:[#allocation26_spill] sm:$0xff] }
 0x486   :  { %v4633_v39 = vpop.eup %4632  ;;  %4061 = vmatpush1.bf16.msra.mxu0 %v5078_v11  ;;  %4093 = vmatpush1.bf16.msra.mxu1 %v5082_v12 }
 0x487   :  { %4636 = vrcp.f32 %v1764_v1  ;;  %v1773_v63 = vadd.f32 1.0, %v4633_v39  ;;  %4063 = vmatprep.subr.bf16.mxu0 %v5084_v14  ;;  %4095 = vmatprep.subr.bf16.mxu1 %v5087_v24  ;;  %v4635_v16 = vpop.eup %4634  ;;  %v5967_v1 = vld [vmem:[#allocation27_spill] sm:$0xff]  ;;  %v5968_v39 = vld [vmem:[#allocation28_spill] sm:$0xff] }
 0x488   :  { %4638 = vtanh.f32 %v1776_v31  ;;  %2029 = vmatprep.mubr.f32.mxu0 %v5883_v46  ;;  %2100 = vmatprep.mubr.f32.mxu1 %v5883_v46  ;;  %v1784_v34 = vadd.f32 1.0, %v4635_v16  ;;  %v5965_v31 = vld [vmem:[#allocation25_spill] sm:$0xff]  ;;  %v5970_v16 = vld [vmem:[#allocation30_spill] sm:$0xff] }
 0x489   :  { %4640 = vrcp.f32 %v1773_v63  ;;  %v5969_v63 = vld [vmem:[#allocation29_spill] sm:$0xff] }
 0x48a   :  { %4065 = vmatpush1.bf16.msra.mxu0 %v5090_v38  ;;  %4097 = vmatpush1.bf16.msra.mxu1 %v5094_v41  ;;  %4642 = vrcp.f32 %v1784_v34  ;;  %v5974_v34 = vld [vmem:[#allocation34_spill] sm:$0xff] }
 0x48b   :  { %4067 = vmatprep.subr.bf16.mxu0 %v5096_v42  ;;  %4099 = vmatprep.subr.bf16.mxu1 %v5099_v48 }
 0x48e   :  { %4069 = vmatpush1.bf16.msra.mxu0 %v5104_v62  ;;  %4101 = vmatpush1.bf16.msra.mxu1 %v5885_v7 }
 0x48f   :  { %4071 = vmatprep.subr.bf16.mxu0 %v5886_v60  ;;  %4103 = vmatprep.subr.bf16.mxu1 %v5887_v6 }
 0x491   :  { %v4637_v2 = vpop.eup %4636 }
 0x492   :  { %v4639_v35 = vpop.eup %4638  ;;  %4073 = vmatpush1.bf16.msra.mxu0 %v5888_v43  ;;  %4105 = vmatpush1.bf16.msra.mxu1 %v5889_v36 }
 0x493   :  { %v4641_v40 = vpop.eup %4640  ;;  %4075 = vmatprep.subr.bf16.mxu0 %v5890_v50  ;;  %4107 = vmatprep.subr.bf16.mxu1 %v5891_v37  ;;  %v1788_v49 = vmul.f32 %v4639_v35, %v4637_v2  ;;  %v5971_v2 = vld [vmem:[#allocation31_spill] sm:$0xff]  ;;  %v5972_v35 = vld [vmem:[#allocation32_spill] sm:$0xff] }
 0x494   :  { %v1787_v19 = vmul.f32 %v4641_v40, %v5396_v53  ;;  %v4643_v53 = vpop.eup %4642  ;;  %v5973_v40 = vld [vmem:[#allocation33_spill] sm:$0xff] }
 0x496   :  { %v5476_v28 = vadd.f32 %v1788_v49, %v1787_v19  ;;  %4077 = vmatpush1.bf16.msra.mxu0 %v5892_v55  ;;  %4109 = vmatpush1.bf16.msra.mxu1 %v5893_v3  ;;  %v5975_v19 = vld [vmem:[#allocation35_spill] sm:$0xff]  ;;  %v5976_v49 = vld [vmem:[#allocation36_spill] sm:$0xff] }
 0x497   :  { %4079 = vmatprep.subr.bf16.mxu0 %v5134_v23  ;;  %4111 = vmatprep.subr.bf16.mxu1 %v5894_v32 }
 0x498   :  { %4644 = vtanh.f32 %v5476_v28 }
 0x49a   :  { %4081 = vmatpush1.bf16.msra.mxu0 %v5140_v45  ;;  %4113 = vmatpush1.bf16.msra.mxu1 %v5144_v0 }
 0x49b   :  { %4083 = vmatprep.subr.bf16.mxu0 %v5146_v56  ;;  %4115 = vmatprep.subr.bf16.mxu1 %v5149_v10 }
 0x49e   :  { %4085 = vmatpush1.bf16.msra.mxu0 %v5152_v15  ;;  %4117 = vmatpush1.bf16.msra.mxu1 %v5156_v5 }
 0x49f   :  { %4087 = vmatprep.subr.bf16.mxu0 %v5158_v21  ;;  %4119 = vmatprep.subr.bf16.mxu1 %v5161_v47 }
 0x4a2   :  { %v4645_v61 = vpop.eup %4644  ;;  %4089 = vmatpush1.bf16.msra.mxu0 %v5164_v59  ;;  %4121 = vmatpush1.bf16.msra.mxu1 %v5168_v58 }
 0x4a3   :  { %v1791_v33 = vmul.f32 %v4645_v61, %v4643_v53  ;;  %4123 = vmatprep.subr.bf16.mxu0 %v4979_v4  ;;  %4155 = vmatprep.subr.bf16.mxu1 %v4981_v8  ;;  %v5977_v53 = vld [vmem:[#allocation37_spill] sm:$0xff]  ;;  %v5978_v61 = vld [vmem:[#allocation38_spill] sm:$0xff] }
 0x4a5   :  { %1795 = vst [vmem:[#allocation13 + $0x6] sm:$0x3] %v1791_v33  ;;  %2030 = vmatmul.mubr.f32.vlgmr.msra.gmra.mrb[18].mxu0 %v1791_v33  ;;  %2101 = vmatmul.mubr.f32.vlgmr.msra.gmra.mrb[18].mxu1 %v1791_v33  ;;  %v5979_v33 = vld [vmem:[#allocation39_spill] sm:$0xff] }
 0x4a6   :  { %4125 = vmatpush1.bf16.msra.mxu0 %v4983_v9  ;;  %4157 = vmatpush1.bf16.msra.mxu1 %v4986_v13 }
 0x4a7   :  { %4127 = vmatprep.subr.bf16.mxu0 %v4990_v17  ;;  %4159 = vmatprep.subr.bf16.mxu1 %v4992_v18 }
 0x4a8   :  { %2262 = vmatprep.mubr.f32.mxu0 %v5883_v46  ;;  %2333 = vmatprep.mubr.f32.mxu1 %v5883_v46 }
 0x4aa   :  { %4129 = vmatpush1.bf16.msra.mxu0 %v4995_v22  ;;  %4161 = vmatpush1.bf16.msra.mxu1 %v4999_v26 }
 0x4ab   :  { %4131 = vmatprep.subr.bf16.mxu0 %v5001_v27  ;;  %4163 = vmatprep.subr.bf16.mxu1 %v5959_v30 }
 0x4ae   :  { %4133 = vmatpush1.bf16.msra.mxu0 %v5960_v25  ;;  %4165 = vmatpush1.bf16.msra.mxu1 %v5961_v44 }
 0x4af   :  { %4135 = vmatprep.subr.bf16.mxu0 %v5962_v52  ;;  %4167 = vmatprep.subr.bf16.mxu1 %v5963_v29 }
 0x4b2   :  { %4137 = vmatpush1.bf16.msra.mxu0 %v5964_v20  ;;  %4169 = vmatpush1.bf16.msra.mxu1 %v5965_v31 }
 0x4b3   :  { %4139 = vmatprep.subr.bf16.mxu0 %v5966_v54  ;;  %4171 = vmatprep.subr.bf16.mxu1 %v5967_v1  ;;  %v1797_v54 = vld [vmem:[#allocation6 + $0x20] sm:$0xff] }
 0x4b6   :  { %4141 = vmatpush1.bf16.msra.mxu0 %v5968_v39  ;;  %4173 = vmatpush1.bf16.msra.mxu1 %v5969_v63  ;;  %v5980_v63 = vld [vmem:[#allocation40_spill] sm:$0xff] }
 0x4b7   :  { %4143 = vmatprep.subr.bf16.mxu0 %v5970_v16  ;;  %4175 = vmatprep.subr.bf16.mxu1 %v5971_v2  ;;  %v5981_v16 = vld [vmem:[#allocation41_spill] sm:$0xff]  ;;  %v5982_v2 = vld [vmem:[#allocation42_spill] sm:$0xff] }
 0x4ba   :  { %4145 = vmatpush1.bf16.msra.mxu0 %v5972_v35  ;;  %4177 = vmatpush1.bf16.msra.mxu1 %v5973_v40  ;;  %v5983_v35 = vld [vmem:[#allocation43_spill] sm:$0xff] }
 0x4bb   :  { %4147 = vmatprep.subr.bf16.mxu0 %v5974_v34  ;;  %4179 = vmatprep.subr.bf16.mxu1 %v5975_v19 }
 0x4be   :  { %4149 = vmatpush1.bf16.msra.mxu0 %v5976_v49  ;;  %4181 = vmatpush1.bf16.msra.mxu1 %v5977_v53 }
 0x4bf   :  { %4151 = vmatprep.subr.bf16.mxu0 %v5978_v61  ;;  %4183 = vmatprep.subr.bf16.mxu1 %v5979_v33 }
 0x4c2   :  { %4153 = vmatpush1.bf16.msra.mxu0 %v5980_v63  ;;  %4185 = vmatpush1.bf16.msra.mxu1 %v5981_v16 }
 0x4c3   :  { %4187 = vmatprep.subr.bf16.mxu0 %v5982_v2  ;;  %4219 = vmatprep.subr.bf16.mxu1 %v5983_v35 }
 0x558   :  { %v1864_v40 = vpop.f32.mrb[16].mxu0  ;;  %v1935_v34 = vpop.f32.mrb[16].mxu1 }
 0x559   :  { %v1866_v39 = vpop.f32.mrb[17].mxu0  ;;  %v1937_v19 = vpop.f32.mrb[17].mxu1 }
 0x55a   :  { %v1944_v1 = vcombine.low %v1864_v40, %v1866_v39  ;;  %v1945_v49 = vcombine.low %v1935_v34, %v1937_v19 }
 0x55c   :  { %v1952_v53 = vrot.slane %v1944_v1, %v5908_v57  ;;  %v1959_v61 = vrot.slane %v1945_v49, %v5908_v57 }
 0x55e   :  { %v1960_v33 = vcombine.low %v1952_v53, %v1959_v61  ;;  %v1964_v53 = vld [vmem:[#allocation9 + $0x20] sm:$0xff] }
 0x560   :  { %v1962_v31 = vadd.f32 %v1960_v33, %v1797_v54 }
 0x562   :  { %v3458_v63 = vmul.f32 -1.442695, %v1962_v31  ;;  %v2137_v20 = vrot.slane %v1962_v31, 2  ;;  %v2148_v2 = vrot.slane %v1962_v31, 6  ;;  %v2145_v52 = vrot.slane %v1962_v31, 4 }
 0x564   :  { %4646 = vpow2.f32 %v3458_v63  ;;  %v3459_v16 = vmul.f32 -1.442695, %v2137_v20  ;;  %v3460_v35 = vmul.f32 -1.442695, %v2148_v2 }
 0x566   :  { %4648 = vpow2.f32 %v3459_v16 }
 0x567   :  { %4650 = vpow2.f32 %v3460_v35 }
 0x56e   :  { %v4647_v29 = vpop.eup %4646 }
 0x56f   :  { %v2133_v44 = vadd.f32 1.0, %v4647_v29 }
 0x570   :  { %v4649_v25 = vpop.eup %4648 }
 0x571   :  { %4652 = vrcp.f32 %v2133_v44  ;;  %v2142_v39 = vadd.f32 1.0, %v4649_v25  ;;  %v4651_v19 = vpop.eup %4650 }
 0x572   :  { %4654 = vtanh.f32 %v2145_v52  ;;  %v2153_v35 = vadd.f32 1.0, %v4651_v19 }
 0x573   :  { %4656 = vrcp.f32 %v2142_v39 }
 0x574   :  { %4658 = vrcp.f32 %v2153_v35 }
 0x578   :  { %v2031_v1 = vpop.f32.mrb[18].mxu0  ;;  %v2102_v40 = vpop.f32.mrb[18].mxu1 }
 0x579   :  { %v2033_v34 = vpop.f32.mrb[19].mxu0  ;;  %v2104_v54 = vpop.f32.mrb[19].mxu1 }
 0x57a   :  { %v2111_v49 = vcombine.low %v2031_v1, %v2033_v34  ;;  %v2112_v63 = vcombine.low %v2102_v40, %v2104_v54 }
 0x57b   :  { %v4653_v20 = vpop.eup %4652 }
 0x57c   :  { %v4655_v16 = vpop.eup %4654  ;;  %v2119_v2 = vrot.slane %v2111_v49, %v5908_v57  ;;  %v2126_v31 = vrot.slane %v2112_v63, %v5908_v57 }
 0x57d   :  { %v4657_v29 = vpop.eup %4656  ;;  %v2157_v52 = vmul.f32 %v4655_v16, %v4653_v20 }
 0x57e   :  { %v2127_v44 = vcombine.low %v2119_v2, %v2126_v31  ;;  %v2156_v25 = vmul.f32 %v4657_v29, %v5454_v51  ;;  %v4659_v34 = vpop.eup %4658 }
 0x580   :  { %v2129_v61 = vadd.f32 %v2127_v44, %v1964_v53  ;;  %v5534_v33 = vadd.f32 %v2157_v52, %v2156_v25 }
 0x582   :  { %v3461_v39 = vmul.f32 -1.442695, %v2129_v61  ;;  %v2168_v30 = vrot.slane %v2129_v61, 2  ;;  %4660 = vtanh.f32 %v5534_v33  ;;  %v2179_v40 = vrot.slane %v2129_v61, 6 }
 0x583   :  { %v2176_v63 = vrot.slane %v2129_v61, 4 }
 0x584   :  { %4662 = vpow2.f32 %v3461_v39  ;;  %v3462_v1 = vmul.f32 -1.442695, %v2168_v30  ;;  %v3463_v54 = vmul.f32 -1.442695, %v2179_v40  ;;  %v5985_v40 = vld [vmem:[#allocation20_spill] sm:$0xff] }
 0x586   :  { %4664 = vpow2.f32 %v3462_v1  ;;  %v5984_v1 = vld [vmem:[#allocation19_spill] sm:$0xff] }
 0x587   :  { %4666 = vpow2.f32 %v3463_v54  ;;  %v5987_v54 = vld [vmem:[#allocation22_spill] sm:$0xff] }
 0x58c   :  { %v4661_v49 = vpop.eup %4660 }
 0x58d   :  { %v2160_v2 = vmul.f32 %v4661_v49, %v4659_v34  ;;  %v5986_v34 = vld [vmem:[#allocation21_spill] sm:$0xff]  ;;  %v5988_v49 = vld [vmem:[#allocation23_spill] sm:$0xff] }
 0x58e   :  { %v4663_v19 = vpop.eup %4662 }
 0x58f   :  { %v2164_v51 = vadd.f32 1.0, %v4663_v19  ;;  %2193 = vst [vmem:[#allocation12 + $0x8] sm:$0x3] %v2160_v2  ;;  %2263 = vmatmul.mubr.f32.vlgmr.msra.gmra.mrb[20].mxu0 %v2160_v2  ;;  %2334 = vmatmul.mubr.f32.vlgmr.msra.gmra.mrb[20].mxu1 %v2160_v2  ;;  %v5989_v19 = vld [vmem:[#allocation24_spill] sm:$0xff]  ;;  %v5991_v2 = vld [vmem:[#allocation26_spill] sm:$0xff] }
 0x590   :  { %v4665_v20 = vpop.eup %4664  ;;  %4189 = vmatpush1.bf16.msra.mxu0 %v5078_v11  ;;  %4221 = vmatpush1.bf16.msra.mxu1 %v5082_v12 }
 0x591   :  { %4668 = vrcp.f32 %v2164_v51  ;;  %v2173_v16 = vadd.f32 1.0, %v4665_v20  ;;  %4191 = vmatprep.subr.bf16.mxu0 %v5084_v14  ;;  %4223 = vmatprep.subr.bf16.mxu1 %v5087_v24  ;;  %v4667_v30 = vpop.eup %4666  ;;  %v5992_v51 = vld [vmem:[#allocation27_spill] sm:$0xff]  ;;  %v5993_v20 = vld [vmem:[#allocation28_spill] sm:$0xff] }
 0x592   :  { %4670 = vtanh.f32 %v2176_v63  ;;  %2429 = vmatprep.mubr.f32.mxu0 %v5883_v46  ;;  %2500 = vmatprep.mubr.f32.mxu1 %v5883_v46  ;;  %v2184_v35 = vadd.f32 1.0, %v4667_v30  ;;  %v5990_v63 = vld [vmem:[#allocation25_spill] sm:$0xff]  ;;  %v5995_v30 = vld [vmem:[#allocation30_spill] sm:$0xff] }
 0x593   :  { %4672 = vrcp.f32 %v2173_v16  ;;  %v5994_v16 = vld [vmem:[#allocation29_spill] sm:$0xff] }
 0x594   :  { %4193 = vmatpush1.bf16.msra.mxu0 %v5090_v38  ;;  %4225 = vmatpush1.bf16.msra.mxu1 %v5094_v41  ;;  %4674 = vrcp.f32 %v2184_v35  ;;  %v5999_v35 = vld [vmem:[#allocation34_spill] sm:$0xff] }
 0x595   :  { %4195 = vmatprep.subr.bf16.mxu0 %v5096_v42  ;;  %4227 = vmatprep.subr.bf16.mxu1 %v5099_v48 }
 0x598   :  { %4197 = vmatpush1.bf16.msra.mxu0 %v5104_v62  ;;  %4229 = vmatpush1.bf16.msra.mxu1 %v5885_v7 }
 0x599   :  { %4199 = vmatprep.subr.bf16.mxu0 %v5886_v60  ;;  %4231 = vmatprep.subr.bf16.mxu1 %v5887_v6 }
 0x59b   :  { %v4669_v31 = vpop.eup %4668 }
 0x59c   :  { %v4671_v29 = vpop.eup %4670  ;;  %4201 = vmatpush1.bf16.msra.mxu0 %v5888_v43  ;;  %4233 = vmatpush1.bf16.msra.mxu1 %v5889_v36 }
 0x59d   :  { %v4673_v53 = vpop.eup %4672  ;;  %4203 = vmatprep.subr.bf16.mxu0 %v5890_v50  ;;  %4235 = vmatprep.subr.bf16.mxu1 %v5891_v37  ;;  %v2188_v25 = vmul.f32 %v4671_v29, %v4669_v31  ;;  %v5996_v31 = vld [vmem:[#allocation31_spill] sm:$0xff]  ;;  %v5997_v29 = vld [vmem:[#allocation32_spill] sm:$0xff] }
 0x59e   :  { %v2187_v44 = vmul.f32 %v4673_v53, %v5476_v28  ;;  %v4675_v28 = vpop.eup %4674  ;;  %v5998_v53 = vld [vmem:[#allocation33_spill] sm:$0xff] }
 0x5a0   :  { %v5556_v52 = vadd.f32 %v2188_v25, %v2187_v44  ;;  %4205 = vmatpush1.bf16.msra.mxu0 %v5892_v55  ;;  %4237 = vmatpush1.bf16.msra.mxu1 %v5893_v3  ;;  %v6000_v44 = vld [vmem:[#allocation35_spill] sm:$0xff]  ;;  %v6001_v25 = vld [vmem:[#allocation36_spill] sm:$0xff] }
 0x5a1   :  { %4207 = vmatprep.subr.bf16.mxu0 %v5134_v23  ;;  %4239 = vmatprep.subr.bf16.mxu1 %v5894_v32 }
 0x5a2   :  { %4676 = vtanh.f32 %v5556_v52 }
 0x5a4   :  { %4209 = vmatpush1.bf16.msra.mxu0 %v5140_v45  ;;  %4241 = vmatpush1.bf16.msra.mxu1 %v5144_v0 }
 0x5a5   :  { %4211 = vmatprep.subr.bf16.mxu0 %v5146_v56  ;;  %4243 = vmatprep.subr.bf16.mxu1 %v5149_v10 }
 0x5a8   :  { %4213 = vmatpush1.bf16.msra.mxu0 %v5152_v15  ;;  %4245 = vmatpush1.bf16.msra.mxu1 %v5156_v5 }
 0x5a9   :  { %4215 = vmatprep.subr.bf16.mxu0 %v5158_v21  ;;  %4247 = vmatprep.subr.bf16.mxu1 %v5161_v47 }
 0x5ac   :  { %v4677_v61 = vpop.eup %4676  ;;  %4217 = vmatpush1.bf16.msra.mxu0 %v5164_v59  ;;  %4249 = vmatpush1.bf16.msra.mxu1 %v5168_v58 }
 0x5ad   :  { %v2191_v39 = vmul.f32 %v4677_v61, %v4675_v28  ;;  %4251 = vmatprep.subr.bf16.mxu0 %v4979_v4  ;;  %4283 = vmatprep.subr.bf16.mxu1 %v4981_v8  ;;  %v6002_v28 = vld [vmem:[#allocation37_spill] sm:$0xff]  ;;  %v6003_v61 = vld [vmem:[#allocation38_spill] sm:$0xff] }
 0x5af   :  { %2195 = vst [vmem:[#allocation13 + $0x8] sm:$0x3] %v2191_v39  ;;  %2430 = vmatmul.mubr.f32.vlgmr.msra.gmra.mrb[22].mxu0 %v2191_v39  ;;  %2501 = vmatmul.mubr.f32.vlgmr.msra.gmra.mrb[22].mxu1 %v2191_v39  ;;  %v6004_v39 = vld [vmem:[#allocation39_spill] sm:$0xff] }
 0x5b0   :  { %4253 = vmatpush1.bf16.msra.mxu0 %v4983_v9  ;;  %4285 = vmatpush1.bf16.msra.mxu1 %v4986_v13 }
 0x5b1   :  { %4255 = vmatprep.subr.bf16.mxu0 %v4990_v17  ;;  %4287 = vmatprep.subr.bf16.mxu1 %v4992_v18 }
 0x5b2   :  { %2662 = vmatprep.mubr.f32.mxu0 %v5883_v46  ;;  %2733 = vmatprep.mubr.f32.mxu1 %v5883_v46 }
 0x5b4   :  { %4257 = vmatpush1.bf16.msra.mxu0 %v4995_v22  ;;  %4289 = vmatpush1.bf16.msra.mxu1 %v4999_v26 }
 0x5b5   :  { %4259 = vmatprep.subr.bf16.mxu0 %v5001_v27  ;;  %4291 = vmatprep.subr.bf16.mxu1 %v5984_v1 }
 0x5b8   :  { %4261 = vmatpush1.bf16.msra.mxu0 %v5985_v40  ;;  %4293 = vmatpush1.bf16.msra.mxu1 %v5986_v34 }
 0x5b9   :  { %4263 = vmatprep.subr.bf16.mxu0 %v5987_v54  ;;  %4295 = vmatprep.subr.bf16.mxu1 %v5988_v49 }
 0x5bc   :  { %4265 = vmatpush1.bf16.msra.mxu0 %v5989_v19  ;;  %4297 = vmatpush1.bf16.msra.mxu1 %v5990_v63 }
 0x5bd   :  { %4267 = vmatprep.subr.bf16.mxu0 %v5991_v2  ;;  %4299 = vmatprep.subr.bf16.mxu1 %v5992_v51  ;;  %v2197_v2 = vld [vmem:[#allocation6 + $0x28] sm:$0xff] }
 0x5c0   :  { %4269 = vmatpush1.bf16.msra.mxu0 %v5993_v20  ;;  %4301 = vmatpush1.bf16.msra.mxu1 %v5994_v16  ;;  %v6005_v16 = vld [vmem:[#allocation40_spill] sm:$0xff] }
 0x5c1   :  { %4271 = vmatprep.subr.bf16.mxu0 %v5995_v30  ;;  %4303 = vmatprep.subr.bf16.mxu1 %v5996_v31  ;;  %v6006_v30 = vld [vmem:[#allocation41_spill] sm:$0xff]  ;;  %v6007_v31 = vld [vmem:[#allocation42_spill] sm:$0xff] }
 0x5c4   :  { %4273 = vmatpush1.bf16.msra.mxu0 %v5997_v29  ;;  %4305 = vmatpush1.bf16.msra.mxu1 %v5998_v53  ;;  %v6008_v29 = vld [vmem:[#allocation43_spill] sm:$0xff] }
 0x5c5   :  { %4275 = vmatprep.subr.bf16.mxu0 %v5999_v35  ;;  %4307 = vmatprep.subr.bf16.mxu1 %v6000_v44 }
 0x5c8   :  { %4277 = vmatpush1.bf16.msra.mxu0 %v6001_v25  ;;  %4309 = vmatpush1.bf16.msra.mxu1 %v6002_v28 }
 0x5c9   :  { %4279 = vmatprep.subr.bf16.mxu0 %v6003_v61  ;;  %4311 = vmatprep.subr.bf16.mxu1 %v6004_v39 }
 0x5cc   :  { %4281 = vmatpush1.bf16.msra.mxu0 %v6005_v16  ;;  %4313 = vmatpush1.bf16.msra.mxu1 %v6006_v30 }
 0x5cd   :  { %4315 = vmatprep.subr.bf16.mxu0 %v6007_v31  ;;  %4347 = vmatprep.subr.bf16.mxu1 %v6008_v29 }
 0x662   :  { %v2264_v53 = vpop.f32.mrb[20].mxu0  ;;  %v2335_v35 = vpop.f32.mrb[20].mxu1 }
 0x663   :  { %v2266_v20 = vpop.f32.mrb[21].mxu0  ;;  %v2337_v44 = vpop.f32.mrb[21].mxu1 }
 0x664   :  { %v2344_v51 = vcombine.low %v2264_v53, %v2266_v20  ;;  %v2345_v25 = vcombine.low %v2335_v35, %v2337_v44 }
 0x666   :  { %v2352_v28 = vrot.slane %v2344_v51, %v5908_v57  ;;  %v2359_v61 = vrot.slane %v2345_v25, %v5908_v57 }
 0x668   :  { %v2360_v39 = vcombine.low %v2352_v28, %v2359_v61  ;;  %v2364_v28 = vld [vmem:[#allocation9 + $0x28] sm:$0xff] }
 0x66a   :  { %v2362_v63 = vadd.f32 %v2360_v39, %v2197_v2 }
 0x66c   :  { %v3464_v16 = vmul.f32 -1.442695, %v2362_v63  ;;  %v2537_v19 = vrot.slane %v2362_v63, 2  ;;  %v2548_v31 = vrot.slane %v2362_v63, 6  ;;  %v2545_v54 = vrot.slane %v2362_v63, 4 }
 0x66e   :  { %4678 = vpow2.f32 %v3464_v16  ;;  %v3465_v30 = vmul.f32 -1.442695, %v2537_v19  ;;  %v3466_v29 = vmul.f32 -1.442695, %v2548_v31 }
 0x670   :  { %4680 = vpow2.f32 %v3465_v30 }
 0x671   :  { %4682 = vpow2.f32 %v3466_v29 }
 0x678   :  { %v4679_v49 = vpop.eup %4678 }
 0x679   :  { %v2533_v34 = vadd.f32 1.0, %v4679_v49 }
 0x67a   :  { %v4681_v40 = vpop.eup %4680 }
 0x67b   :  { %4684 = vrcp.f32 %v2533_v34  ;;  %v2542_v20 = vadd.f32 1.0, %v4681_v40  ;;  %v4683_v44 = vpop.eup %4682 }
 0x67c   :  { %4686 = vtanh.f32 %v2545_v54  ;;  %v2553_v29 = vadd.f32 1.0, %v4683_v44 }
 0x67d   :  { %4688 = vrcp.f32 %v2542_v20 }
 0x67e   :  { %4690 = vrcp.f32 %v2553_v29 }
 0x682   :  { %v2431_v51 = vpop.f32.mrb[22].mxu0  ;;  %v2502_v53 = vpop.f32.mrb[22].mxu1 }
 0x683   :  { %v2433_v35 = vpop.f32.mrb[23].mxu0  ;;  %v2504_v2 = vpop.f32.mrb[23].mxu1 }
 0x684   :  { %v2511_v25 = vcombine.low %v2431_v51, %v2433_v35  ;;  %v2512_v16 = vcombine.low %v2502_v53, %v2504_v2 }
 0x685   :  { %v4685_v19 = vpop.eup %4684 }
 0x686   :  { %v4687_v30 = vpop.eup %4686  ;;  %v2519_v31 = vrot.slane %v2511_v25, %v5908_v57  ;;  %v2526_v63 = vrot.slane %v2512_v16, %v5908_v57 }
 0x687   :  { %v4689_v49 = vpop.eup %4688  ;;  %v2557_v54 = vmul.f32 %v4687_v30, %v4685_v19 }
 0x688   :  { %v2527_v34 = vcombine.low %v2519_v31, %v2526_v63  ;;  %v2556_v40 = vmul.f32 %v4689_v49, %v5534_v33  ;;  %v4691_v35 = vpop.eup %4690 }
 0x68a   :  { %v2529_v61 = vadd.f32 %v2527_v34, %v2364_v28  ;;  %v5614_v39 = vadd.f32 %v2557_v54, %v2556_v40 }
 0x68c   :  { %v3467_v20 = vmul.f32 -1.442695, %v2529_v61  ;;  %v2568_v1 = vrot.slane %v2529_v61, 2  ;;  %4692 = vtanh.f32 %v5614_v39  ;;  %v2579_v53 = vrot.slane %v2529_v61, 6 }
 0x68d   :  { %v2576_v16 = vrot.slane %v2529_v61, 4 }
 0x68e   :  { %4694 = vpow2.f32 %v3467_v20  ;;  %v3468_v51 = vmul.f32 -1.442695, %v2568_v1  ;;  %v3469_v2 = vmul.f32 -1.442695, %v2579_v53  ;;  %v6016_v53 = vld [vmem:[#allocation26_spill] sm:$0xff] }
 0x690   :  { %4696 = vpow2.f32 %v3468_v51  ;;  %v6015_v51 = vld [vmem:[#allocation25_spill] sm:$0xff] }
 0x691   :  { %4698 = vpow2.f32 %v3469_v2  ;;  %v6021_v2 = vld [vmem:[#allocation31_spill] sm:$0xff] }
 0x696   :  { %v4693_v25 = vpop.eup %4692 }
 0x697   :  { %v2560_v31 = vmul.f32 %v4693_v25, %v4691_v35  ;;  %v6020_v35 = vld [vmem:[#allocation30_spill] sm:$0xff]  ;;  %v6022_v25 = vld [vmem:[#allocation32_spill] sm:$0xff] }
 0x698   :  { %v4695_v44 = vpop.eup %4694 }
 0x699   :  { %v2564_v33 = vadd.f32 1.0, %v4695_v44  ;;  %2593 = vst [vmem:[#allocation12 + $0xa] sm:$0x3] %v2560_v31  ;;  %2663 = vmatmul.mubr.f32.vlgmr.msra.gmra.mrb[24].mxu0 %v2560_v31  ;;  %2734 = vmatmul.mubr.f32.vlgmr.msra.gmra.mrb[24].mxu1 %v2560_v31  ;;  %v6023_v44 = vld [vmem:[#allocation33_spill] sm:$0xff]  ;;  %v6025_v31 = vld [vmem:[#allocation35_spill] sm:$0xff] }
 0x69a   :  { %v4697_v19 = vpop.eup %4696  ;;  %4317 = vmatpush1.bf16.msra.mxu0 %v5078_v11  ;;  %4349 = vmatpush1.bf16.msra.mxu1 %v5082_v12 }
 0x69b   :  { %4700 = vrcp.f32 %v2564_v33  ;;  %v2573_v30 = vadd.f32 1.0, %v4697_v19  ;;  %4319 = vmatprep.subr.bf16.mxu0 %v5084_v14  ;;  %4351 = vmatprep.subr.bf16.mxu1 %v5087_v24  ;;  %v4699_v1 = vpop.eup %4698  ;;  %v6026_v33 = vld [vmem:[#allocation36_spill] sm:$0xff]  ;;  %v6027_v19 = vld [vmem:[#allocation37_spill] sm:$0xff] }
 0x69c   :  { %4702 = vtanh.f32 %v2576_v16  ;;  %2829 = vmatprep.mubr.f32.mxu0 %v5883_v46  ;;  %2900 = vmatprep.mubr.f32.mxu1 %v5883_v46  ;;  %v2584_v29 = vadd.f32 1.0, %v4699_v1  ;;  %v6024_v16 = vld [vmem:[#allocation34_spill] sm:$0xff]  ;;  %v6029_v1 = vld [vmem:[#allocation39_spill] sm:$0xff] }
 0x69d   :  { %4704 = vrcp.f32 %v2573_v30  ;;  %v6028_v30 = vld [vmem:[#allocation38_spill] sm:$0xff] }
 0x69e   :  { %4321 = vmatpush1.bf16.msra.mxu0 %v5090_v38  ;;  %4353 = vmatpush1.bf16.msra.mxu1 %v5094_v41  ;;  %4706 = vrcp.f32 %v2584_v29  ;;  %v6033_v29 = vld [vmem:[#allocation43_spill] sm:$0xff] }
 0x69f   :  { %4323 = vmatprep.subr.bf16.mxu0 %v5096_v42  ;;  %4355 = vmatprep.subr.bf16.mxu1 %v5099_v48 }
 0x6a2   :  { %4325 = vmatpush1.bf16.msra.mxu0 %v5104_v62  ;;  %4357 = vmatpush1.bf16.msra.mxu1 %v5885_v7 }
 0x6a3   :  { %4327 = vmatprep.subr.bf16.mxu0 %v5886_v60  ;;  %4359 = vmatprep.subr.bf16.mxu1 %v5887_v6 }
 0x6a5   :  { %v4701_v63 = vpop.eup %4700 }
 0x6a6   :  { %v4703_v49 = vpop.eup %4702  ;;  %4329 = vmatpush1.bf16.msra.mxu0 %v5888_v43  ;;  %4361 = vmatpush1.bf16.msra.mxu1 %v5889_v36 }
 0x6a7   :  { %v4705_v28 = vpop.eup %4704  ;;  %4331 = vmatprep.subr.bf16.mxu0 %v5890_v50  ;;  %4363 = vmatprep.subr.bf16.mxu1 %v5891_v37  ;;  %v2588_v40 = vmul.f32 %v4703_v49, %v4701_v63  ;;  %v6030_v63 = vld [vmem:[#allocation40_spill] sm:$0xff]  ;;  %v6031_v49 = vld [vmem:[#allocation41_spill] sm:$0xff] }
 0x6a8   :  { %v2587_v34 = vmul.f32 %v4705_v28, %v5556_v52  ;;  %v4707_v52 = vpop.eup %4706  ;;  %v6032_v28 = vld [vmem:[#allocation42_spill] sm:$0xff] }
 0x6aa   :  { %v5636_v54 = vadd.f32 %v2588_v40, %v2587_v34  ;;  %4333 = vmatpush1.bf16.msra.mxu0 %v5892_v55  ;;  %4365 = vmatpush1.bf16.msra.mxu1 %v5893_v3 }
 0x6ab   :  { %4335 = vmatprep.subr.bf16.mxu0 %v5134_v23  ;;  %4367 = vmatprep.subr.bf16.mxu1 %v5894_v32 }
 0x6ac   :  { %4708 = vtanh.f32 %v5636_v54 }
 0x6ae   :  { %4337 = vmatpush1.bf16.msra.mxu0 %v5140_v45  ;;  %4369 = vmatpush1.bf16.msra.mxu1 %v5144_v0 }
 0x6af   :  { %4339 = vmatprep.subr.bf16.mxu0 %v5146_v56  ;;  %4371 = vmatprep.subr.bf16.mxu1 %v5149_v10 }
 0x6b2   :  { %4341 = vmatpush1.bf16.msra.mxu0 %v5152_v15  ;;  %4373 = vmatpush1.bf16.msra.mxu1 %v5156_v5 }
 0x6b3   :  { %4343 = vmatprep.subr.bf16.mxu0 %v5158_v21  ;;  %4375 = vmatprep.subr.bf16.mxu1 %v5161_v47 }
 0x6b6   :  { %v4709_v61 = vpop.eup %4708  ;;  %4345 = vmatpush1.bf16.msra.mxu0 %v5164_v59  ;;  %4377 = vmatpush1.bf16.msra.mxu1 %v5168_v58 }
 0x6b7   :  { %v2591_v20 = vmul.f32 %v4709_v61, %v4707_v52  ;;  %4379 = vmatprep.subr.bf16.mxu0 %v4979_v4  ;;  %4411 = vmatprep.subr.bf16.mxu1 %v4981_v8  ;;  %v6009_v4 = vld [vmem:[#allocation19_spill] sm:$0xff]  ;;  %v6010_v8 = vld [vmem:[#allocation20_spill] sm:$0xff] }
 0x6b9   :  { %2595 = vst [vmem:[#allocation13 + $0xa] sm:$0x3] %v2591_v20  ;;  %2830 = vmatmul.mubr.f32.vlgmr.msra.gmra.mrb[26].mxu0 %v2591_v20  ;;  %2901 = vmatmul.mubr.f32.vlgmr.msra.gmra.mrb[26].mxu1 %v2591_v20 }
 0x6ba   :  { %4381 = vmatpush1.bf16.msra.mxu0 %v4983_v9  ;;  %4413 = vmatpush1.bf16.msra.mxu1 %v4986_v13  ;;  %v6011_v9 = vld [vmem:[#allocation21_spill] sm:$0xff]  ;;  %v6012_v13 = vld [vmem:[#allocation22_spill] sm:$0xff] }
 0x6bb   :  { %4383 = vmatprep.subr.bf16.mxu0 %v4990_v17  ;;  %4415 = vmatprep.subr.bf16.mxu1 %v4992_v18  ;;  %v6013_v17 = vld [vmem:[#allocation23_spill] sm:$0xff]  ;;  %v6014_v18 = vld [vmem:[#allocation24_spill] sm:$0xff] }
 0x6bc   :  { %3062 = vmatprep.mubr.f32.mxu0 %v5883_v46  ;;  %3133 = vmatprep.mubr.f32.mxu1 %v5883_v46 }
 0x6be   :  { %4385 = vmatpush1.bf16.msra.mxu0 %v4995_v22  ;;  %4417 = vmatpush1.bf16.msra.mxu1 %v4999_v26  ;;  %v6017_v22 = vld [vmem:[#allocation27_spill] sm:$0xff]  ;;  %v6018_v26 = vld [vmem:[#allocation28_spill] sm:$0xff] }
 0x6bf   :  { %4387 = vmatprep.subr.bf16.mxu0 %v5001_v27  ;;  %4419 = vmatprep.subr.bf16.mxu1 %v6009_v4  ;;  %v6019_v27 = vld [vmem:[#allocation29_spill] sm:$0xff] }
 0x6c2   :  { %4389 = vmatpush1.bf16.msra.mxu0 %v6010_v8  ;;  %4421 = vmatpush1.bf16.msra.mxu1 %v6011_v9 }
 0x6c3   :  { %4391 = vmatprep.subr.bf16.mxu0 %v6012_v13  ;;  %4423 = vmatprep.subr.bf16.mxu1 %v6013_v17  ;;  %v2597_v13 = vld [vmem:[#allocation6 + $0x30] sm:$0xff] }
 0x6c6   :  { %4393 = vmatpush1.bf16.msra.mxu0 %v6014_v18  ;;  %4425 = vmatpush1.bf16.msra.mxu1 %v6015_v51 }
 0x6c7   :  { %4395 = vmatprep.subr.bf16.mxu0 %v6016_v53  ;;  %4427 = vmatprep.subr.bf16.mxu1 %v6017_v22 }
 0x6ca   :  { %4397 = vmatpush1.bf16.msra.mxu0 %v6018_v26  ;;  %4429 = vmatpush1.bf16.msra.mxu1 %v6019_v27 }
 0x6cb   :  { %4399 = vmatprep.subr.bf16.mxu0 %v6020_v35  ;;  %4431 = vmatprep.subr.bf16.mxu1 %v6021_v2 }
 0x6ce   :  { %4401 = vmatpush1.bf16.msra.mxu0 %v6022_v25  ;;  %4433 = vmatpush1.bf16.msra.mxu1 %v6023_v44 }
 0x6cf   :  { %4403 = vmatprep.subr.bf16.mxu0 %v6024_v16  ;;  %4435 = vmatprep.subr.bf16.mxu1 %v6025_v31 }
 0x6d2   :  { %4405 = vmatpush1.bf16.msra.mxu0 %v6026_v33  ;;  %4437 = vmatpush1.bf16.msra.mxu1 %v6027_v19 }
 0x6d3   :  { %4407 = vmatprep.subr.bf16.mxu0 %v6028_v30  ;;  %4439 = vmatprep.subr.bf16.mxu1 %v6029_v1 }
 0x6d6   :  { %4409 = vmatpush1.bf16.msra.mxu0 %v6030_v63  ;;  %4441 = vmatpush1.bf16.msra.mxu1 %v6031_v49 }
 0x6d7   :  { %4443 = vmatprep.subr.bf16.mxu0 %v6032_v28  ;;  %4475 = vmatprep.subr.bf16.mxu1 %v6033_v29 }
 0x76c   :  { %v2664_v34 = vpop.f32.mrb[24].mxu0  ;;  %v2735_v40 = vpop.f32.mrb[24].mxu1 }
 0x76d   :  { %v2666_v52 = vpop.f32.mrb[25].mxu0  ;;  %v2737_v61 = vpop.f32.mrb[25].mxu1 }
 0x76e   :  { %v2744_v20 = vcombine.low %v2664_v34, %v2666_v52  ;;  %v2745_v4 = vcombine.low %v2735_v40, %v2737_v61  ;;  %v2764_v61 = vld [vmem:[#allocation9 + $0x30] sm:$0xff] }
 0x770   :  { %v2752_v8 = vrot.slane %v2744_v20, %v5908_v57  ;;  %v2759_v9 = vrot.slane %v2745_v4, %v5908_v57 }
 0x772   :  { %v2760_v17 = vcombine.low %v2752_v8, %v2759_v9 }
 0x774   :  { %v2762_v18 = vadd.f32 %v2760_v17, %v2597_v13 }
 0x776   :  { %v3470_v51 = vmul.f32 -1.442695, %v2762_v18  ;;  %v2937_v53 = vrot.slane %v2762_v18, 2  ;;  %v2948_v26 = vrot.slane %v2762_v18, 6  ;;  %v2945_v2 = vrot.slane %v2762_v18, 4 }
 0x778   :  { %4710 = vpow2.f32 %v3470_v51  ;;  %v3471_v22 = vmul.f32 -1.442695, %v2937_v53  ;;  %v3472_v27 = vmul.f32 -1.442695, %v2948_v26 }
 0x77a   :  { %4712 = vpow2.f32 %v3471_v22 }
 0x77b   :  { %4714 = vpow2.f32 %v3472_v27 }
 0x782   :  { %v4711_v35 = vpop.eup %4710 }
 0x783   :  { %v2933_v25 = vadd.f32 1.0, %v4711_v35 }
 0x784   :  { %v4713_v44 = vpop.eup %4712 }
 0x785   :  { %4716 = vrcp.f32 %v2933_v25  ;;  %v2942_v16 = vadd.f32 1.0, %v4713_v44  ;;  %v4715_v1 = vpop.eup %4714 }
 0x786   :  { %4718 = vtanh.f32 %v2945_v2  ;;  %v2953_v20 = vadd.f32 1.0, %v4715_v1 }
 0x787   :  { %4720 = vrcp.f32 %v2942_v16 }
 0x788   :  { %4722 = vrcp.f32 %v2953_v20 }
 0x78c   :  { %v2831_v31 = vpop.f32.mrb[26].mxu0  ;;  %v2902_v33 = vpop.f32.mrb[26].mxu1 }
 0x78d   :  { %v2833_v19 = vpop.f32.mrb[27].mxu0  ;;  %v2904_v30 = vpop.f32.mrb[27].mxu1 }
 0x78e   :  { %v2911_v63 = vcombine.low %v2831_v31, %v2833_v19  ;;  %v2912_v49 = vcombine.low %v2902_v33, %v2904_v30 }
 0x78f   :  { %v4717_v28 = vpop.eup %4716 }
 0x790   :  { %v4719_v29 = vpop.eup %4718  ;;  %v2919_v34 = vrot.slane %v2911_v63, %v5908_v57  ;;  %v2926_v40 = vrot.slane %v2912_v49, %v5908_v57 }
 0x791   :  { %v4721_v52 = vpop.eup %4720  ;;  %v2957_v9 = vmul.f32 %v4719_v29, %v4717_v28 }
 0x792   :  { %v2927_v4 = vcombine.low %v2919_v34, %v2926_v40  ;;  %v2956_v8 = vmul.f32 %v4721_v52, %v5614_v39  ;;  %v4723_v26 = vpop.eup %4722 }
 0x794   :  { %v2929_v13 = vadd.f32 %v2927_v4, %v2764_v61  ;;  %v5694_v17 = vadd.f32 %v2957_v9, %v2956_v8  ;;  %v3164_v4 = vld [vmem:[#allocation9 + $0x38] sm:$0xff] }
 0x796   :  { %v3473_v18 = vmul.f32 -1.442695, %v2929_v13  ;;  %v2968_v51 = vrot.slane %v2929_v13, 2  ;;  %4724 = vtanh.f32 %v5694_v17  ;;  %v2979_v22 = vrot.slane %v2929_v13, 6 }
 0x797   :  { %v2976_v25 = vrot.slane %v2929_v13, 4 }
 0x798   :  { %4726 = vpow2.f32 %v3473_v18  ;;  %v3474_v53 = vmul.f32 -1.442695, %v2968_v51  ;;  %v3475_v27 = vmul.f32 -1.442695, %v2979_v22 }
 0x79a   :  { %4728 = vpow2.f32 %v3474_v53 }
 0x79b   :  { %4730 = vpow2.f32 %v3475_v27 }
 0x7a0   :  { %v4725_v35 = vpop.eup %4724 }
 0x7a1   :  { %v2960_v44 = vmul.f32 %v4725_v35, %v4723_v26 }
 0x7a2   :  { %v4727_v2 = vpop.eup %4726 }
 0x7a3   :  { %v2964_v39 = vadd.f32 1.0, %v4727_v2  ;;  %2993 = vst [vmem:[#allocation12 + $0xc] sm:$0x3] %v2960_v44  ;;  %3063 = vmatmul.mubr.f32.vlgmr.msra.gmra.mrb[28].mxu0 %v2960_v44  ;;  %3134 = vmatmul.mubr.f32.vlgmr.msra.gmra.mrb[28].mxu1 %v2960_v44 }
 0x7a4   :  { %v4729_v16 = vpop.eup %4728  ;;  %4445 = vmatpush1.bf16.msra.mxu0 %v5078_v11  ;;  %4477 = vmatpush1.bf16.msra.mxu1 %v5082_v12 }
 0x7a5   :  { %4732 = vrcp.f32 %v2964_v39  ;;  %v2973_v31 = vadd.f32 1.0, %v4729_v16  ;;  %4447 = vmatprep.subr.bf16.mxu0 %v5084_v14  ;;  %4479 = vmatprep.subr.bf16.mxu1 %v5087_v24  ;;  %v4731_v11 = vpop.eup %4730 }
 0x7a6   :  { %4734 = vtanh.f32 %v2976_v25  ;;  %3229 = vmatprep.mubr.f32.mxu0 %v5883_v46  ;;  %3300 = vmatprep.mubr.f32.mxu1 %v5883_v46  ;;  %v2984_v46 = vadd.f32 1.0, %v4731_v11 }
 0x7a7   :  { %4736 = vrcp.f32 %v2973_v31 }
 0x7a8   :  { %4449 = vmatpush1.bf16.msra.mxu0 %v5090_v38  ;;  %4481 = vmatpush1.bf16.msra.mxu1 %v5094_v41  ;;  %4738 = vrcp.f32 %v2984_v46 }
 0x7a9   :  { %4451 = vmatprep.subr.bf16.mxu0 %v5096_v42  ;;  %4483 = vmatprep.subr.bf16.mxu1 %v5099_v48 }
 0x7ac   :  { %4453 = vmatpush1.bf16.msra.mxu0 %v5104_v62  ;;  %4485 = vmatpush1.bf16.msra.mxu1 %v5885_v7  ;;  %v2997_v7 = vld [vmem:[#allocation6 + $0x38] sm:$0xff] }
 0x7ad   :  { %4455 = vmatprep.subr.bf16.mxu0 %v5886_v60  ;;  %4487 = vmatprep.subr.bf16.mxu1 %v5887_v6 }
 0x7af   :  { %v4733_v12 = vpop.eup %4732 }
 0x7b0   :  { %v4735_v14 = vpop.eup %4734  ;;  %4457 = vmatpush1.bf16.msra.mxu0 %v5888_v43  ;;  %4489 = vmatpush1.bf16.msra.mxu1 %v5889_v36 }
 0x7b1   :  { %v4737_v24 = vpop.eup %4736  ;;  %4459 = vmatprep.subr.bf16.mxu0 %v5890_v50  ;;  %4491 = vmatprep.subr.bf16.mxu1 %v5891_v37  ;;  %v2988_v41 = vmul.f32 %v4735_v14, %v4733_v12 }
 0x7b2   :  { %v2987_v38 = vmul.f32 %v4737_v24, %v5636_v54  ;;  %v4739_v48 = vpop.eup %4738 }
 0x7b4   :  { %v5716_v42 = vadd.f32 %v2988_v41, %v2987_v38  ;;  %4461 = vmatpush1.bf16.msra.mxu0 %v5892_v55  ;;  %4493 = vmatpush1.bf16.msra.mxu1 %v5893_v3 }
 0x7b5   :  { %4463 = vmatprep.subr.bf16.mxu0 %v5134_v23  ;;  %4495 = vmatprep.subr.bf16.mxu1 %v5894_v32 }
 0x7b6   :  { %4740 = vtanh.f32 %v5716_v42 }
 0x7b8   :  { %4465 = vmatpush1.bf16.msra.mxu0 %v5140_v45  ;;  %4497 = vmatpush1.bf16.msra.mxu1 %v5144_v0 }
 0x7b9   :  { %4467 = vmatprep.subr.bf16.mxu0 %v5146_v56  ;;  %4499 = vmatprep.subr.bf16.mxu1 %v5149_v10 }
 0x7bc   :  { %4469 = vmatpush1.bf16.msra.mxu0 %v5152_v15  ;;  %4501 = vmatpush1.bf16.msra.mxu1 %v5156_v5 }
 0x7bd   :  { %4471 = vmatprep.subr.bf16.mxu0 %v5158_v21  ;;  %4503 = vmatprep.subr.bf16.mxu1 %v5161_v47 }
 0x7c0   :  { %v4741_v62 = vpop.eup %4740  ;;  %4473 = vmatpush1.bf16.msra.mxu0 %v5164_v59  ;;  %4505 = vmatpush1.bf16.msra.mxu1 %v5168_v58 }
 0x7c1   :  { %v2991_v45 = vmul.f32 %v4741_v62, %v4739_v48 }
 0x7c3   :  { %2995 = vst [vmem:[#allocation13 + $0xc] sm:$0x3] %v2991_v45  ;;  %3230 = vmatmul.mubr.f32.vlgmr.msra.gmra.mrb[30].mxu0 %v2991_v45  ;;  %3301 = vmatmul.mubr.f32.vlgmr.msra.gmra.mrb[30].mxu1 %v2991_v45 }
 0x876   :  { %v3064_v23 = vpop.f32.mrb[28].mxu0  ;;  %v3135_v0 = vpop.f32.mrb[28].mxu1 }
 0x877   :  { %v3066_v56 = vpop.f32.mrb[29].mxu0  ;;  %v3137_v15 = vpop.f32.mrb[29].mxu1 }
 0x878   :  { %v3144_v10 = vcombine.low %v3064_v23, %v3066_v56  ;;  %v3145_v5 = vcombine.low %v3135_v0, %v3137_v15 }
 0x87a   :  { %v3152_v21 = vrot.slane %v3144_v10, %v5908_v57  ;;  %v3159_v47 = vrot.slane %v3145_v5, %v5908_v57 }
 0x87c   :  { %v3160_v60 = vcombine.low %v3152_v21, %v3159_v47 }
 0x87e   :  { %v3162_v6 = vadd.f32 %v3160_v60, %v2997_v7 }
 0x880   :  { %v3476_v59 = vmul.f32 -1.442695, %v3162_v6  ;;  %v3337_v43 = vrot.slane %v3162_v6, 2  ;;  %v3348_v36 = vrot.slane %v3162_v6, 6  ;;  %v3345_v55 = vrot.slane %v3162_v6, 4 }
 0x882   :  { %4742 = vpow2.f32 %v3476_v59  ;;  %v3477_v58 = vmul.f32 -1.442695, %v3337_v43  ;;  %v3478_v50 = vmul.f32 -1.442695, %v3348_v36 }
 0x884   :  { %4744 = vpow2.f32 %v3477_v58 }
 0x885   :  { %4746 = vpow2.f32 %v3478_v50 }
 0x88c   :  { %v4743_v37 = vpop.eup %4742 }
 0x88d   :  { %v3333_v3 = vadd.f32 1.0, %v4743_v37 }
 0x88e   :  { %v4745_v32 = vpop.eup %4744 }
 0x88f   :  { %4748 = vrcp.f32 %v3333_v3  ;;  %v3342_v54 = vadd.f32 1.0, %v4745_v32  ;;  %v4747_v63 = vpop.eup %4746 }
 0x890   :  { %4750 = vtanh.f32 %v3345_v55  ;;  %v3353_v20 = vadd.f32 1.0, %v4747_v63 }
 0x891   :  { %4752 = vrcp.f32 %v3342_v54 }
 0x892   :  { %4754 = vrcp.f32 %v3353_v20 }
 0x896   :  { %v3231_v33 = vpop.f32.mrb[30].mxu0  ;;  %v3302_v19 = vpop.f32.mrb[30].mxu1 }
 0x897   :  { %v3233_v30 = vpop.f32.mrb[31].mxu0  ;;  %v3304_v1 = vpop.f32.mrb[31].mxu1 }
 0x898   :  { %v3311_v49 = vcombine.low %v3231_v33, %v3233_v30  ;;  %v3312_v28 = vcombine.low %v3302_v19, %v3304_v1 }
 0x899   :  { %v4749_v29 = vpop.eup %4748 }
 0x89a   :  { %v4751_v34 = vpop.eup %4750  ;;  %v3319_v40 = vrot.slane %v3311_v49, %v5908_v57  ;;  %v3326_v52 = vrot.slane %v3312_v28, %v5908_v57 }
 0x89b   :  { %v4753_v61 = vpop.eup %4752  ;;  %v3357_v9 = vmul.f32 %v4751_v34, %v4749_v29 }
 0x89c   :  { %v3356_v8 = vmul.f32 %v4753_v61, %v5694_v17  ;;  %v3327_v13 = vcombine.low %v3319_v40, %v3326_v52  ;;  %v4755_v57 = vpop.eup %4754 }
 0x89e   :  { %v3358_v18 = vadd.f32 %v3357_v9, %v3356_v8  ;;  %v3329_v51 = vadd.f32 %v3327_v13, %v3164_v4 }
 0x8a0   :  { %4756 = vtanh.f32 %v3358_v18  ;;  %3397 = vst [vmem:[#allocation3] sm:$0x3] %v3358_v18  ;;  %v3479_v53 = vmul.f32 -1.442695, %v3329_v51  ;;  %v3368_v22 = vrot.slane %v3329_v51, 2  ;;  %v3379_v27 = vrot.slane %v3329_v51, 6 }
 0x8a1   :  { %v3376_v44 = vrot.slane %v3329_v51, 4 }
 0x8a2   :  { %4758 = vpow2.f32 %v3479_v53  ;;  %v3480_v26 = vmul.f32 -1.442695, %v3368_v22  ;;  %v3481_v2 = vmul.f32 -1.442695, %v3379_v27 }
 0x8a4   :  { %4760 = vpow2.f32 %v3480_v26 }
 0x8a5   :  { %4762 = vpow2.f32 %v3481_v2 }
 0x8aa   :  { %v4757_v35 = vpop.eup %4756 }
 0x8ab   :  { %v3360_v25 = vmul.f32 %v4757_v35, %v4755_v57 }
 0x8ac   :  { %v4759_v17 = vpop.eup %4758 }
 0x8ad   :  { %3396 = vst [vmem:[#allocation2] sm:$0x3] %v3360_v25  ;;  %3393 = vst [vmem:[#allocation12 + $0xe] sm:$0x3] %v3360_v25  ;;  %v3364_v39 = vadd.f32 1.0, %v4759_v17 }
 0x8ae   :  { %v4761_v16 = vpop.eup %4760 }
 0x8af   :  { %4851 = shalt.err (!%p4848_p0)
}
 0x8b0   :  { %s4852_s5 = scalar_lea.hbm %s5772_s3, 256 }
 0x8b1   :  { %p4853_p1 = scmp.ne.s32.totalorder %s5772_s3, %s4852_s5  ;;  %p4856_p2 = scmp.lt.u32.totalorder %s4852_s5, %s5772_s3 }
 0x8b3   :  { %p4858_p3 = pnand %p4856_p2, %p4853_p1 }
 0x8b5   :  { %4861 = shalt.err (!%p4858_p3)
}
 0x8b6   :  { %s4902_s10 = smov 2   ;;  %4764 = vrcp.f32 %v3364_v39  ;;  %v3373_v31 = vadd.f32 1.0, %v4761_v16  ;;  %v4763_v11 = vpop.eup %4762  ;;  %s4903_s1 = smov [#allocation13]  }
 0x8b7   :  { %3411 = dma.vmem_to_hbm [thread:$0]  %s3406_s27, 256, %s5772_s3, [#allocation8], %s4898_s18, %s4898_s18, %s4902_s10   ;;  %4766 = vtanh.f32 %v3376_v44  ;;  %v3384_v46 = vadd.f32 1.0, %v4763_v11 }
 0x8b8   :  { %4768 = vrcp.f32 %v3373_v31  ;;  %s3417_s13 = sshll.u32 %s4903_s1, 4  ;;  %s3418_s13 = int_to_ptr.vmem [resolvable:$true] %s3417_s13 }
 0x8b9   :  { %4770 = vrcp.f32 %v3384_v46  ;;  %s4862_s3 = scalar_lea.vmem %s3418_s13, 256  ;;  %p4867_p5 = scmp.lt.s32.totalorder %s3418_s13, %s3418_s13 }
 0x8ba   :  { %p4863_p4 = scmp.ne.s32.totalorder %s3418_s13, %s4862_s3  ;;  %p4868_p6 = scmp.lt.s32.totalorder %s4862_s3, %s4862_s3 }
 0x8bc   :  { %p4869_p7 = por %p4868_p6, %p4867_p5 }
 0x8be   :  { %p4870_p8 = pnand %p4869_p7, %p4863_p4 }
 0x8c0   :  { %v4765_v12 = vpop.eup %4764 }
 0x8c1   :  { %v4767_v14 = vpop.eup %4766 }
 0x8c2   :  { %v4769_v24 = vpop.eup %4768  ;;  %v3388_v41 = vmul.f32 %v4767_v14, %v4765_v12 }
 0x8c3   :  { %v3387_v38 = vmul.f32 %v4769_v24, %v5716_v42  ;;  %v4771_v62 = vpop.eup %4770 }
 0x8c5   :  { %v3389_v48 = vadd.f32 %v3388_v41, %v3387_v38 }
 0x8c7   :  { %4772 = vtanh.f32 %v3389_v48  ;;  %3399 = vst [vmem:[#allocation5] sm:$0x3] %v3389_v48 }
 0x8d1   :  { %v4773_v45 = vpop.eup %4772 }
 0x8d2   :  { %v3391_v23 = vmul.f32 %v4773_v45, %v4771_v62 }
 0x8d4   :  { %3398 = vst [vmem:[#allocation4] sm:$0x3] %v3391_v23  ;;  %3395 = vst [vmem:[#allocation13 + $0xe] sm:$0x3] %v3391_v23 }
 0x8d5   :  { %4873 = shalt.err (!%p4870_p8)
}
 0x8d6   :  { %s4874_s16 = scalar_lea.hbm %s5773_s4, 256 }
 0x8d7   :  { %p4875_p9 = scmp.ne.s32.totalorder %s5773_s4, %s4874_s16  ;;  %p4878_p10 = scmp.lt.u32.totalorder %s4874_s16, %s5773_s4 }
 0x8d9   :  { %p4880_p11 = pnand %p4878_p10, %p4875_p9 }
 0x8db   :  { %4883 = shalt.err (!%p4880_p11)
}
 0x8dc   :  { %3423 = dma.vmem_to_hbm [thread:$0]  %s3418_s13, 256, %s5773_s4, [#allocation14], %s4898_s18, %s4898_s18, %s4902_s10  }
 0x8dd   :  { %4888 = dma.done.wait [#allocation8], 256  }
 0x8de   :  { %4889 = vsyncadd [#allocation8], 4294967040 }
 0x8df   :  { %4890 = dma.done.wait [#allocation14], 256  }
 0x8e0   :  { %4891 = vsyncadd [#allocation14], 4294967040 }
 0x8e1   :  { %3430 = vsyncpa [#allocation7], 1 }
 0x8e2   :  { %3431 = vsyncpa [#allocation10], 1 }
 0x8e3   :  { %3432 = vsyncpa [#allocation8], 1 }
 0x8e4   :  { %3433 = vsyncpa [#allocation14], 1 }

</bundles_post_ra>
